<compile_context>
chip_gen: v6e
topology: v6e:2x2x1
jax: 0.10.0
libtpu: 0.0.40
codegen_flags: <defaults>
</compile_context>

<pallas_src>
import jax
import jax.numpy as jnp
from jax import lax
from jax.experimental import pallas as pl
from jax.experimental.pallas import tpu as pltpu


def _make_ception_kernel(*, C_in, C_out, KH, KW, sh, sw, H_out, W_out, K, apply_pool):
    def kernel(*refs):
        x_ref, w_ref, b_ref = refs[0], refs[1], refs[2]          # x: VMEM, w/b: SMEM
        pool_ref = refs[3] if apply_pool else None               # (W_out, W_pool) f32, VMEM
        o_ref = refs[-1]                                         # (1, C_out, H_out, W_pool)

        # Bias folded into the accumulator init (hoisted out of the tap loop).
        accs = [jnp.zeros((H_out, W_out), jnp.float32) + b_ref[co] for co in range(C_out)]

        # Conv as K shifted-slice VPU FMAs; W_out sits on the lane axis (lane-dense).
        k = 0
        for c in range(C_in):
            for i in range(KH):
                for j in range(KW):
                    h_idx = pl.ds(i, H_out) if sh == 1 else pl.ds(i, H_out, stride=sh)
                    w_idx = pl.ds(j, W_out) if sw == 1 else pl.ds(j, W_out, stride=sw)
                    tap = x_ref[0, c, h_idx, w_idx].astype(jnp.float32)   # (H_out, W_out)
                    for co in range(C_out):
                        accs[co] = accs[co] + w_ref[co * K + k] * tap
                    k += 1

        for co in range(C_out):
            y = jnp.maximum(accs[co], 0.0)                                # ReLU
            if apply_pool:
                # AvgPool2d((1,P),(1,P)) as a tiny f32 averaging matmul (handles the floor-trim
                # of trailing columns via all-zero rows in pool_ref).
                y = jnp.dot(y, pool_ref[...], preferred_element_type=jnp.float32)
            o_ref[0, co] = y.astype(o_ref.dtype)

    return kernel


def ception_forward(x, weight, bias, *, stride, padding, mode=0, small=False):
    # TODO(synk): the PyTorch forward gates the pool on a global `opt.small`; exposed here as the
    #             `small` kwarg (default False => pool is applied, matching the usual config).
    N, C_in, H, W = x.shape
    C_out, C_in_w, KH, KW = weight.shape
    if C_in_w != C_in:
        raise ValueError(f"weight C_in {C_in_w} != input C_in {C_in}")
    sh, sw = stride
    ph, pw = padding
    H_pad, W_pad = H + 2 * ph, W + 2 * pw
    H_out = (H_pad - KH) // sh + 1
    W_out = (W_pad - KW) // sw + 1
    K = C_in * KH * KW

    apply_pool = not small
    P = (32 if mode == 0 else 16) if apply_pool else 1
    W_pool = W_out // P
    if W_pool < 1:
        raise ValueError(f"AvgPool window {P} larger than conv output width {W_out}")

    x_pad = x if (ph == 0 and pw == 0) else jnp.pad(x, ((0, 0), (0, 0), (ph, ph), (pw, pw)))
    w_flat = weight.astype(jnp.float32).reshape(-1)   # (C_out*K,)  -> SMEM, index co*K + k
    b_vec = bias.astype(jnp.float32).reshape(-1)      # (C_out,)    -> SMEM

    inputs = [x_pad, w_flat, b_vec]
    in_specs = [
        pl.BlockSpec((1, C_in, H_pad, W_pad), lambda n: (n, 0, 0, 0)),
        pl.BlockSpec(memory_space=pltpu.MemorySpace.SMEM),
        pl.BlockSpec(memory_space=pltpu.MemorySpace.SMEM),
    ]
    pool_w = None
    if apply_pool:
        w_idx = jnp.arange(W_out)[:, None] // P        # pooled-column index of each conv column
        t_idx = jnp.arange(W_pool)[None, :]
        pool_w = jnp.where(w_idx == t_idx, 1.0 / P, 0.0).astype(jnp.float32)  # (W_out, W_pool)
        inputs.append(pool_w)
        in_specs.append(pl.BlockSpec((W_out, W_pool), lambda n: (0, 0)))

    kernel = _make_ception_kernel(C_in=C_in, C_out=C_out, KH=KH, KW=KW, sh=sh, sw=sw,
                                  H_out=H_out, W_out=W_out, K=K, apply_pool=apply_pool)

    flops = 2 * N * C_out * K * H_out * W_out
    if apply_pool:
        flops += 2 * N * C_out * H_out * W_out * W_pool
    bytes_accessed = (x_pad.size * x_pad.dtype.itemsize
                      + 4 * (w_flat.size + b_vec.size)
                      + (pool_w.size * 4 if apply_pool else 0)
                      + N * C_out * H_out * W_pool * x.dtype.itemsize)

    out = pl.pallas_call(
        kernel,
        out_shape=jax.ShapeDtypeStruct((N, C_out, H_out, W_pool), x.dtype),
        grid=(N,),
        in_specs=in_specs,
        out_specs=pl.BlockSpec((1, C_out, H_out, W_pool), lambda n: (n, 0, 0, 0)),
        compiler_params=pltpu.CompilerParams(dimension_semantics=("parallel",)),
        cost_estimate=pl.CostEstimate(flops=flops, transcendentals=0,
                                      bytes_accessed=bytes_accessed),
    )(*inputs)
    return out   # already NCHW: (N, C_out, H_out, W_pool)


if __name__ == "__main__":
    key = jax.random.PRNGKey(0)

    # Small shapes consistent with TSception's temporal-conv usage (C_in=1, kernel (1, KW)).
    N, C_in, H, W = 2, 1, 8, 279
    C_out, KH, KW = 8, 1, 16
    stride, padding, mode = (1, 1), (0, 0), 1      # mode=1 -> AvgPool2d((1,16), stride (1,16))

    k1, k2, k3 = jax.random.split(key, 3)
    fan_in = C_in * KH * KW
    bound = 1.0 / float(fan_in) ** 0.5             # PyTorch default Conv2d init range
    weight = jax.random.uniform(k1, (C_out, C_in, KH, KW), jnp.float32, -bound, bound)
    bias = jax.random.uniform(k2, (C_out,), jnp.float32, -bound, bound)
    x = jax.random.normal(k3, (N, C_in, H, W), jnp.float32)

    out = ception_forward(x, weight, bias, stride=stride, padding=padding, mode=mode)
    out = jax.block_until_ready(out)

    # Pure-JAX reference for correctness.
    P = 32 if mode == 0 else 16
    ref = lax.conv_general_dilated(
        x, weight, window_strides=stride,
        padding=[(padding[0], padding[0]), (padding[1], padding[1])],
        dimension_numbers=("NCHW", "OIHW", "NCHW"))
    ref = jnp.maximum(ref + bias.reshape(1, C_out, 1, 1), 0.0)
    Wc = ref.shape[-1]
    Wp = Wc // P
    ref = ref[:, :, :, :Wp * P].reshape(N, C_out, ref.shape[2], Wp, P).mean(-1)

    assert out.shape == ref.shape, (out.shape, ref.shape)
    max_err = float(jnp.max(jnp.abs(out - ref)))
    assert jnp.allclose(out, ref, atol=2e-5, rtol=1e-5), max_err
    print("KERNEL_OK")
</pallas_src>

<mosaic_0001>
module attributes {stable_mosaic.version = 11 : i64} {
  func.func @kernel(%arg0: i32, %arg1: memref<1x1x8x279xf32, #tpu.memory_space<vmem>>, %arg2: memref<128xf32, #tpu.memory_space<smem>>, %arg3: memref<8xf32, #tpu.memory_space<smem>>, %arg4: memref<264x16xf32, #tpu.memory_space<vmem>>, %arg5: memref<1x8x8x16xf32, #tpu.memory_space<vmem>>) attributes {dimension_semantics = [#tpu.dimension_semantics<parallel>], iteration_bounds = array<i64: 2>, scalar_prefetch = 0 : i64, scratch_operands = 0 : i64, tpu.core_type = #tpu.core_type<tc>, window_params = [{transform_indices = @transform_0, window_bounds = array<i64: 1, 1, 8, 279>}, {transform_indices = @transform_1, window_bounds = array<i64: 128>}, {transform_indices = @transform_2, window_bounds = array<i64: 8>}, {pipeline_mode = #tpu.pipeline_mode<synchronous>, transform_indices = @transform_3, window_bounds = array<i64: 264, 16>}, {transform_indices = @transform_4, window_bounds = array<i64: 1, 8, 8, 16>}]} {
    %cst = arith.constant 0.000000e+00 : f32
    %0 = vector.broadcast %cst : f32 to vector<8x264xf32>
    %c0 = arith.constant 0 : index
    %1 = memref.load %arg3[%c0] : memref<8xf32, #tpu.memory_space<smem>>
    %2 = vector.broadcast %1 : f32 to vector<8x264xf32>
    %3 = arith.addf %0, %2 : vector<8x264xf32>
    %cst_0 = arith.constant 0.000000e+00 : f32
    %4 = vector.broadcast %cst_0 : f32 to vector<8x264xf32>
    %c1 = arith.constant 1 : index
    %5 = memref.load %arg3[%c1] : memref<8xf32, #tpu.memory_space<smem>>
    %6 = vector.broadcast %5 : f32 to vector<8x264xf32>
    %7 = arith.addf %4, %6 : vector<8x264xf32>
    %cst_1 = arith.constant 0.000000e+00 : f32
    %8 = vector.broadcast %cst_1 : f32 to vector<8x264xf32>
    %c2 = arith.constant 2 : index
    %9 = memref.load %arg3[%c2] : memref<8xf32, #tpu.memory_space<smem>>
    %10 = vector.broadcast %9 : f32 to vector<8x264xf32>
    %11 = arith.addf %8, %10 : vector<8x264xf32>
    %cst_2 = arith.constant 0.000000e+00 : f32
    %12 = vector.broadcast %cst_2 : f32 to vector<8x264xf32>
    %c3 = arith.constant 3 : index
    %13 = memref.load %arg3[%c3] : memref<8xf32, #tpu.memory_space<smem>>
    %14 = vector.broadcast %13 : f32 to vector<8x264xf32>
    %15 = arith.addf %12, %14 : vector<8x264xf32>
    %cst_3 = arith.constant 0.000000e+00 : f32
    %16 = vector.broadcast %cst_3 : f32 to vector<8x264xf32>
    %c4 = arith.constant 4 : index
    %17 = memref.load %arg3[%c4] : memref<8xf32, #tpu.memory_space<smem>>
    %18 = vector.broadcast %17 : f32 to vector<8x264xf32>
    %19 = arith.addf %16, %18 : vector<8x264xf32>
    %cst_4 = arith.constant 0.000000e+00 : f32
    %20 = vector.broadcast %cst_4 : f32 to vector<8x264xf32>
    %c5 = arith.constant 5 : index
    %21 = memref.load %arg3[%c5] : memref<8xf32, #tpu.memory_space<smem>>
    %22 = vector.broadcast %21 : f32 to vector<8x264xf32>
    %23 = arith.addf %20, %22 : vector<8x264xf32>
    %cst_5 = arith.constant 0.000000e+00 : f32
    %24 = vector.broadcast %cst_5 : f32 to vector<8x264xf32>
    %c6 = arith.constant 6 : index
    %25 = memref.load %arg3[%c6] : memref<8xf32, #tpu.memory_space<smem>>
    %26 = vector.broadcast %25 : f32 to vector<8x264xf32>
    %27 = arith.addf %24, %26 : vector<8x264xf32>
    %cst_6 = arith.constant 0.000000e+00 : f32
    %28 = vector.broadcast %cst_6 : f32 to vector<8x264xf32>
    %c7 = arith.constant 7 : index
    %29 = memref.load %arg3[%c7] : memref<8xf32, #tpu.memory_space<smem>>
    %30 = vector.broadcast %29 : f32 to vector<8x264xf32>
    %31 = arith.addf %28, %30 : vector<8x264xf32>
    %c0_7 = arith.constant 0 : index
    %c0_8 = arith.constant 0 : index
    %c0_9 = arith.constant 0 : index
    %c0_10 = arith.constant 0 : index
    %32 = vector.load %arg1[%c0_7, %c0_8, %c0_9, %c0_10] : memref<1x1x8x279xf32, #tpu.memory_space<vmem>>, vector<1x1x8x264xf32>
    %33 = vector.shape_cast %32 : vector<1x1x8x264xf32> to vector<8x264xf32>
    %c0_11 = arith.constant 0 : index
    %34 = memref.load %arg2[%c0_11] : memref<128xf32, #tpu.memory_space<smem>>
    %35 = vector.broadcast %34 : f32 to vector<8x264xf32>
    %36 = arith.mulf %35, %33 : vector<8x264xf32>
    %37 = arith.addf %3, %36 : vector<8x264xf32>
    %c16 = arith.constant 16 : index
    %38 = memref.load %arg2[%c16] : memref<128xf32, #tpu.memory_space<smem>>
    %39 = vector.broadcast %38 : f32 to vector<8x264xf32>
    %40 = arith.mulf %39, %33 : vector<8x264xf32>
    %41 = arith.addf %7, %40 : vector<8x264xf32>
    %c32 = arith.constant 32 : index
    %42 = memref.load %arg2[%c32] : memref<128xf32, #tpu.memory_space<smem>>
    %43 = vector.broadcast %42 : f32 to vector<8x264xf32>
    %44 = arith.mulf %43, %33 : vector<8x264xf32>
    %45 = arith.addf %11, %44 : vector<8x264xf32>
    %c48 = arith.constant 48 : index
    %46 = memref.load %arg2[%c48] : memref<128xf32, #tpu.memory_space<smem>>
    %47 = vector.broadcast %46 : f32 to vector<8x264xf32>
    %48 = arith.mulf %47, %33 : vector<8x264xf32>
    %49 = arith.addf %15, %48 : vector<8x264xf32>
    %c64 = arith.constant 64 : index
    %50 = memref.load %arg2[%c64] : memref<128xf32, #tpu.memory_space<smem>>
    %51 = vector.broadcast %50 : f32 to vector<8x264xf32>
    %52 = arith.mulf %51, %33 : vector<8x264xf32>
    %53 = arith.addf %19, %52 : vector<8x264xf32>
    %c80 = arith.constant 80 : index
    %54 = memref.load %arg2[%c80] : memref<128xf32, #tpu.memory_space<smem>>
    %55 = vector.broadcast %54 : f32 to vector<8x264xf32>
    %56 = arith.mulf %55, %33 : vector<8x264xf32>
    %57 = arith.addf %23, %56 : vector<8x264xf32>
    %c96 = arith.constant 96 : index
    %58 = memref.load %arg2[%c96] : memref<128xf32, #tpu.memory_space<smem>>
    %59 = vector.broadcast %58 : f32 to vector<8x264xf32>
    %60 = arith.mulf %59, %33 : vector<8x264xf32>
    %61 = arith.addf %27, %60 : vector<8x264xf32>
    %c112 = arith.constant 112 : index
    %62 = memref.load %arg2[%c112] : memref<128xf32, #tpu.memory_space<smem>>
    %63 = vector.broadcast %62 : f32 to vector<8x264xf32>
    %64 = arith.mulf %63, %33 : vector<8x264xf32>
    %65 = arith.addf %31, %64 : vector<8x264xf32>
    %c0_12 = arith.constant 0 : index
    %c0_13 = arith.constant 0 : index
    %c0_14 = arith.constant 0 : index
    %c1_15 = arith.constant 1 : index
    %66 = vector.load %arg1[%c0_12, %c0_13, %c0_14, %c1_15] : memref<1x1x8x279xf32, #tpu.memory_space<vmem>>, vector<1x1x8x264xf32>
    %67 = vector.shape_cast %66 : vector<1x1x8x264xf32> to vector<8x264xf32>
    %c1_16 = arith.constant 1 : index
    %68 = memref.load %arg2[%c1_16] : memref<128xf32, #tpu.memory_space<smem>>
    %69 = vector.broadcast %68 : f32 to vector<8x264xf32>
    %70 = arith.mulf %69, %67 : vector<8x264xf32>
    %71 = arith.addf %37, %70 : vector<8x264xf32>
    %c17 = arith.constant 17 : index
    %72 = memref.load %arg2[%c17] : memref<128xf32, #tpu.memory_space<smem>>
    %73 = vector.broadcast %72 : f32 to vector<8x264xf32>
    %74 = arith.mulf %73, %67 : vector<8x264xf32>
    %75 = arith.addf %41, %74 : vector<8x264xf32>
    %c33 = arith.constant 33 : index
    %76 = memref.load %arg2[%c33] : memref<128xf32, #tpu.memory_space<smem>>
    %77 = vector.broadcast %76 : f32 to vector<8x264xf32>
    %78 = arith.mulf %77, %67 : vector<8x264xf32>
    %79 = arith.addf %45, %78 : vector<8x264xf32>
    %c49 = arith.constant 49 : index
    %80 = memref.load %arg2[%c49] : memref<128xf32, #tpu.memory_space<smem>>
    %81 = vector.broadcast %80 : f32 to vector<8x264xf32>
    %82 = arith.mulf %81, %67 : vector<8x264xf32>
    %83 = arith.addf %49, %82 : vector<8x264xf32>
    %c65 = arith.constant 65 : index
    %84 = memref.load %arg2[%c65] : memref<128xf32, #tpu.memory_space<smem>>
    %85 = vector.broadcast %84 : f32 to vector<8x264xf32>
    %86 = arith.mulf %85, %67 : vector<8x264xf32>
    %87 = arith.addf %53, %86 : vector<8x264xf32>
    %c81 = arith.constant 81 : index
    %88 = memref.load %arg2[%c81] : memref<128xf32, #tpu.memory_space<smem>>
    %89 = vector.broadcast %88 : f32 to vector<8x264xf32>
    %90 = arith.mulf %89, %67 : vector<8x264xf32>
    %91 = arith.addf %57, %90 : vector<8x264xf32>
    %c97 = arith.constant 97 : index
    %92 = memref.load %arg2[%c97] : memref<128xf32, #tpu.memory_space<smem>>
    %93 = vector.broadcast %92 : f32 to vector<8x264xf32>
    %94 = arith.mulf %93, %67 : vector<8x264xf32>
    %95 = arith.addf %61, %94 : vector<8x264xf32>
    %c113 = arith.constant 113 : index
    %96 = memref.load %arg2[%c113] : memref<128xf32, #tpu.memory_space<smem>>
    %97 = vector.broadcast %96 : f32 to vector<8x264xf32>
    %98 = arith.mulf %97, %67 : vector<8x264xf32>
    %99 = arith.addf %65, %98 : vector<8x264xf32>
    %c0_17 = arith.constant 0 : index
    %c0_18 = arith.constant 0 : index
    %c0_19 = arith.constant 0 : index
    %c2_20 = arith.constant 2 : index
    %100 = vector.load %arg1[%c0_17, %c0_18, %c0_19, %c2_20] : memref<1x1x8x279xf32, #tpu.memory_space<vmem>>, vector<1x1x8x264xf32>
    %101 = vector.shape_cast %100 : vector<1x1x8x264xf32> to vector<8x264xf32>
    %c2_21 = arith.constant 2 : index
    %102 = memref.load %arg2[%c2_21] : memref<128xf32, #tpu.memory_space<smem>>
    %103 = vector.broadcast %102 : f32 to vector<8x264xf32>
    %104 = arith.mulf %103, %101 : vector<8x264xf32>
    %105 = arith.addf %71, %104 : vector<8x264xf32>
    %c18 = arith.constant 18 : index
    %106 = memref.load %arg2[%c18] : memref<128xf32, #tpu.memory_space<smem>>
    %107 = vector.broadcast %106 : f32 to vector<8x264xf32>
    %108 = arith.mulf %107, %101 : vector<8x264xf32>
    %109 = arith.addf %75, %108 : vector<8x264xf32>
    %c34 = arith.constant 34 : index
    %110 = memref.load %arg2[%c34] : memref<128xf32, #tpu.memory_space<smem>>
    %111 = vector.broadcast %110 : f32 to vector<8x264xf32>
    %112 = arith.mulf %111, %101 : vector<8x264xf32>
    %113 = arith.addf %79, %112 : vector<8x264xf32>
    %c50 = arith.constant 50 : index
    %114 = memref.load %arg2[%c50] : memref<128xf32, #tpu.memory_space<smem>>
    %115 = vector.broadcast %114 : f32 to vector<8x264xf32>
    %116 = arith.mulf %115, %101 : vector<8x264xf32>
    %117 = arith.addf %83, %116 : vector<8x264xf32>
    %c66 = arith.constant 66 : index
    %118 = memref.load %arg2[%c66] : memref<128xf32, #tpu.memory_space<smem>>
    %119 = vector.broadcast %118 : f32 to vector<8x264xf32>
    %120 = arith.mulf %119, %101 : vector<8x264xf32>
    %121 = arith.addf %87, %120 : vector<8x264xf32>
    %c82 = arith.constant 82 : index
    %122 = memref.load %arg2[%c82] : memref<128xf32, #tpu.memory_space<smem>>
    %123 = vector.broadcast %122 : f32 to vector<8x264xf32>
    %124 = arith.mulf %123, %101 : vector<8x264xf32>
    %125 = arith.addf %91, %124 : vector<8x264xf32>
    %c98 = arith.constant 98 : index
    %126 = memref.load %arg2[%c98] : memref<128xf32, #tpu.memory_space<smem>>
    %127 = vector.broadcast %126 : f32 to vector<8x264xf32>
    %128 = arith.mulf %127, %101 : vector<8x264xf32>
    %129 = arith.addf %95, %128 : vector<8x264xf32>
    %c114 = arith.constant 114 : index
    %130 = memref.load %arg2[%c114] : memref<128xf32, #tpu.memory_space<smem>>
    %131 = vector.broadcast %130 : f32 to vector<8x264xf32>
    %132 = arith.mulf %131, %101 : vector<8x264xf32>
    %133 = arith.addf %99, %132 : vector<8x264xf32>
    %c0_22 = arith.constant 0 : index
    %c0_23 = arith.constant 0 : index
    %c0_24 = arith.constant 0 : index
    %c3_25 = arith.constant 3 : index
    %134 = vector.load %arg1[%c0_22, %c0_23, %c0_24, %c3_25] : memref<1x1x8x279xf32, #tpu.memory_space<vmem>>, vector<1x1x8x264xf32>
    %135 = vector.shape_cast %134 : vector<1x1x8x264xf32> to vector<8x264xf32>
    %c3_26 = arith.constant 3 : index
    %136 = memref.load %arg2[%c3_26] : memref<128xf32, #tpu.memory_space<smem>>
    %137 = vector.broadcast %136 : f32 to vector<8x264xf32>
    %138 = arith.mulf %137, %135 : vector<8x264xf32>
    %139 = arith.addf %105, %138 : vector<8x264xf32>
    %c19 = arith.constant 19 : index
    %140 = memref.load %arg2[%c19] : memref<128xf32, #tpu.memory_space<smem>>
    %141 = vector.broadcast %140 : f32 to vector<8x264xf32>
    %142 = arith.mulf %141, %135 : vector<8x264xf32>
    %143 = arith.addf %109, %142 : vector<8x264xf32>
    %c35 = arith.constant 35 : index
    %144 = memref.load %arg2[%c35] : memref<128xf32, #tpu.memory_space<smem>>
    %145 = vector.broadcast %144 : f32 to vector<8x264xf32>
    %146 = arith.mulf %145, %135 : vector<8x264xf32>
    %147 = arith.addf %113, %146 : vector<8x264xf32>
    %c51 = arith.constant 51 : index
    %148 = memref.load %arg2[%c51] : memref<128xf32, #tpu.memory_space<smem>>
    %149 = vector.broadcast %148 : f32 to vector<8x264xf32>
    %150 = arith.mulf %149, %135 : vector<8x264xf32>
    %151 = arith.addf %117, %150 : vector<8x264xf32>
    %c67 = arith.constant 67 : index
    %152 = memref.load %arg2[%c67] : memref<128xf32, #tpu.memory_space<smem>>
    %153 = vector.broadcast %152 : f32 to vector<8x264xf32>
    %154 = arith.mulf %153, %135 : vector<8x264xf32>
    %155 = arith.addf %121, %154 : vector<8x264xf32>
    %c83 = arith.constant 83 : index
    %156 = memref.load %arg2[%c83] : memref<128xf32, #tpu.memory_space<smem>>
    %157 = vector.broadcast %156 : f32 to vector<8x264xf32>
    %158 = arith.mulf %157, %135 : vector<8x264xf32>
    %159 = arith.addf %125, %158 : vector<8x264xf32>
    %c99 = arith.constant 99 : index
    %160 = memref.load %arg2[%c99] : memref<128xf32, #tpu.memory_space<smem>>
    %161 = vector.broadcast %160 : f32 to vector<8x264xf32>
    %162 = arith.mulf %161, %135 : vector<8x264xf32>
    %163 = arith.addf %129, %162 : vector<8x264xf32>
    %c115 = arith.constant 115 : index
    %164 = memref.load %arg2[%c115] : memref<128xf32, #tpu.memory_space<smem>>
    %165 = vector.broadcast %164 : f32 to vector<8x264xf32>
    %166 = arith.mulf %165, %135 : vector<8x264xf32>
    %167 = arith.addf %133, %166 : vector<8x264xf32>
    %c0_27 = arith.constant 0 : index
    %c0_28 = arith.constant 0 : index
    %c0_29 = arith.constant 0 : index
    %c4_30 = arith.constant 4 : index
    %168 = vector.load %arg1[%c0_27, %c0_28, %c0_29, %c4_30] : memref<1x1x8x279xf32, #tpu.memory_space<vmem>>, vector<1x1x8x264xf32>
    %169 = vector.shape_cast %168 : vector<1x1x8x264xf32> to vector<8x264xf32>
    %c4_31 = arith.constant 4 : index
    %170 = memref.load %arg2[%c4_31] : memref<128xf32, #tpu.memory_space<smem>>
    %171 = vector.broadcast %170 : f32 to vector<8x264xf32>
    %172 = arith.mulf %171, %169 : vector<8x264xf32>
    %173 = arith.addf %139, %172 : vector<8x264xf32>
    %c20 = arith.constant 20 : index
    %174 = memref.load %arg2[%c20] : memref<128xf32, #tpu.memory_space<smem>>
    %175 = vector.broadcast %174 : f32 to vector<8x264xf32>
    %176 = arith.mulf %175, %169 : vector<8x264xf32>
    %177 = arith.addf %143, %176 : vector<8x264xf32>
    %c36 = arith.constant 36 : index
    %178 = memref.load %arg2[%c36] : memref<128xf32, #tpu.memory_space<smem>>
    %179 = vector.broadcast %178 : f32 to vector<8x264xf32>
    %180 = arith.mulf %179, %169 : vector<8x264xf32>
    %181 = arith.addf %147, %180 : vector<8x264xf32>
    %c52 = arith.constant 52 : index
    %182 = memref.load %arg2[%c52] : memref<128xf32, #tpu.memory_space<smem>>
    %183 = vector.broadcast %182 : f32 to vector<8x264xf32>
    %184 = arith.mulf %183, %169 : vector<8x264xf32>
    %185 = arith.addf %151, %184 : vector<8x264xf32>
    %c68 = arith.constant 68 : index
    %186 = memref.load %arg2[%c68] : memref<128xf32, #tpu.memory_space<smem>>
    %187 = vector.broadcast %186 : f32 to vector<8x264xf32>
    %188 = arith.mulf %187, %169 : vector<8x264xf32>
    %189 = arith.addf %155, %188 : vector<8x264xf32>
    %c84 = arith.constant 84 : index
    %190 = memref.load %arg2[%c84] : memref<128xf32, #tpu.memory_space<smem>>
    %191 = vector.broadcast %190 : f32 to vector<8x264xf32>
    %192 = arith.mulf %191, %169 : vector<8x264xf32>
    %193 = arith.addf %159, %192 : vector<8x264xf32>
    %c100 = arith.constant 100 : index
    %194 = memref.load %arg2[%c100] : memref<128xf32, #tpu.memory_space<smem>>
    %195 = vector.broadcast %194 : f32 to vector<8x264xf32>
    %196 = arith.mulf %195, %169 : vector<8x264xf32>
    %197 = arith.addf %163, %196 : vector<8x264xf32>
    %c116 = arith.constant 116 : index
    %198 = memref.load %arg2[%c116] : memref<128xf32, #tpu.memory_space<smem>>
    %199 = vector.broadcast %198 : f32 to vector<8x264xf32>
    %200 = arith.mulf %199, %169 : vector<8x264xf32>
    %201 = arith.addf %167, %200 : vector<8x264xf32>
    %c0_32 = arith.constant 0 : index
    %c0_33 = arith.constant 0 : index
    %c0_34 = arith.constant 0 : index
    %c5_35 = arith.constant 5 : index
    %202 = vector.load %arg1[%c0_32, %c0_33, %c0_34, %c5_35] : memref<1x1x8x279xf32, #tpu.memory_space<vmem>>, vector<1x1x8x264xf32>
    %203 = vector.shape_cast %202 : vector<1x1x8x264xf32> to vector<8x264xf32>
    %c5_36 = arith.constant 5 : index
    %204 = memref.load %arg2[%c5_36] : memref<128xf32, #tpu.memory_space<smem>>
    %205 = vector.broadcast %204 : f32 to vector<8x264xf32>
    %206 = arith.mulf %205, %203 : vector<8x264xf32>
    %207 = arith.addf %173, %206 : vector<8x264xf32>
    %c21 = arith.constant 21 : index
    %208 = memref.load %arg2[%c21] : memref<128xf32, #tpu.memory_space<smem>>
    %209 = vector.broadcast %208 : f32 to vector<8x264xf32>
    %210 = arith.mulf %209, %203 : vector<8x264xf32>
    %211 = arith.addf %177, %210 : vector<8x264xf32>
    %c37 = arith.constant 37 : index
    %212 = memref.load %arg2[%c37] : memref<128xf32, #tpu.memory_space<smem>>
    %213 = vector.broadcast %212 : f32 to vector<8x264xf32>
    %214 = arith.mulf %213, %203 : vector<8x264xf32>
    %215 = arith.addf %181, %214 : vector<8x264xf32>
    %c53 = arith.constant 53 : index
    %216 = memref.load %arg2[%c53] : memref<128xf32, #tpu.memory_space<smem>>
    %217 = vector.broadcast %216 : f32 to vector<8x264xf32>
    %218 = arith.mulf %217, %203 : vector<8x264xf32>
    %219 = arith.addf %185, %218 : vector<8x264xf32>
    %c69 = arith.constant 69 : index
    %220 = memref.load %arg2[%c69] : memref<128xf32, #tpu.memory_space<smem>>
    %221 = vector.broadcast %220 : f32 to vector<8x264xf32>
    %222 = arith.mulf %221, %203 : vector<8x264xf32>
    %223 = arith.addf %189, %222 : vector<8x264xf32>
    %c85 = arith.constant 85 : index
    %224 = memref.load %arg2[%c85] : memref<128xf32, #tpu.memory_space<smem>>
    %225 = vector.broadcast %224 : f32 to vector<8x264xf32>
    %226 = arith.mulf %225, %203 : vector<8x264xf32>
    %227 = arith.addf %193, %226 : vector<8x264xf32>
    %c101 = arith.constant 101 : index
    %228 = memref.load %arg2[%c101] : memref<128xf32, #tpu.memory_space<smem>>
    %229 = vector.broadcast %228 : f32 to vector<8x264xf32>
    %230 = arith.mulf %229, %203 : vector<8x264xf32>
    %231 = arith.addf %197, %230 : vector<8x264xf32>
    %c117 = arith.constant 117 : index
    %232 = memref.load %arg2[%c117] : memref<128xf32, #tpu.memory_space<smem>>
    %233 = vector.broadcast %232 : f32 to vector<8x264xf32>
    %234 = arith.mulf %233, %203 : vector<8x264xf32>
    %235 = arith.addf %201, %234 : vector<8x264xf32>
    %c0_37 = arith.constant 0 : index
    %c0_38 = arith.constant 0 : index
    %c0_39 = arith.constant 0 : index
    %c6_40 = arith.constant 6 : index
    %236 = vector.load %arg1[%c0_37, %c0_38, %c0_39, %c6_40] : memref<1x1x8x279xf32, #tpu.memory_space<vmem>>, vector<1x1x8x264xf32>
    %237 = vector.shape_cast %236 : vector<1x1x8x264xf32> to vector<8x264xf32>
    %c6_41 = arith.constant 6 : index
    %238 = memref.load %arg2[%c6_41] : memref<128xf32, #tpu.memory_space<smem>>
    %239 = vector.broadcast %238 : f32 to vector<8x264xf32>
    %240 = arith.mulf %239, %237 : vector<8x264xf32>
    %241 = arith.addf %207, %240 : vector<8x264xf32>
    %c22 = arith.constant 22 : index
    %242 = memref.load %arg2[%c22] : memref<128xf32, #tpu.memory_space<smem>>
    %243 = vector.broadcast %242 : f32 to vector<8x264xf32>
    %244 = arith.mulf %243, %237 : vector<8x264xf32>
    %245 = arith.addf %211, %244 : vector<8x264xf32>
    %c38 = arith.constant 38 : index
    %246 = memref.load %arg2[%c38] : memref<128xf32, #tpu.memory_space<smem>>
    %247 = vector.broadcast %246 : f32 to vector<8x264xf32>
    %248 = arith.mulf %247, %237 : vector<8x264xf32>
    %249 = arith.addf %215, %248 : vector<8x264xf32>
    %c54 = arith.constant 54 : index
    %250 = memref.load %arg2[%c54] : memref<128xf32, #tpu.memory_space<smem>>
    %251 = vector.broadcast %250 : f32 to vector<8x264xf32>
    %252 = arith.mulf %251, %237 : vector<8x264xf32>
    %253 = arith.addf %219, %252 : vector<8x264xf32>
    %c70 = arith.constant 70 : index
    %254 = memref.load %arg2[%c70] : memref<128xf32, #tpu.memory_space<smem>>
    %255 = vector.broadcast %254 : f32 to vector<8x264xf32>
    %256 = arith.mulf %255, %237 : vector<8x264xf32>
    %257 = arith.addf %223, %256 : vector<8x264xf32>
    %c86 = arith.constant 86 : index
    %258 = memref.load %arg2[%c86] : memref<128xf32, #tpu.memory_space<smem>>
    %259 = vector.broadcast %258 : f32 to vector<8x264xf32>
    %260 = arith.mulf %259, %237 : vector<8x264xf32>
    %261 = arith.addf %227, %260 : vector<8x264xf32>
    %c102 = arith.constant 102 : index
    %262 = memref.load %arg2[%c102] : memref<128xf32, #tpu.memory_space<smem>>
    %263 = vector.broadcast %262 : f32 to vector<8x264xf32>
    %264 = arith.mulf %263, %237 : vector<8x264xf32>
    %265 = arith.addf %231, %264 : vector<8x264xf32>
    %c118 = arith.constant 118 : index
    %266 = memref.load %arg2[%c118] : memref<128xf32, #tpu.memory_space<smem>>
    %267 = vector.broadcast %266 : f32 to vector<8x264xf32>
    %268 = arith.mulf %267, %237 : vector<8x264xf32>
    %269 = arith.addf %235, %268 : vector<8x264xf32>
    %c0_42 = arith.constant 0 : index
    %c0_43 = arith.constant 0 : index
    %c0_44 = arith.constant 0 : index
    %c7_45 = arith.constant 7 : index
    %270 = vector.load %arg1[%c0_42, %c0_43, %c0_44, %c7_45] : memref<1x1x8x279xf32, #tpu.memory_space<vmem>>, vector<1x1x8x264xf32>
    %271 = vector.shape_cast %270 : vector<1x1x8x264xf32> to vector<8x264xf32>
    %c7_46 = arith.constant 7 : index
    %272 = memref.load %arg2[%c7_46] : memref<128xf32, #tpu.memory_space<smem>>
    %273 = vector.broadcast %272 : f32 to vector<8x264xf32>
    %274 = arith.mulf %273, %271 : vector<8x264xf32>
    %275 = arith.addf %241, %274 : vector<8x264xf32>
    %c23 = arith.constant 23 : index
    %276 = memref.load %arg2[%c23] : memref<128xf32, #tpu.memory_space<smem>>
    %277 = vector.broadcast %276 : f32 to vector<8x264xf32>
    %278 = arith.mulf %277, %271 : vector<8x264xf32>
    %279 = arith.addf %245, %278 : vector<8x264xf32>
    %c39 = arith.constant 39 : index
    %280 = memref.load %arg2[%c39] : memref<128xf32, #tpu.memory_space<smem>>
    %281 = vector.broadcast %280 : f32 to vector<8x264xf32>
    %282 = arith.mulf %281, %271 : vector<8x264xf32>
    %283 = arith.addf %249, %282 : vector<8x264xf32>
    %c55 = arith.constant 55 : index
    %284 = memref.load %arg2[%c55] : memref<128xf32, #tpu.memory_space<smem>>
    %285 = vector.broadcast %284 : f32 to vector<8x264xf32>
    %286 = arith.mulf %285, %271 : vector<8x264xf32>
    %287 = arith.addf %253, %286 : vector<8x264xf32>
    %c71 = arith.constant 71 : index
    %288 = memref.load %arg2[%c71] : memref<128xf32, #tpu.memory_space<smem>>
    %289 = vector.broadcast %288 : f32 to vector<8x264xf32>
    %290 = arith.mulf %289, %271 : vector<8x264xf32>
    %291 = arith.addf %257, %290 : vector<8x264xf32>
    %c87 = arith.constant 87 : index
    %292 = memref.load %arg2[%c87] : memref<128xf32, #tpu.memory_space<smem>>
    %293 = vector.broadcast %292 : f32 to vector<8x264xf32>
    %294 = arith.mulf %293, %271 : vector<8x264xf32>
    %295 = arith.addf %261, %294 : vector<8x264xf32>
    %c103 = arith.constant 103 : index
    %296 = memref.load %arg2[%c103] : memref<128xf32, #tpu.memory_space<smem>>
    %297 = vector.broadcast %296 : f32 to vector<8x264xf32>
    %298 = arith.mulf %297, %271 : vector<8x264xf32>
    %299 = arith.addf %265, %298 : vector<8x264xf32>
    %c119 = arith.constant 119 : index
    %300 = memref.load %arg2[%c119] : memref<128xf32, #tpu.memory_space<smem>>
    %301 = vector.broadcast %300 : f32 to vector<8x264xf32>
    %302 = arith.mulf %301, %271 : vector<8x264xf32>
    %303 = arith.addf %269, %302 : vector<8x264xf32>
    %c0_47 = arith.constant 0 : index
    %c0_48 = arith.constant 0 : index
    %c0_49 = arith.constant 0 : index
    %c8 = arith.constant 8 : index
    %304 = vector.load %arg1[%c0_47, %c0_48, %c0_49, %c8] : memref<1x1x8x279xf32, #tpu.memory_space<vmem>>, vector<1x1x8x264xf32>
    %305 = vector.shape_cast %304 : vector<1x1x8x264xf32> to vector<8x264xf32>
    %c8_50 = arith.constant 8 : index
    %306 = memref.load %arg2[%c8_50] : memref<128xf32, #tpu.memory_space<smem>>
    %307 = vector.broadcast %306 : f32 to vector<8x264xf32>
    %308 = arith.mulf %307, %305 : vector<8x264xf32>
    %309 = arith.addf %275, %308 : vector<8x264xf32>
    %c24 = arith.constant 24 : index
    %310 = memref.load %arg2[%c24] : memref<128xf32, #tpu.memory_space<smem>>
    %311 = vector.broadcast %310 : f32 to vector<8x264xf32>
    %312 = arith.mulf %311, %305 : vector<8x264xf32>
    %313 = arith.addf %279, %312 : vector<8x264xf32>
    %c40 = arith.constant 40 : index
    %314 = memref.load %arg2[%c40] : memref<128xf32, #tpu.memory_space<smem>>
    %315 = vector.broadcast %314 : f32 to vector<8x264xf32>
    %316 = arith.mulf %315, %305 : vector<8x264xf32>
    %317 = arith.addf %283, %316 : vector<8x264xf32>
    %c56 = arith.constant 56 : index
    %318 = memref.load %arg2[%c56] : memref<128xf32, #tpu.memory_space<smem>>
    %319 = vector.broadcast %318 : f32 to vector<8x264xf32>
    %320 = arith.mulf %319, %305 : vector<8x264xf32>
    %321 = arith.addf %287, %320 : vector<8x264xf32>
    %c72 = arith.constant 72 : index
    %322 = memref.load %arg2[%c72] : memref<128xf32, #tpu.memory_space<smem>>
    %323 = vector.broadcast %322 : f32 to vector<8x264xf32>
    %324 = arith.mulf %323, %305 : vector<8x264xf32>
    %325 = arith.addf %291, %324 : vector<8x264xf32>
    %c88 = arith.constant 88 : index
    %326 = memref.load %arg2[%c88] : memref<128xf32, #tpu.memory_space<smem>>
    %327 = vector.broadcast %326 : f32 to vector<8x264xf32>
    %328 = arith.mulf %327, %305 : vector<8x264xf32>
    %329 = arith.addf %295, %328 : vector<8x264xf32>
    %c104 = arith.constant 104 : index
    %330 = memref.load %arg2[%c104] : memref<128xf32, #tpu.memory_space<smem>>
    %331 = vector.broadcast %330 : f32 to vector<8x264xf32>
    %332 = arith.mulf %331, %305 : vector<8x264xf32>
    %333 = arith.addf %299, %332 : vector<8x264xf32>
    %c120 = arith.constant 120 : index
    %334 = memref.load %arg2[%c120] : memref<128xf32, #tpu.memory_space<smem>>
    %335 = vector.broadcast %334 : f32 to vector<8x264xf32>
    %336 = arith.mulf %335, %305 : vector<8x264xf32>
    %337 = arith.addf %303, %336 : vector<8x264xf32>
    %c0_51 = arith.constant 0 : index
    %c0_52 = arith.constant 0 : index
    %c0_53 = arith.constant 0 : index
    %c9 = arith.constant 9 : index
    %338 = vector.load %arg1[%c0_51, %c0_52, %c0_53, %c9] : memref<1x1x8x279xf32, #tpu.memory_space<vmem>>, vector<1x1x8x264xf32>
    %339 = vector.shape_cast %338 : vector<1x1x8x264xf32> to vector<8x264xf32>
    %c9_54 = arith.constant 9 : index
    %340 = memref.load %arg2[%c9_54] : memref<128xf32, #tpu.memory_space<smem>>
    %341 = vector.broadcast %340 : f32 to vector<8x264xf32>
    %342 = arith.mulf %341, %339 : vector<8x264xf32>
    %343 = arith.addf %309, %342 : vector<8x264xf32>
    %c25 = arith.constant 25 : index
    %344 = memref.load %arg2[%c25] : memref<128xf32, #tpu.memory_space<smem>>
    %345 = vector.broadcast %344 : f32 to vector<8x264xf32>
    %346 = arith.mulf %345, %339 : vector<8x264xf32>
    %347 = arith.addf %313, %346 : vector<8x264xf32>
    %c41 = arith.constant 41 : index
    %348 = memref.load %arg2[%c41] : memref<128xf32, #tpu.memory_space<smem>>
    %349 = vector.broadcast %348 : f32 to vector<8x264xf32>
    %350 = arith.mulf %349, %339 : vector<8x264xf32>
    %351 = arith.addf %317, %350 : vector<8x264xf32>
    %c57 = arith.constant 57 : index
    %352 = memref.load %arg2[%c57] : memref<128xf32, #tpu.memory_space<smem>>
    %353 = vector.broadcast %352 : f32 to vector<8x264xf32>
    %354 = arith.mulf %353, %339 : vector<8x264xf32>
    %355 = arith.addf %321, %354 : vector<8x264xf32>
    %c73 = arith.constant 73 : index
    %356 = memref.load %arg2[%c73] : memref<128xf32, #tpu.memory_space<smem>>
    %357 = vector.broadcast %356 : f32 to vector<8x264xf32>
    %358 = arith.mulf %357, %339 : vector<8x264xf32>
    %359 = arith.addf %325, %358 : vector<8x264xf32>
    %c89 = arith.constant 89 : index
    %360 = memref.load %arg2[%c89] : memref<128xf32, #tpu.memory_space<smem>>
    %361 = vector.broadcast %360 : f32 to vector<8x264xf32>
    %362 = arith.mulf %361, %339 : vector<8x264xf32>
    %363 = arith.addf %329, %362 : vector<8x264xf32>
    %c105 = arith.constant 105 : index
    %364 = memref.load %arg2[%c105] : memref<128xf32, #tpu.memory_space<smem>>
    %365 = vector.broadcast %364 : f32 to vector<8x264xf32>
    %366 = arith.mulf %365, %339 : vector<8x264xf32>
    %367 = arith.addf %333, %366 : vector<8x264xf32>
    %c121 = arith.constant 121 : index
    %368 = memref.load %arg2[%c121] : memref<128xf32, #tpu.memory_space<smem>>
    %369 = vector.broadcast %368 : f32 to vector<8x264xf32>
    %370 = arith.mulf %369, %339 : vector<8x264xf32>
    %371 = arith.addf %337, %370 : vector<8x264xf32>
    %c0_55 = arith.constant 0 : index
    %c0_56 = arith.constant 0 : index
    %c0_57 = arith.constant 0 : index
    %c10 = arith.constant 10 : index
    %372 = vector.load %arg1[%c0_55, %c0_56, %c0_57, %c10] : memref<1x1x8x279xf32, #tpu.memory_space<vmem>>, vector<1x1x8x264xf32>
    %373 = vector.shape_cast %372 : vector<1x1x8x264xf32> to vector<8x264xf32>
    %c10_58 = arith.constant 10 : index
    %374 = memref.load %arg2[%c10_58] : memref<128xf32, #tpu.memory_space<smem>>
    %375 = vector.broadcast %374 : f32 to vector<8x264xf32>
    %376 = arith.mulf %375, %373 : vector<8x264xf32>
    %377 = arith.addf %343, %376 : vector<8x264xf32>
    %c26 = arith.constant 26 : index
    %378 = memref.load %arg2[%c26] : memref<128xf32, #tpu.memory_space<smem>>
    %379 = vector.broadcast %378 : f32 to vector<8x264xf32>
    %380 = arith.mulf %379, %373 : vector<8x264xf32>
    %381 = arith.addf %347, %380 : vector<8x264xf32>
    %c42 = arith.constant 42 : index
    %382 = memref.load %arg2[%c42] : memref<128xf32, #tpu.memory_space<smem>>
    %383 = vector.broadcast %382 : f32 to vector<8x264xf32>
    %384 = arith.mulf %383, %373 : vector<8x264xf32>
    %385 = arith.addf %351, %384 : vector<8x264xf32>
    %c58 = arith.constant 58 : index
    %386 = memref.load %arg2[%c58] : memref<128xf32, #tpu.memory_space<smem>>
    %387 = vector.broadcast %386 : f32 to vector<8x264xf32>
    %388 = arith.mulf %387, %373 : vector<8x264xf32>
    %389 = arith.addf %355, %388 : vector<8x264xf32>
    %c74 = arith.constant 74 : index
    %390 = memref.load %arg2[%c74] : memref<128xf32, #tpu.memory_space<smem>>
    %391 = vector.broadcast %390 : f32 to vector<8x264xf32>
    %392 = arith.mulf %391, %373 : vector<8x264xf32>
    %393 = arith.addf %359, %392 : vector<8x264xf32>
    %c90 = arith.constant 90 : index
    %394 = memref.load %arg2[%c90] : memref<128xf32, #tpu.memory_space<smem>>
    %395 = vector.broadcast %394 : f32 to vector<8x264xf32>
    %396 = arith.mulf %395, %373 : vector<8x264xf32>
    %397 = arith.addf %363, %396 : vector<8x264xf32>
    %c106 = arith.constant 106 : index
    %398 = memref.load %arg2[%c106] : memref<128xf32, #tpu.memory_space<smem>>
    %399 = vector.broadcast %398 : f32 to vector<8x264xf32>
    %400 = arith.mulf %399, %373 : vector<8x264xf32>
    %401 = arith.addf %367, %400 : vector<8x264xf32>
    %c122 = arith.constant 122 : index
    %402 = memref.load %arg2[%c122] : memref<128xf32, #tpu.memory_space<smem>>
    %403 = vector.broadcast %402 : f32 to vector<8x264xf32>
    %404 = arith.mulf %403, %373 : vector<8x264xf32>
    %405 = arith.addf %371, %404 : vector<8x264xf32>
    %c0_59 = arith.constant 0 : index
    %c0_60 = arith.constant 0 : index
    %c0_61 = arith.constant 0 : index
    %c11 = arith.constant 11 : index
    %406 = vector.load %arg1[%c0_59, %c0_60, %c0_61, %c11] : memref<1x1x8x279xf32, #tpu.memory_space<vmem>>, vector<1x1x8x264xf32>
    %407 = vector.shape_cast %406 : vector<1x1x8x264xf32> to vector<8x264xf32>
    %c11_62 = arith.constant 11 : index
    %408 = memref.load %arg2[%c11_62] : memref<128xf32, #tpu.memory_space<smem>>
    %409 = vector.broadcast %408 : f32 to vector<8x264xf32>
    %410 = arith.mulf %409, %407 : vector<8x264xf32>
    %411 = arith.addf %377, %410 : vector<8x264xf32>
    %c27 = arith.constant 27 : index
    %412 = memref.load %arg2[%c27] : memref<128xf32, #tpu.memory_space<smem>>
    %413 = vector.broadcast %412 : f32 to vector<8x264xf32>
    %414 = arith.mulf %413, %407 : vector<8x264xf32>
    %415 = arith.addf %381, %414 : vector<8x264xf32>
    %c43 = arith.constant 43 : index
    %416 = memref.load %arg2[%c43] : memref<128xf32, #tpu.memory_space<smem>>
    %417 = vector.broadcast %416 : f32 to vector<8x264xf32>
    %418 = arith.mulf %417, %407 : vector<8x264xf32>
    %419 = arith.addf %385, %418 : vector<8x264xf32>
    %c59 = arith.constant 59 : index
    %420 = memref.load %arg2[%c59] : memref<128xf32, #tpu.memory_space<smem>>
    %421 = vector.broadcast %420 : f32 to vector<8x264xf32>
    %422 = arith.mulf %421, %407 : vector<8x264xf32>
    %423 = arith.addf %389, %422 : vector<8x264xf32>
    %c75 = arith.constant 75 : index
    %424 = memref.load %arg2[%c75] : memref<128xf32, #tpu.memory_space<smem>>
    %425 = vector.broadcast %424 : f32 to vector<8x264xf32>
    %426 = arith.mulf %425, %407 : vector<8x264xf32>
    %427 = arith.addf %393, %426 : vector<8x264xf32>
    %c91 = arith.constant 91 : index
    %428 = memref.load %arg2[%c91] : memref<128xf32, #tpu.memory_space<smem>>
    %429 = vector.broadcast %428 : f32 to vector<8x264xf32>
    %430 = arith.mulf %429, %407 : vector<8x264xf32>
    %431 = arith.addf %397, %430 : vector<8x264xf32>
    %c107 = arith.constant 107 : index
    %432 = memref.load %arg2[%c107] : memref<128xf32, #tpu.memory_space<smem>>
    %433 = vector.broadcast %432 : f32 to vector<8x264xf32>
    %434 = arith.mulf %433, %407 : vector<8x264xf32>
    %435 = arith.addf %401, %434 : vector<8x264xf32>
    %c123 = arith.constant 123 : index
    %436 = memref.load %arg2[%c123] : memref<128xf32, #tpu.memory_space<smem>>
    %437 = vector.broadcast %436 : f32 to vector<8x264xf32>
    %438 = arith.mulf %437, %407 : vector<8x264xf32>
    %439 = arith.addf %405, %438 : vector<8x264xf32>
    %c0_63 = arith.constant 0 : index
    %c0_64 = arith.constant 0 : index
    %c0_65 = arith.constant 0 : index
    %c12 = arith.constant 12 : index
    %440 = vector.load %arg1[%c0_63, %c0_64, %c0_65, %c12] : memref<1x1x8x279xf32, #tpu.memory_space<vmem>>, vector<1x1x8x264xf32>
    %441 = vector.shape_cast %440 : vector<1x1x8x264xf32> to vector<8x264xf32>
    %c12_66 = arith.constant 12 : index
    %442 = memref.load %arg2[%c12_66] : memref<128xf32, #tpu.memory_space<smem>>
    %443 = vector.broadcast %442 : f32 to vector<8x264xf32>
    %444 = arith.mulf %443, %441 : vector<8x264xf32>
    %445 = arith.addf %411, %444 : vector<8x264xf32>
    %c28 = arith.constant 28 : index
    %446 = memref.load %arg2[%c28] : memref<128xf32, #tpu.memory_space<smem>>
    %447 = vector.broadcast %446 : f32 to vector<8x264xf32>
    %448 = arith.mulf %447, %441 : vector<8x264xf32>
    %449 = arith.addf %415, %448 : vector<8x264xf32>
    %c44 = arith.constant 44 : index
    %450 = memref.load %arg2[%c44] : memref<128xf32, #tpu.memory_space<smem>>
    %451 = vector.broadcast %450 : f32 to vector<8x264xf32>
    %452 = arith.mulf %451, %441 : vector<8x264xf32>
    %453 = arith.addf %419, %452 : vector<8x264xf32>
    %c60 = arith.constant 60 : index
    %454 = memref.load %arg2[%c60] : memref<128xf32, #tpu.memory_space<smem>>
    %455 = vector.broadcast %454 : f32 to vector<8x264xf32>
    %456 = arith.mulf %455, %441 : vector<8x264xf32>
    %457 = arith.addf %423, %456 : vector<8x264xf32>
    %c76 = arith.constant 76 : index
    %458 = memref.load %arg2[%c76] : memref<128xf32, #tpu.memory_space<smem>>
    %459 = vector.broadcast %458 : f32 to vector<8x264xf32>
    %460 = arith.mulf %459, %441 : vector<8x264xf32>
    %461 = arith.addf %427, %460 : vector<8x264xf32>
    %c92 = arith.constant 92 : index
    %462 = memref.load %arg2[%c92] : memref<128xf32, #tpu.memory_space<smem>>
    %463 = vector.broadcast %462 : f32 to vector<8x264xf32>
    %464 = arith.mulf %463, %441 : vector<8x264xf32>
    %465 = arith.addf %431, %464 : vector<8x264xf32>
    %c108 = arith.constant 108 : index
    %466 = memref.load %arg2[%c108] : memref<128xf32, #tpu.memory_space<smem>>
    %467 = vector.broadcast %466 : f32 to vector<8x264xf32>
    %468 = arith.mulf %467, %441 : vector<8x264xf32>
    %469 = arith.addf %435, %468 : vector<8x264xf32>
    %c124 = arith.constant 124 : index
    %470 = memref.load %arg2[%c124] : memref<128xf32, #tpu.memory_space<smem>>
    %471 = vector.broadcast %470 : f32 to vector<8x264xf32>
    %472 = arith.mulf %471, %441 : vector<8x264xf32>
    %473 = arith.addf %439, %472 : vector<8x264xf32>
    %c0_67 = arith.constant 0 : index
    %c0_68 = arith.constant 0 : index
    %c0_69 = arith.constant 0 : index
    %c13 = arith.constant 13 : index
    %474 = vector.load %arg1[%c0_67, %c0_68, %c0_69, %c13] : memref<1x1x8x279xf32, #tpu.memory_space<vmem>>, vector<1x1x8x264xf32>
    %475 = vector.shape_cast %474 : vector<1x1x8x264xf32> to vector<8x264xf32>
    %c13_70 = arith.constant 13 : index
    %476 = memref.load %arg2[%c13_70] : memref<128xf32, #tpu.memory_space<smem>>
    %477 = vector.broadcast %476 : f32 to vector<8x264xf32>
    %478 = arith.mulf %477, %475 : vector<8x264xf32>
    %479 = arith.addf %445, %478 : vector<8x264xf32>
    %c29 = arith.constant 29 : index
    %480 = memref.load %arg2[%c29] : memref<128xf32, #tpu.memory_space<smem>>
    %481 = vector.broadcast %480 : f32 to vector<8x264xf32>
    %482 = arith.mulf %481, %475 : vector<8x264xf32>
    %483 = arith.addf %449, %482 : vector<8x264xf32>
    %c45 = arith.constant 45 : index
    %484 = memref.load %arg2[%c45] : memref<128xf32, #tpu.memory_space<smem>>
    %485 = vector.broadcast %484 : f32 to vector<8x264xf32>
    %486 = arith.mulf %485, %475 : vector<8x264xf32>
    %487 = arith.addf %453, %486 : vector<8x264xf32>
    %c61 = arith.constant 61 : index
    %488 = memref.load %arg2[%c61] : memref<128xf32, #tpu.memory_space<smem>>
    %489 = vector.broadcast %488 : f32 to vector<8x264xf32>
    %490 = arith.mulf %489, %475 : vector<8x264xf32>
    %491 = arith.addf %457, %490 : vector<8x264xf32>
    %c77 = arith.constant 77 : index
    %492 = memref.load %arg2[%c77] : memref<128xf32, #tpu.memory_space<smem>>
    %493 = vector.broadcast %492 : f32 to vector<8x264xf32>
    %494 = arith.mulf %493, %475 : vector<8x264xf32>
    %495 = arith.addf %461, %494 : vector<8x264xf32>
    %c93 = arith.constant 93 : index
    %496 = memref.load %arg2[%c93] : memref<128xf32, #tpu.memory_space<smem>>
    %497 = vector.broadcast %496 : f32 to vector<8x264xf32>
    %498 = arith.mulf %497, %475 : vector<8x264xf32>
    %499 = arith.addf %465, %498 : vector<8x264xf32>
    %c109 = arith.constant 109 : index
    %500 = memref.load %arg2[%c109] : memref<128xf32, #tpu.memory_space<smem>>
    %501 = vector.broadcast %500 : f32 to vector<8x264xf32>
    %502 = arith.mulf %501, %475 : vector<8x264xf32>
    %503 = arith.addf %469, %502 : vector<8x264xf32>
    %c125 = arith.constant 125 : index
    %504 = memref.load %arg2[%c125] : memref<128xf32, #tpu.memory_space<smem>>
    %505 = vector.broadcast %504 : f32 to vector<8x264xf32>
    %506 = arith.mulf %505, %475 : vector<8x264xf32>
    %507 = arith.addf %473, %506 : vector<8x264xf32>
    %c0_71 = arith.constant 0 : index
    %c0_72 = arith.constant 0 : index
    %c0_73 = arith.constant 0 : index
    %c14 = arith.constant 14 : index
    %508 = vector.load %arg1[%c0_71, %c0_72, %c0_73, %c14] : memref<1x1x8x279xf32, #tpu.memory_space<vmem>>, vector<1x1x8x264xf32>
    %509 = vector.shape_cast %508 : vector<1x1x8x264xf32> to vector<8x264xf32>
    %c14_74 = arith.constant 14 : index
    %510 = memref.load %arg2[%c14_74] : memref<128xf32, #tpu.memory_space<smem>>
    %511 = vector.broadcast %510 : f32 to vector<8x264xf32>
    %512 = arith.mulf %511, %509 : vector<8x264xf32>
    %513 = arith.addf %479, %512 : vector<8x264xf32>
    %c30 = arith.constant 30 : index
    %514 = memref.load %arg2[%c30] : memref<128xf32, #tpu.memory_space<smem>>
    %515 = vector.broadcast %514 : f32 to vector<8x264xf32>
    %516 = arith.mulf %515, %509 : vector<8x264xf32>
    %517 = arith.addf %483, %516 : vector<8x264xf32>
    %c46 = arith.constant 46 : index
    %518 = memref.load %arg2[%c46] : memref<128xf32, #tpu.memory_space<smem>>
    %519 = vector.broadcast %518 : f32 to vector<8x264xf32>
    %520 = arith.mulf %519, %509 : vector<8x264xf32>
    %521 = arith.addf %487, %520 : vector<8x264xf32>
    %c62 = arith.constant 62 : index
    %522 = memref.load %arg2[%c62] : memref<128xf32, #tpu.memory_space<smem>>
    %523 = vector.broadcast %522 : f32 to vector<8x264xf32>
    %524 = arith.mulf %523, %509 : vector<8x264xf32>
    %525 = arith.addf %491, %524 : vector<8x264xf32>
    %c78 = arith.constant 78 : index
    %526 = memref.load %arg2[%c78] : memref<128xf32, #tpu.memory_space<smem>>
    %527 = vector.broadcast %526 : f32 to vector<8x264xf32>
    %528 = arith.mulf %527, %509 : vector<8x264xf32>
    %529 = arith.addf %495, %528 : vector<8x264xf32>
    %c94 = arith.constant 94 : index
    %530 = memref.load %arg2[%c94] : memref<128xf32, #tpu.memory_space<smem>>
    %531 = vector.broadcast %530 : f32 to vector<8x264xf32>
    %532 = arith.mulf %531, %509 : vector<8x264xf32>
    %533 = arith.addf %499, %532 : vector<8x264xf32>
    %c110 = arith.constant 110 : index
    %534 = memref.load %arg2[%c110] : memref<128xf32, #tpu.memory_space<smem>>
    %535 = vector.broadcast %534 : f32 to vector<8x264xf32>
    %536 = arith.mulf %535, %509 : vector<8x264xf32>
    %537 = arith.addf %503, %536 : vector<8x264xf32>
    %c126 = arith.constant 126 : index
    %538 = memref.load %arg2[%c126] : memref<128xf32, #tpu.memory_space<smem>>
    %539 = vector.broadcast %538 : f32 to vector<8x264xf32>
    %540 = arith.mulf %539, %509 : vector<8x264xf32>
    %541 = arith.addf %507, %540 : vector<8x264xf32>
    %c0_75 = arith.constant 0 : index
    %c0_76 = arith.constant 0 : index
    %c0_77 = arith.constant 0 : index
    %c15 = arith.constant 15 : index
    %542 = vector.load %arg1[%c0_75, %c0_76, %c0_77, %c15] : memref<1x1x8x279xf32, #tpu.memory_space<vmem>>, vector<1x1x8x264xf32>
    %543 = vector.shape_cast %542 : vector<1x1x8x264xf32> to vector<8x264xf32>
    %c15_78 = arith.constant 15 : index
    %544 = memref.load %arg2[%c15_78] : memref<128xf32, #tpu.memory_space<smem>>
    %545 = vector.broadcast %544 : f32 to vector<8x264xf32>
    %546 = arith.mulf %545, %543 : vector<8x264xf32>
    %547 = arith.addf %513, %546 : vector<8x264xf32>
    %c31 = arith.constant 31 : index
    %548 = memref.load %arg2[%c31] : memref<128xf32, #tpu.memory_space<smem>>
    %549 = vector.broadcast %548 : f32 to vector<8x264xf32>
    %550 = arith.mulf %549, %543 : vector<8x264xf32>
    %551 = arith.addf %517, %550 : vector<8x264xf32>
    %c47 = arith.constant 47 : index
    %552 = memref.load %arg2[%c47] : memref<128xf32, #tpu.memory_space<smem>>
    %553 = vector.broadcast %552 : f32 to vector<8x264xf32>
    %554 = arith.mulf %553, %543 : vector<8x264xf32>
    %555 = arith.addf %521, %554 : vector<8x264xf32>
    %c63 = arith.constant 63 : index
    %556 = memref.load %arg2[%c63] : memref<128xf32, #tpu.memory_space<smem>>
    %557 = vector.broadcast %556 : f32 to vector<8x264xf32>
    %558 = arith.mulf %557, %543 : vector<8x264xf32>
    %559 = arith.addf %525, %558 : vector<8x264xf32>
    %c79 = arith.constant 79 : index
    %560 = memref.load %arg2[%c79] : memref<128xf32, #tpu.memory_space<smem>>
    %561 = vector.broadcast %560 : f32 to vector<8x264xf32>
    %562 = arith.mulf %561, %543 : vector<8x264xf32>
    %563 = arith.addf %529, %562 : vector<8x264xf32>
    %c95 = arith.constant 95 : index
    %564 = memref.load %arg2[%c95] : memref<128xf32, #tpu.memory_space<smem>>
    %565 = vector.broadcast %564 : f32 to vector<8x264xf32>
    %566 = arith.mulf %565, %543 : vector<8x264xf32>
    %567 = arith.addf %533, %566 : vector<8x264xf32>
    %c111 = arith.constant 111 : index
    %568 = memref.load %arg2[%c111] : memref<128xf32, #tpu.memory_space<smem>>
    %569 = vector.broadcast %568 : f32 to vector<8x264xf32>
    %570 = arith.mulf %569, %543 : vector<8x264xf32>
    %571 = arith.addf %537, %570 : vector<8x264xf32>
    %c127 = arith.constant 127 : index
    %572 = memref.load %arg2[%c127] : memref<128xf32, #tpu.memory_space<smem>>
    %573 = vector.broadcast %572 : f32 to vector<8x264xf32>
    %574 = arith.mulf %573, %543 : vector<8x264xf32>
    %575 = arith.addf %541, %574 : vector<8x264xf32>
    %cst_79 = arith.constant 0.000000e+00 : f32
    %576 = vector.broadcast %cst_79 : f32 to vector<8x264xf32>
    %577 = arith.maximumf %547, %576 : vector<8x264xf32>
    %c0_80 = arith.constant 0 : index
    %c0_81 = arith.constant 0 : index
    %578 = vector.load %arg4[%c0_80, %c0_81] : memref<264x16xf32, #tpu.memory_space<vmem>>, vector<264x16xf32>
    %cst_82 = arith.constant dense<0.000000e+00> : vector<8x16xf32>
    %579 = tpu.matmul %577, %578, %cst_82 {dimension_numbers = #tpu.dot_dimension_numbers<[1], [0], [0], [1], [0, 0, 1, 1], [], []>} : vector<8x264xf32>, vector<264x16xf32>, vector<8x16xf32> -> vector<8x16xf32>
    %c0_83 = arith.constant 0 : index
    %c0_84 = arith.constant 0 : index
    %c0_85 = arith.constant 0 : index
    %c0_86 = arith.constant 0 : index
    %580 = vector.load %arg5[%c0_83, %c0_84, %c0_85, %c0_86] : memref<1x8x8x16xf32, #tpu.memory_space<vmem>>, vector<1x1x8x16xf32>
    %581 = vector.shape_cast %580 : vector<1x1x8x16xf32> to vector<8x16xf32>
    %582 = vector.shape_cast %579 : vector<8x16xf32> to vector<1x1x8x16xf32>
    tpu.vector_store %arg5[%c0_83, %c0_84, %c0_85, %c0_86], %582 {strides = array<i32>} : memref<1x8x8x16xf32, #tpu.memory_space<vmem>>, vector<1x1x8x16xf32>,
    %cst_87 = arith.constant 0.000000e+00 : f32
    %583 = vector.broadcast %cst_87 : f32 to vector<8x264xf32>
    %584 = arith.maximumf %551, %583 : vector<8x264xf32>
    %c0_88 = arith.constant 0 : index
    %c0_89 = arith.constant 0 : index
    %585 = vector.load %arg4[%c0_88, %c0_89] : memref<264x16xf32, #tpu.memory_space<vmem>>, vector<264x16xf32>
    %cst_90 = arith.constant dense<0.000000e+00> : vector<8x16xf32>
    %586 = tpu.matmul %584, %585, %cst_90 {dimension_numbers = #tpu.dot_dimension_numbers<[1], [0], [0], [1], [0, 0, 1, 1], [], []>} : vector<8x264xf32>, vector<264x16xf32>, vector<8x16xf32> -> vector<8x16xf32>
    %c0_91 = arith.constant 0 : index
    %c1_92 = arith.constant 1 : index
    %c0_93 = arith.constant 0 : index
    %c0_94 = arith.constant 0 : index
    %587 = vector.load %arg5[%c0_91, %c1_92, %c0_93, %c0_94] : memref<1x8x8x16xf32, #tpu.memory_space<vmem>>, vector<1x1x8x16xf32>
    %588 = vector.shape_cast %587 : vector<1x1x8x16xf32> to vector<8x16xf32>
    %589 = vector.shape_cast %586 : vector<8x16xf32> to vector<1x1x8x16xf32>
    tpu.vector_store %arg5[%c0_91, %c1_92, %c0_93, %c0_94], %589 {strides = array<i32>} : memref<1x8x8x16xf32, #tpu.memory_space<vmem>>, vector<1x1x8x16xf32>,
    %cst_95 = arith.constant 0.000000e+00 : f32
    %590 = vector.broadcast %cst_95 : f32 to vector<8x264xf32>
    %591 = arith.maximumf %555, %590 : vector<8x264xf32>
    %c0_96 = arith.constant 0 : index
    %c0_97 = arith.constant 0 : index
    %592 = vector.load %arg4[%c0_96, %c0_97] : memref<264x16xf32, #tpu.memory_space<vmem>>, vector<264x16xf32>
    %cst_98 = arith.constant dense<0.000000e+00> : vector<8x16xf32>
    %593 = tpu.matmul %591, %592, %cst_98 {dimension_numbers = #tpu.dot_dimension_numbers<[1], [0], [0], [1], [0, 0, 1, 1], [], []>} : vector<8x264xf32>, vector<264x16xf32>, vector<8x16xf32> -> vector<8x16xf32>
    %c0_99 = arith.constant 0 : index
    %c2_100 = arith.constant 2 : index
    %c0_101 = arith.constant 0 : index
    %c0_102 = arith.constant 0 : index
    %594 = vector.load %arg5[%c0_99, %c2_100, %c0_101, %c0_102] : memref<1x8x8x16xf32, #tpu.memory_space<vmem>>, vector<1x1x8x16xf32>
    %595 = vector.shape_cast %594 : vector<1x1x8x16xf32> to vector<8x16xf32>
    %596 = vector.shape_cast %593 : vector<8x16xf32> to vector<1x1x8x16xf32>
    tpu.vector_store %arg5[%c0_99, %c2_100, %c0_101, %c0_102], %596 {strides = array<i32>} : memref<1x8x8x16xf32, #tpu.memory_space<vmem>>, vector<1x1x8x16xf32>,
    %cst_103 = arith.constant 0.000000e+00 : f32
    %597 = vector.broadcast %cst_103 : f32 to vector<8x264xf32>
    %598 = arith.maximumf %559, %597 : vector<8x264xf32>
    %c0_104 = arith.constant 0 : index
    %c0_105 = arith.constant 0 : index
    %599 = vector.load %arg4[%c0_104, %c0_105] : memref<264x16xf32, #tpu.memory_space<vmem>>, vector<264x16xf32>
    %cst_106 = arith.constant dense<0.000000e+00> : vector<8x16xf32>
    %600 = tpu.matmul %598, %599, %cst_106 {dimension_numbers = #tpu.dot_dimension_numbers<[1], [0], [0], [1], [0, 0, 1, 1], [], []>} : vector<8x264xf32>, vector<264x16xf32>, vector<8x16xf32> -> vector<8x16xf32>
    %c0_107 = arith.constant 0 : index
    %c3_108 = arith.constant 3 : index
    %c0_109 = arith.constant 0 : index
    %c0_110 = arith.constant 0 : index
    %601 = vector.load %arg5[%c0_107, %c3_108, %c0_109, %c0_110] : memref<1x8x8x16xf32, #tpu.memory_space<vmem>>, vector<1x1x8x16xf32>
    %602 = vector.shape_cast %601 : vector<1x1x8x16xf32> to vector<8x16xf32>
    %603 = vector.shape_cast %600 : vector<8x16xf32> to vector<1x1x8x16xf32>
    tpu.vector_store %arg5[%c0_107, %c3_108, %c0_109, %c0_110], %603 {strides = array<i32>} : memref<1x8x8x16xf32, #tpu.memory_space<vmem>>, vector<1x1x8x16xf32>,
    %cst_111 = arith.constant 0.000000e+00 : f32
    %604 = vector.broadcast %cst_111 : f32 to vector<8x264xf32>
    %605 = arith.maximumf %563, %604 : vector<8x264xf32>
    %c0_112 = arith.constant 0 : index
    %c0_113 = arith.constant 0 : index
    %606 = vector.load %arg4[%c0_112, %c0_113] : memref<264x16xf32, #tpu.memory_space<vmem>>, vector<264x16xf32>
    %cst_114 = arith.constant dense<0.000000e+00> : vector<8x16xf32>
    %607 = tpu.matmul %605, %606, %cst_114 {dimension_numbers = #tpu.dot_dimension_numbers<[1], [0], [0], [1], [0, 0, 1, 1], [], []>} : vector<8x264xf32>, vector<264x16xf32>, vector<8x16xf32> -> vector<8x16xf32>
    %c0_115 = arith.constant 0 : index
    %c4_116 = arith.constant 4 : index
    %c0_117 = arith.constant 0 : index
    %c0_118 = arith.constant 0 : index
    %608 = vector.load %arg5[%c0_115, %c4_116, %c0_117, %c0_118] : memref<1x8x8x16xf32, #tpu.memory_space<vmem>>, vector<1x1x8x16xf32>
    %609 = vector.shape_cast %608 : vector<1x1x8x16xf32> to vector<8x16xf32>
    %610 = vector.shape_cast %607 : vector<8x16xf32> to vector<1x1x8x16xf32>
    tpu.vector_store %arg5[%c0_115, %c4_116, %c0_117, %c0_118], %610 {strides = array<i32>} : memref<1x8x8x16xf32, #tpu.memory_space<vmem>>, vector<1x1x8x16xf32>,
    %cst_119 = arith.constant 0.000000e+00 : f32
    %611 = vector.broadcast %cst_119 : f32 to vector<8x264xf32>
    %612 = arith.maximumf %567, %611 : vector<8x264xf32>
    %c0_120 = arith.constant 0 : index
    %c0_121 = arith.constant 0 : index
    %613 = vector.load %arg4[%c0_120, %c0_121] : memref<264x16xf32, #tpu.memory_space<vmem>>, vector<264x16xf32>
    %cst_122 = arith.constant dense<0.000000e+00> : vector<8x16xf32>
    %614 = tpu.matmul %612, %613, %cst_122 {dimension_numbers = #tpu.dot_dimension_numbers<[1], [0], [0], [1], [0, 0, 1, 1], [], []>} : vector<8x264xf32>, vector<264x16xf32>, vector<8x16xf32> -> vector<8x16xf32>
    %c0_123 = arith.constant 0 : index
    %c5_124 = arith.constant 5 : index
    %c0_125 = arith.constant 0 : index
    %c0_126 = arith.constant 0 : index
    %615 = vector.load %arg5[%c0_123, %c5_124, %c0_125, %c0_126] : memref<1x8x8x16xf32, #tpu.memory_space<vmem>>, vector<1x1x8x16xf32>
    %616 = vector.shape_cast %615 : vector<1x1x8x16xf32> to vector<8x16xf32>
    %617 = vector.shape_cast %614 : vector<8x16xf32> to vector<1x1x8x16xf32>
    tpu.vector_store %arg5[%c0_123, %c5_124, %c0_125, %c0_126], %617 {strides = array<i32>} : memref<1x8x8x16xf32, #tpu.memory_space<vmem>>, vector<1x1x8x16xf32>,
    %cst_127 = arith.constant 0.000000e+00 : f32
    %618 = vector.broadcast %cst_127 : f32 to vector<8x264xf32>
    %619 = arith.maximumf %571, %618 : vector<8x264xf32>
    %c0_128 = arith.constant 0 : index
    %c0_129 = arith.constant 0 : index
    %620 = vector.load %arg4[%c0_128, %c0_129] : memref<264x16xf32, #tpu.memory_space<vmem>>, vector<264x16xf32>
    %cst_130 = arith.constant dense<0.000000e+00> : vector<8x16xf32>
    %621 = tpu.matmul %619, %620, %cst_130 {dimension_numbers = #tpu.dot_dimension_numbers<[1], [0], [0], [1], [0, 0, 1, 1], [], []>} : vector<8x264xf32>, vector<264x16xf32>, vector<8x16xf32> -> vector<8x16xf32>
    %c0_131 = arith.constant 0 : index
    %c6_132 = arith.constant 6 : index
    %c0_133 = arith.constant 0 : index
    %c0_134 = arith.constant 0 : index
    %622 = vector.load %arg5[%c0_131, %c6_132, %c0_133, %c0_134] : memref<1x8x8x16xf32, #tpu.memory_space<vmem>>, vector<1x1x8x16xf32>
    %623 = vector.shape_cast %622 : vector<1x1x8x16xf32> to vector<8x16xf32>
    %624 = vector.shape_cast %621 : vector<8x16xf32> to vector<1x1x8x16xf32>
    tpu.vector_store %arg5[%c0_131, %c6_132, %c0_133, %c0_134], %624 {strides = array<i32>} : memref<1x8x8x16xf32, #tpu.memory_space<vmem>>, vector<1x1x8x16xf32>,
    %cst_135 = arith.constant 0.000000e+00 : f32
    %625 = vector.broadcast %cst_135 : f32 to vector<8x264xf32>
    %626 = arith.maximumf %575, %625 : vector<8x264xf32>
    %c0_136 = arith.constant 0 : index
    %c0_137 = arith.constant 0 : index
    %627 = vector.load %arg4[%c0_136, %c0_137] : memref<264x16xf32, #tpu.memory_space<vmem>>, vector<264x16xf32>
    %cst_138 = arith.constant dense<0.000000e+00> : vector<8x16xf32>
    %628 = tpu.matmul %626, %627, %cst_138 {dimension_numbers = #tpu.dot_dimension_numbers<[1], [0], [0], [1], [0, 0, 1, 1], [], []>} : vector<8x264xf32>, vector<264x16xf32>, vector<8x16xf32> -> vector<8x16xf32>
    %c0_139 = arith.constant 0 : index
    %c7_140 = arith.constant 7 : index
    %c0_141 = arith.constant 0 : index
    %c0_142 = arith.constant 0 : index
    %629 = vector.load %arg5[%c0_139, %c7_140, %c0_141, %c0_142] : memref<1x8x8x16xf32, #tpu.memory_space<vmem>>, vector<1x1x8x16xf32>
    %630 = vector.shape_cast %629 : vector<1x1x8x16xf32> to vector<8x16xf32>
    %631 = vector.shape_cast %628 : vector<8x16xf32> to vector<1x1x8x16xf32>
    tpu.vector_store %arg5[%c0_139, %c7_140, %c0_141, %c0_142], %631 {strides = array<i32>} : memref<1x8x8x16xf32, #tpu.memory_space<vmem>>, vector<1x1x8x16xf32>,
    return
  }
  func.func @transform_0(%arg0: i32) -> (i32, i32, i32, i32) {
    %c0_i32 = arith.constant 0 : i32
    %c0_i32_0 = arith.constant 0 : i32
    %c0_i32_1 = arith.constant 0 : i32
    %c0_i32_2 = arith.constant 0 : i32
    return %arg0, %c0_i32, %c0_i32_0, %c0_i32_1 : i32, i32, i32, i32
  }
  func.func @transform_1(%arg0: i32) -> i32 {
    %c0_i32 = arith.constant 0 : i32
    %c0_i32_0 = arith.constant 0 : i32
    return %c0_i32 : i32
  }
  func.func @transform_2(%arg0: i32) -> i32 {
    %c0_i32 = arith.constant 0 : i32
    %c0_i32_0 = arith.constant 0 : i32
    return %c0_i32 : i32
  }
  func.func @transform_3(%arg0: i32) -> (i32, i32) {
    %c0_i32 = arith.constant 0 : i32
    %c0_i32_0 = arith.constant 0 : i32
    %c0_i32_1 = arith.constant 0 : i32
    return %c0_i32, %c0_i32_0 : i32, i32
  }
  func.func @transform_4(%arg0: i32) -> (i32, i32, i32, i32) {
    %c0_i32 = arith.constant 0 : i32
    %c0_i32_0 = arith.constant 0 : i32
    %c0_i32_1 = arith.constant 0 : i32
    %c0_i32_2 = arith.constant 0 : i32
    return %arg0, %c0_i32, %c0_i32_0, %c0_i32_1 : i32, i32, i32, i32
  }
}

</mosaic_0001>

<bundles_post_ra>
// kernel: tpu_custom_call.1
= control target key start
LH: loop header
LB: loop body
LE: loop exit
PB: predicated region body
PF: predicated region fallthrough
CT: control target
= control target key end

     0   :  { %9 = vsyncpa [#allocation4], 0  ;;  %s8629_s0 = inlined_call_operand.vmem [shape: f32[2,1,8,279], index: 0, kind: input, shape index: {}]   ;;  %s8630_s1 = inlined_call_operand.vmem [shape: f32[128], index: 1, kind: input, shape index: {}]   ;;  %s8631_s2 = inlined_call_operand.vmem [shape: f32[8], index: 2, kind: input, shape index: {}]   ;;  %s8632_s3 = inlined_call_operand.vmem [shape: f32[264,16], index: 3, kind: input, shape index: {}]   ;;  %s8633_s4 = inlined_call_operand.hbm [shape: f32[2,8,8,16], index: 4, kind: output, shape index: {}]  }
   0x1   :  { %10 = vsyncpa [#allocation6], 0 }
   0x2   :  { %11 = vsyncpa [#allocation3], 0 }
   0x3   :  { %13 = vsyncpa [#allocation3 + $0x1], 0  ;;  %s5277_s15 = smov 0   ;;  %s5279_s16 = smov 0  }
   0x4   :  { %s5281_s17 = smov 0   ;;  %s5283_s18 = smov 0  }
   0x5 LB: > { %s5298_s19 = sadd.s32 4294967295, %s5228_s18   ;;  %s4516_s20 = sadd.s32 4294967294, %s5228_s18   ;;  %s5228_s18 = sphi %s5283_s18, %s9133_s18   ;;  %s5224_s17 = sphi %s5281_s17, %s9132_s17   ;;  %s5220_s16 = sphi %s5279_s16, %s9131_s16   ;;  %s5216_s15 = sphi %s5277_s15, %s9130_s15  }
   0x6   : > { %s5302_s21 = sadd.s32 1, %s5228_s18   ;;  %s115_s22 = sadd.s32 1, %s5224_s17 }
   0x7   : > { %s112_s23 = ssub.s32 %s5228_s18, %s5302_s21  ;;  %p125_p0 = scmp.ne.s32.totalorder %s5224_s17, %s5220_s16 }
   0x8   : > { %p113_p1 = scmp.eq.s32.totalorder %s112_s23, 0  ;;  %p126_p2 = scmp.eq.s32.totalorder %s5298_s19, 1 }
   0x9   : > { %p131_p3 = scmp.ne.s32.totalorder %s5220_s16, %s5216_s15  ;;  %p132_p4 = scmp.eq.s32.totalorder %s4516_s20, 1 }
   0xa   : > { %s5313_s24 = scalar_select %p113_p1, %s5224_s17, %s115_s22  }
   0xb   : > { %p5315_p5 = por %p126_p2, %p125_p0  ;;  %p5319_p6 = por %p132_p4, %p131_p3 }
   0xc   : > { %p4517_p7 = scmp.ge.s32.totalorder %s5228_s18, 1  ;;  %p139_p8 = scmp.lt.s32.totalorder %s5228_s18, 3 }
   0xd   : > { %s8806_s25 = scalar_select %p5315_p5, 1, 0 }
   0xe   : > { %s8807_s26 = scalar_select %p5319_p6, 1, 0 }
   0xf   : > { %p8634_p9 = scmp.eq.s32.totalorder %s5298_s19, 0  ;;  %p5326_p10 = pnand %p4517_p7, %p139_p8 }
  0x10   : > { %s152_s30 = sshll.u32 %s8630_s1, 4  ;;  %s163_s7 = sshll.u32 %s8631_s2, 4  ;;  %s153_s30 = int_to_ptr.vmem [resolvable:$true] %s152_s30  ;;  %s164_s7 = int_to_ptr.vmem [resolvable:$true] %s163_s7 }
  0x11   : > { %s8808_s27 = scalar_select %p5326_p10, 1, 0 }
  0x12   : > { %p5028_p11 = pneg %p5326_p10  ;;  %s5130_s9 = scalar_lea.vmem %s153_s30, 16 }
  0x13   : > { %p5131_p13 = scmp.ne.s32.totalorder %s153_s30, %s5130_s9  ;;  %p5138_p3 = scmp.lt.s32.totalorder %s153_s30, %s153_s30 }
  0x14   : > { %p5340_p12 = pnand %p8634_p9, %p5028_p11  ;;  %p5139_p4 = scmp.lt.s32.totalorder %s5130_s9, %s5130_s9 }
  0x16   : > { %p5132_p0 = pneg %p5340_p12  ;;  %p5140_p7 = por %p5139_p4, %p5138_p3 }
  0x18   : > { %p5133_p1 = pnand %p5132_p0, %p5131_p13 }
  0x1a   : > { %p5134_p2 = pneg %p5133_p1 }
  0x1c   : > { %p5141_p8 = pnand %p5140_p7, %p5134_p2 }
  0x1e   : > { %5144 = shalt.err (!%p5141_p8)
}
  0x1f   : > { %s5230_s10 = smov [#allocation2]   ;;  %s5145_s11 = scalar_lea.vmem %s164_s7, 16 }
  0x20   : > { %5031 = dma.vmem_to_smem (!%p5340_p12), %s153_s30, 16, %s5230_s10, [#allocation4]  }
  0x21   : > { %p5146_p11 = scmp.ne.s32.totalorder %s164_s7, %s5145_s11  ;;  %p5153_p5 = scmp.lt.s32.totalorder %s164_s7, %s164_s7 }
  0x22   : > { %p5154_p10 = scmp.lt.s32.totalorder %s5145_s11, %s5145_s11 }
  0x23   : > { %p5148_p9 = pnand %p5146_p11, %p5132_p0 }
  0x24   : > { %p5155_p13 = por %p5154_p10, %p5153_p5 }
  0x25   : > { %p5149_p6 = pneg %p5148_p9 }
  0x27   : > { %p5156_p1 = pnand %p5155_p13, %p5149_p6 }
  0x29   : > { %5159 = shalt.err (!%p5156_p1)
}
  0x2a   : > { %s5231_s12 = smov [#allocation5]   ;;  %p8810_p2 = scmp.ne.s32.totalorder %s8808_s27, 0 }
  0x2b   : > { %5034 = dma.vmem_to_smem (!%p5340_p12), %s164_s7, 16, %s5231_s12, [#allocation6]  }
  0x2c   : > { %187 = sbr.rel (%p8810_p2) target bundleno = 1118 (0x45e), region = 36 }
  0x31   : > { %p8811_p3 = scmp.eq.s32.totalorder %s5298_s19, 0 }
  0x33   : > { %5203 = dma.done.wait (%p8811_p3), [#allocation4], 16   ;;  %p8812_p4 = pmov %p8811_p3 }
  0x34   : > { %p8813_p9 = pmov %p8811_p3 }
  0x35   : > { %5205 = vsyncadd (%p8812_p4), [#allocation4], 4294967280 }
  0x36   : > { %5207 = dma.done.wait (%p8813_p9), [#allocation6], 16   ;;  %p8814_p5 = pmov %p8811_p3 }
  0x38   : > { %5209 = vsyncadd (%p8814_p5), [#allocation6], 4294967280 }
  0x39   : > { %197 = sfence }
  0x3a   : > { %p218_p6 = scmp.lt.s32.totalorder %s5298_s19, 1  ;;  %s4540_s13 = sld [smem:[#allocation2 + $0x1]]  ;;  %vm328_vm0 = vcmask 1039360   ;;  %vm505_vm1 = vcmask 1031168   ;;  %vm682_vm2 = vcmask 1022976   ;;  %vm859_vm3 = vcmask 1014784  }
  0x3b   : > { %s4541_s14 = sld [smem:[#allocation2 + $0x11]]  ;;  %s5232_s30 = smov 127   ;;  %vm5244_vm4 = vmmov 0   ;;  %vm1036_vm5 = vcmask 1006592   ;;  %vm1213_vm6 = vcmask 998400   ;;  %vm3005_vm7 = vcmask 64512  }
  0x3c   : > { %s219_s20 = scalar_select %p218_p6, %s5298_s19, 1  ;;  %vm1390_vm8 = vcmask 990208   ;;  %vm1567_vm9 = vcmask 982016   ;;  %vm1744_vm10 = vcmask 973824   ;;  %vm1921_vm11 = vcmask 965632  }
  0x3d   : > { %s4542_s29 = sld [smem:[#allocation2 + $0x21]]  ;;  %vm2098_vm12 = vcmask 957440   ;;  %vm2275_vm13 = vcmask 949248   ;;  %vm2452_vm14 = vcmask 941056   ;;  %vm2629_vm15 = vcmask 932864   ;;  %p9128_p12 = scmp.ne.s32.totalorder %s8806_s25, 0 }
  0x3e   : > { %s5017_s22 = smul.u32 24, %s219_s20  ;;  %s4543_s5 = sld [smem:[#allocation2 + $0x31]] }
  0x3f   : > { %s4544_s6 = sld [smem:[#allocation2 + $0x41]] }
  0x40   : > { %s5365_s28 = scalar_lea.vmem %s8629_s0, %s5017_s22  ;;  %v315_v0 = vstv %s4540_s13  ;;  %s223_s7 = sld [smem:[#allocation5]] }
  0x41   : > { %v5368_v1 = vld [vmem:[%s5365_s28 + $0x10] sm:$0xff]  ;;  %v5371_v2 = vld [vmem:[%s5365_s28] sm:$0xff]  ;;  %v338_v3 = vstv %s4541_s14  ;;  %v5374_v4 = vld [vmem:[%s5365_s28 + $0x8] sm:$0xff]  ;;  %s250_s8 = sld [smem:[#allocation2]] }
  0x42   : > { %v318_v5 = vmul.f32 %v315_v0, %v5368_v1  ;;  %v316_v6 = vmul.f32 %v315_v0, %v5371_v2  ;;  %v339_v7 = vmul.f32 %v338_v3, %v5371_v2  ;;  %v317_v8 = vmul.f32 %v315_v0, %v5374_v4  ;;  %s4545_s9 = sld [smem:[#allocation2 + $0x51]] }
  0x43   : > { %v341_v9 = vmul.f32 %v338_v3, %v5368_v1  ;;  %v340_v10 = vmul.f32 %v338_v3, %v5374_v4  ;;  %v360_v11 = vstv %s4542_s29  ;;  %s4527_s10 = sld [smem:[#allocation5 + $0x2]] }
  0x44   : > { %326 = vrot.lane.b32.xlu1 %v318_v5, %s5232_s30  ;;  %322 = vrot.lane.b32.xlu0 %v316_v6, %s5232_s30  ;;  %v362_v12 = vmul.f32 %v360_v11, %v5374_v4  ;;  %v361_v13 = vmul.f32 %v360_v11, %v5371_v2  ;;  %v382_v14 = vstv %s4543_s5  ;;  %v363_v16 = vmul.f32 %v360_v11, %v5368_v1  ;;  %s4534_s11 = sld [smem:[#allocation2 + $0x20]] }
  0x45   : > { %v383_v15 = vmul.f32 %v382_v14, %v5371_v2  ;;  %v385_v17 = vmul.f32 %v382_v14, %v5368_v1  ;;  %v384_v18 = vmul.f32 %v382_v14, %v5374_v4  ;;  %v404_v19 = vstv %s4544_s6  ;;  %s4546_s12 = sld [smem:[#allocation2 + $0x61]]  ;;  %s5233_s6 = smov 126  }
  0x46   : > { %v406_v23 = vmul.f32 %v404_v19, %v5374_v4  ;;  %v405_v24 = vmul.f32 %v404_v19, %v5371_v2  ;;  %v5408_v25 = vstv %s223_s7  ;;  %s4529_s13 = sld [smem:[#allocation5 + $0x4]]  ;;  %v407_v30 = vmul.f32 %v404_v19, %v5368_v1 }
  0x47   : > { %v5398_v20 = vstv %s250_s8  ;;  %s4536_s14 = sld [smem:[#allocation2 + $0x40]] }
  0x48   : > { %345 = vrot.lane.b32.xlu1 %v339_v7, %s5232_s30  ;;  %324 = vrot.lane.b32.xlu0 %v317_v8, %s5232_s30  ;;  %v253_v21 = vmul.f32 %v5398_v20, %v5374_v4  ;;  %v252_v22 = vmul.f32 %v5398_v20, %v5371_v2  ;;  %v426_v26 = vstv %s4545_s9  ;;  %s4547_s20 = sld [smem:[#allocation2 + $0x71]] }
  0x49   : > { %v427_v29 = vmul.f32 %v426_v26, %v5371_v2  ;;  %v5420_v31 = vstv %s4527_s10  ;;  %v429_v37 = vmul.f32 %v426_v26, %v5368_v1  ;;  %v428_v38 = vmul.f32 %v426_v26, %v5374_v4  ;;  %s4531_s22 = sld [smem:[#allocation5 + $0x6]] }
  0x4a   : > { %v5411_v27 = vadd.f32 %v253_v21, %v5408_v25  ;;  %v5414_v28 = vadd.f32 %v252_v22, %v5408_v25  ;;  %8816 = vst [vmem:[#allocation12_spill] sm:$0xff] %v5420_v31  ;;  %v5422_v32 = vstv %s4534_s11  ;;  %s4538_s23 = sld [smem:[#allocation2 + $0x60]] }
  0x4b   : > { %8817 = vst [vmem:[#allocation13_spill] sm:$0xff] %v5422_v32  ;;  %v268_v33 = vmul.f32 %v5422_v32, %v5371_v2  ;;  %v269_v34 = vmul.f32 %v5422_v32, %v5374_v4  ;;  %v448_v39 = vstv %s4546_s12  ;;  %s4548_s27 = sld [smem:[#allocation2 + $0x2]] }
  0x4c   : > { %349 = vrot.lane.b32.xlu1 %v341_v9, %s5232_s30  ;;  %347 = vrot.lane.b32.xlu0 %v340_v10, %s5232_s30  ;;  %8815 = vst [vmem:[#allocation11_spill] sm:$0xff] %v5414_v28  ;;  %v5438_v40 = vstv %s4529_s13  ;;  %v450_v44 = vmul.f32 %v448_v39, %v5374_v4  ;;  %v449_v45 = vmul.f32 %v448_v39, %v5371_v2  ;;  %s4549_s29 = sld [smem:[#allocation2 + $0x12]] }
  0x4d   : > { %v5429_v35 = vadd.f32 %v268_v33, %v5420_v31  ;;  %v5432_v36 = vadd.f32 %v269_v34, %v5420_v31  ;;  %8818 = vst [vmem:[#allocation14_spill] sm:$0xff] %v5438_v40  ;;  %v5440_v41 = vstv %s4536_s14  ;;  %v451_v50 = vmul.f32 %v448_v39, %v5368_v1  ;;  %s4550_s5 = sld [smem:[#allocation2 + $0x22]]  ;;  %s5234_s14 = smov 125  }
  0x4e   : > { %8819 = vst [vmem:[#allocation15_spill] sm:$0xff] %v5440_v41  ;;  %v284_v42 = vmul.f32 %v5440_v41, %v5371_v2  ;;  %v285_v43 = vmul.f32 %v5440_v41, %v5374_v4  ;;  %v470_v46 = vstv %s4547_s20  ;;  %s4551_s7 = sld [smem:[#allocation2 + $0x32]] }
  0x4f   : > { %v471_v49 = vmul.f32 %v470_v46, %v5371_v2  ;;  %v5460_v51 = vstv %s4531_s22  ;;  %v473_v57 = vmul.f32 %v470_v46, %v5368_v1  ;;  %v472_v58 = vmul.f32 %v470_v46, %v5374_v4  ;;  %s4553_s8 = sld [smem:[#allocation2 + $0x52]] }
  0x50   : > { %369 = vrot.lane.b32.xlu1 %v362_v12, %s5232_s30  ;;  %367 = vrot.lane.b32.xlu0 %v361_v13, %s5232_s30  ;;  %v5451_v47 = vadd.f32 %v284_v42, %v5438_v40  ;;  %v5454_v48 = vadd.f32 %v285_v43, %v5438_v40  ;;  %8820 = vst [vmem:[#allocation16_spill] sm:$0xff] %v5460_v51  ;;  %v5462_v52 = vstv %s4538_s23  ;;  %s4554_s9 = sld [smem:[#allocation2 + $0x62]] }
  0x51   : > { %8821 = vst [vmem:[#allocation17_spill] sm:$0xff] %v5462_v52  ;;  %v300_v53 = vmul.f32 %v5462_v52, %v5371_v2  ;;  %v301_v54 = vmul.f32 %v5462_v52, %v5374_v4  ;;  %v492_v59 = vstv %s4548_s27  ;;  %s4555_s10 = sld [smem:[#allocation2 + $0x72]] }
  0x52   : > { %v494_v60 = vmul.f32 %v492_v59, %v5374_v4  ;;  %v493_v61 = vmul.f32 %v492_v59, %v5371_v2  ;;  %v515_v62 = vstv %s4549_s29  ;;  %v495_v0 = vmul.f32 %v492_v59, %v5368_v1  ;;  %s4556_s11 = sld [smem:[#allocation2 + $0x3]] }
  0x53   : > { %v5469_v55 = vadd.f32 %v300_v53, %v5460_v51  ;;  %v5472_v56 = vadd.f32 %v301_v54, %v5460_v51  ;;  %v516_v63 = vmul.f32 %v515_v62, %v5371_v2  ;;  %v518_v3 = vmul.f32 %v515_v62, %v5368_v1  ;;  %s4557_s12 = sld [smem:[#allocation2 + $0x13]] }
  0x54   : > { %389 = vrot.lane.b32.xlu1 %v383_v15, %s5232_s30  ;;  %371 = vrot.lane.b32.xlu0 %v363_v16, %s5232_s30  ;;  %v517_v5 = vmul.f32 %v515_v62, %v5374_v4  ;;  %v537_v6 = vstv %s4550_s5  ;;  %v559_v9 = vstv %s4551_s7  ;;  %s4558_s13 = sld [smem:[#allocation2 + $0x23]] }
  0x55   : > { %v539_v7 = vmul.f32 %v537_v6, %v5374_v4  ;;  %v538_v8 = vmul.f32 %v537_v6, %v5371_v2  ;;  %v560_v10 = vmul.f32 %v559_v9, %v5371_v2  ;;  %v540_v11 = vmul.f32 %v537_v6, %v5368_v1  ;;  %s4559_s20 = sld [smem:[#allocation2 + $0x33]] }
  0x56   : > { %v562_v12 = vmul.f32 %v559_v9, %v5368_v1  ;;  %v561_v13 = vmul.f32 %v559_v9, %v5374_v4  ;;  %s4560_s22 = sld [smem:[#allocation2 + $0x43]] }
  0x57   : > { %s4561_s23 = sld [smem:[#allocation2 + $0x53]] }
  0x58   : > { %393 = vrot.lane.b32.xlu1 %v385_v17, %s5232_s30  ;;  %391 = vrot.lane.b32.xlu0 %v384_v18, %s5232_s30  ;;  %v603_v17 = vstv %s4553_s8  ;;  %s4562_s27 = sld [smem:[#allocation2 + $0x63]] }
  0x59   : > { %v604_v18 = vmul.f32 %v603_v17, %v5371_v2  ;;  %v606_v21 = vmul.f32 %v603_v17, %v5368_v1  ;;  %v605_v22 = vmul.f32 %v603_v17, %v5374_v4  ;;  %v692_v43 = vstv %s4557_s12  ;;  %s4563_s29 = sld [smem:[#allocation2 + $0x73]] }
  0x5a   : > { %v695_v46 = vmul.f32 %v692_v43, %v5368_v1  ;;  %s4564_s5 = sld [smem:[#allocation2 + $0x4]] }
  0x5b   : > { %s4566_s7 = sld [smem:[#allocation2 + $0x24]] }
  0x5c   : > { %413 = vrot.lane.b32.xlu1 %v406_v23, %s5232_s30  ;;  %411 = vrot.lane.b32.xlu0 %v405_v24, %s5232_s30  ;;  %v625_v23 = vstv %s4554_s9  ;;  %v758_v62 = vstv %s4560_s22  ;;  %s4567_s8 = sld [smem:[#allocation2 + $0x34]] }
  0x5d   : > { %v627_v24 = vmul.f32 %v625_v23, %v5374_v4  ;;  %v626_v26 = vmul.f32 %v625_v23, %v5371_v2  ;;  %v628_v33 = vmul.f32 %v625_v23, %v5368_v1  ;;  %v780_v6 = vstv %s4561_s23  ;;  %s4568_s9 = sld [smem:[#allocation2 + $0x44]] }
  0x5e   : > { %v781_v9 = vmul.f32 %v780_v6, %v5371_v2  ;;  %s4570_s12 = sld [smem:[#allocation2 + $0x64]] }
  0x5f   : > { %v824_v23 = vstv %s4563_s29  ;;  %s4572_s22 = sld [smem:[#allocation2 + $0x5]] }
  0x60   : > { %433 = vrot.lane.b32.xlu1 %v427_v29, %s5232_s30  ;;  %415 = vrot.lane.b32.xlu0 %v407_v30, %s5232_s30  ;;  %v647_v29 = vstv %s4555_s10  ;;  %s4569_s10 = sld [smem:[#allocation2 + $0x54]] }
  0x61   : > { %v648_v30 = vmul.f32 %v647_v29, %v5371_v2  ;;  %v650_v34 = vmul.f32 %v647_v29, %v5368_v1  ;;  %s4530_s23 = sld [smem:[#allocation5 + $0x5]] }
  0x62   : > { %s4539_s29 = sld [smem:[#allocation2 + $0x70]] }
  0x64   : > { %437 = vrot.lane.b32.xlu1 %v429_v37, %s5232_s30  ;;  %435 = vrot.lane.b32.xlu0 %v428_v38, %s5232_s30  ;;  %v649_v37 = vmul.f32 %v647_v29, %v5374_v4  ;;  %v669_v38 = vstv %s4556_s11  ;;  %s4535_s11 = sld [smem:[#allocation2 + $0x30]] }
  0x65   : > { %v671_v39 = vmul.f32 %v669_v38, %v5374_v4  ;;  %v670_v42 = vmul.f32 %v669_v38, %v5371_v2 }
  0x68   : > { %457 = vrot.lane.b32.xlu1 %v450_v44, %s5232_s30  ;;  %455 = vrot.lane.b32.xlu0 %v449_v45, %s5232_s30  ;;  %v693_v44 = vmul.f32 %v692_v43, %v5371_v2  ;;  %v672_v45 = vmul.f32 %v669_v38, %v5368_v1  ;;  %v826_v38 = vmul.f32 %v824_v23, %v5374_v4  ;;  %v5770_v52 = vstv %s4539_s29  ;;  %s4586_s29 = sld [smem:[#allocation2 + $0x66]] }
  0x69   : > { %8843 = vst [vmem:[#allocation39_spill] sm:$0xff] %v5770_v52 }
  0x6c   : > { %477 = vrot.lane.b32.xlu1 %v471_v49, %s5232_s30  ;;  %459 = vrot.lane.b32.xlu0 %v451_v50, %s5232_s30  ;;  %v694_v49 = vmul.f32 %v692_v43, %v5374_v4  ;;  %v714_v50 = vstv %s4558_s13  ;;  %s4528_s13 = sld [smem:[#allocation5 + $0x3]] }
  0x6d   : > { %v716_v53 = vmul.f32 %v714_v50, %v5374_v4  ;;  %v715_v54 = vmul.f32 %v714_v50, %v5371_v2  ;;  %v717_v59 = vmul.f32 %v714_v50, %v5368_v1 }
  0x70   : > { %481 = vrot.lane.b32.xlu1 %v473_v57, %s5232_s30  ;;  %479 = vrot.lane.b32.xlu0 %v472_v58, %s5232_s30  ;;  %s4552_s30 = sld [smem:[#allocation2 + $0x42]]  ;;  %v736_v57 = vstv %s4559_s20 }
  0x71   : > { %v737_v58 = vmul.f32 %v736_v57, %v5371_v2  ;;  %s4537_s20 = sld [smem:[#allocation2 + $0x50]] }
  0x74   : > { %501 = vrot.lane.b32.xlu1 %v494_v60, %s5233_s6  ;;  %499 = vrot.lane.b32.xlu0 %v493_v61, %s5233_s6  ;;  %v739_v60 = vmul.f32 %v736_v57, %v5368_v1  ;;  %v738_v61 = vmul.f32 %v736_v57, %v5374_v4 }
  0x76   : > { %v581_v14 = vstv %s4552_s30  ;;  %s5235_s30 = smov 124  }
  0x77   : > { %v583_v15 = vmul.f32 %v581_v14, %v5374_v4  ;;  %v582_v16 = vmul.f32 %v581_v14, %v5371_v2  ;;  %v584_v19 = vmul.f32 %v581_v14, %v5368_v1  ;;  %v782_v14 = vmul.f32 %v780_v6, %v5374_v4 }
  0x78   : > { %522 = vrot.lane.b32.xlu1 %v516_v63, %s5233_s6  ;;  %503 = vrot.lane.b32.xlu0 %v495_v0, %s5233_s6 }
  0x7c   : > { %526 = vrot.lane.b32.xlu1 %v518_v3, %s5233_s6  ;;  %524 = vrot.lane.b32.xlu0 %v517_v5, %s5233_s6  ;;  %v760_v3 = vmul.f32 %v758_v62, %v5374_v4  ;;  %v759_v5 = vmul.f32 %v758_v62, %v5371_v2 }
  0x80   : > { %546 = vrot.lane.b32.xlu1 %v539_v7, %s5233_s6  ;;  %544 = vrot.lane.b32.xlu0 %v538_v8, %s5233_s6 }
  0x84   : > { %566 = vrot.lane.b32.xlu1 %v560_v10, %s5233_s6  ;;  %548 = vrot.lane.b32.xlu0 %v540_v11, %s5233_s6  ;;  %v761_v10 = vmul.f32 %v758_v62, %v5368_v1 }
  0x88   : > { %570 = vrot.lane.b32.xlu1 %v562_v12, %s5233_s6  ;;  %568 = vrot.lane.b32.xlu0 %v561_v13, %s5233_s6  ;;  %v783_v13 = vmul.f32 %v780_v6, %v5368_v1 }
  0x8c   : > { %590 = vrot.lane.b32.xlu1 %v583_v15, %s5233_s6  ;;  %588 = vrot.lane.b32.xlu0 %v582_v16, %s5233_s6  ;;  %v802_v15 = vstv %s4562_s27  ;;  %s4573_s27 = sld [smem:[#allocation2 + $0x15]] }
  0x90   : > { %610 = vrot.lane.b32.xlu1 %v604_v18, %s5233_s6  ;;  %592 = vrot.lane.b32.xlu0 %v584_v19, %s5233_s6 }
  0x94   : > { %614 = vrot.lane.b32.xlu1 %v606_v21, %s5233_s6  ;;  %612 = vrot.lane.b32.xlu0 %v605_v22, %s5233_s6  ;;  %v804_v21 = vmul.f32 %v802_v15, %v5374_v4  ;;  %v803_v22 = vmul.f32 %v802_v15, %v5371_v2 }
  0x98   : > { %634 = vrot.lane.b32.xlu1 %v627_v24, %s5233_s6  ;;  %632 = vrot.lane.b32.xlu0 %v626_v26, %s5233_s6 }
  0x9c   : > { %654 = vrot.lane.b32.xlu1 %v648_v30, %s5233_s6  ;;  %636 = vrot.lane.b32.xlu0 %v628_v33, %s5233_s6  ;;  %v825_v30 = vmul.f32 %v824_v23, %v5371_v2  ;;  %v805_v33 = vmul.f32 %v802_v15, %v5368_v1  ;;  %v913_v15 = vstv %s4567_s8  ;;  %s4576_s8 = sld [smem:[#allocation2 + $0x45]] }
  0xa0   : > { %658 = vrot.lane.b32.xlu1 %v650_v34, %s5233_s6  ;;  %656 = vrot.lane.b32.xlu0 %v649_v37, %s5233_s6  ;;  %s4565_s6 = sld [smem:[#allocation2 + $0x14]] }
  0xa4   : > { %678 = vrot.lane.b32.xlu1 %v671_v39, %s5234_s14  ;;  %676 = vrot.lane.b32.xlu0 %v670_v42, %s5234_s14  ;;  %v846_v39 = vstv %s4564_s5  ;;  %s4574_s5 = sld [smem:[#allocation2 + $0x25]] }
  0xa6   : > { %v869_v50 = vstv %s4565_s6  ;;  %s4532_s6 = sld [smem:[#allocation5 + $0x7]] }
  0xa7   : > { %v871_v62 = vmul.f32 %v869_v50, %v5374_v4 }
  0xa8   : > { %699 = vrot.lane.b32.xlu1 %v693_v44, %s5234_s14  ;;  %680 = vrot.lane.b32.xlu0 %v672_v45, %s5234_s14 }
  0xac   : > { %703 = vrot.lane.b32.xlu1 %v695_v46, %s5234_s14  ;;  %701 = vrot.lane.b32.xlu0 %v694_v49, %s5234_s14  ;;  %v848_v46 = vmul.f32 %v846_v39, %v5374_v4  ;;  %v847_v49 = vmul.f32 %v846_v39, %v5371_v2 }
  0xb0   : > { %723 = vrot.lane.b32.xlu1 %v716_v53, %s5234_s14  ;;  %721 = vrot.lane.b32.xlu0 %v715_v54, %s5234_s14 }
  0xb4   : > { %743 = vrot.lane.b32.xlu1 %v737_v58, %s5234_s14  ;;  %725 = vrot.lane.b32.xlu0 %v717_v59, %s5234_s14  ;;  %v870_v58 = vmul.f32 %v869_v50, %v5371_v2  ;;  %v849_v59 = vmul.f32 %v846_v39, %v5368_v1 }
  0xb6   : > { %v5550_v63 = vpop.permute.xlu1 %326  ;;  %v5552_v0 = vpop.permute.xlu0 %322 }
  0xb8   : > { %747 = vrot.lane.b32.xlu1 %v739_v60, %s5234_s14  ;;  %745 = vrot.lane.b32.xlu0 %v738_v61, %s5234_s14 }
  0xba   : > { %v5558_v7 = vpop.permute.xlu1 %345  ;;  %v5560_v8 = vpop.permute.xlu0 %324 }
  0xbb   : > { %8822 = vst [vmem:[#allocation18_spill] sm:$0xff] %v5558_v7  ;;  %v6367_v7 = vld [vmem:[%s8632_s3 + $0x50] sm:$0xff] }
  0xbc   : > { %767 = vrot.lane.b32.xlu1 %v760_v3, %s5234_s14  ;;  %765 = vrot.lane.b32.xlu0 %v759_v5, %s5234_s14  ;;  %v891_v3 = vstv %s4566_s7  ;;  %s5236_s7 = smov 123  }
  0xbe   : > { %v5566_v11 = vpop.permute.xlu1 %349  ;;  %v5568_v12 = vpop.permute.xlu0 %347 }
  0xbf   : > { %8823 = vst [vmem:[#allocation19_spill] sm:$0xff] %v5566_v11  ;;  %8824 = vst [vmem:[#allocation20_spill] sm:$0xff] %v5568_v12 }
  0xc0   : > { %787 = vrot.lane.b32.xlu1 %v781_v9, %s5234_s14  ;;  %769 = vrot.lane.b32.xlu0 %v761_v10, %s5234_s14 }
  0xc2   : > { %v370_v16 = vpop.permute.xlu1 %369  ;;  %v368_v17 = vpop.permute.xlu0 %367 }
  0xc3   : > { %v373_v18 = vsel %vm328_vm0, %v368_v17, %v370_v16 }
  0xc4   : > { %v5576_v19 = vadd.f32 %v373_v18, %v5429_v35  ;;  %791 = vrot.lane.b32.xlu1 %v783_v13, %s5234_s14  ;;  %789 = vrot.lane.b32.xlu0 %v782_v14, %s5234_s14  ;;  %v893_v13 = vmul.f32 %v891_v3, %v5374_v4  ;;  %v892_v14 = vmul.f32 %v891_v3, %v5371_v2 }
  0xc6   : > { %v5582_v24 = vpop.permute.xlu1 %389  ;;  %v5584_v26 = vpop.permute.xlu0 %371 }
  0xc7   : > { %8825 = vst [vmem:[#allocation21_spill] sm:$0xff] %v5584_v26  ;;  %v374_v29 = vsel %vm328_vm0, %v370_v16, %v5584_v26 }
  0xc8   : > { %v5589_v35 = vadd.f32 %v374_v29, %v5432_v36  ;;  %811 = vrot.lane.b32.xlu1 %v804_v21, %s5234_s14  ;;  %809 = vrot.lane.b32.xlu0 %v803_v22, %s5234_s14  ;;  %v827_v36 = vmul.f32 %v824_v23, %v5368_v1  ;;  %v914_v21 = vmul.f32 %v913_v15, %v5371_v2 }
  0xc9   : > { %v894_v22 = vmul.f32 %v891_v3, %v5368_v1  ;;  %v979_v3 = vstv %s4570_s12  ;;  %s4580_s12 = sld [smem:[#allocation2 + $0x6]] }
  0xca   : > { %v5595_v34 = vpop.permute.xlu1 %393  ;;  %v5597_v37 = vpop.permute.xlu0 %391 }
  0xcb   : > { %8826 = vst [vmem:[#allocation22_spill] sm:$0xff] %v5595_v34 }
  0xcc   : > { %831 = vrot.lane.b32.xlu1 %v825_v30, %s5234_s14  ;;  %813 = vrot.lane.b32.xlu0 %v805_v33, %s5234_s14  ;;  %v915_v30 = vmul.f32 %v913_v15, %v5374_v4  ;;  %v935_v33 = vstv %s4568_s9  ;;  %s4577_s9 = sld [smem:[#allocation2 + $0x55]] }
  0xcd   : > { %v937_v39 = vmul.f32 %v935_v33, %v5374_v4 }
  0xce   : > { %v414_v42 = vpop.permute.xlu1 %413  ;;  %v412_v43 = vpop.permute.xlu0 %411 }
  0xcf   : > { %v417_v44 = vsel %vm328_vm0, %v412_v43, %v414_v42  ;;  %v957_v43 = vstv %s4569_s10  ;;  %s4578_s10 = sld [smem:[#allocation2 + $0x65]] }
  0xd0   : > { %v5605_v45 = vadd.f32 %v417_v44, %v5451_v47  ;;  %835 = vrot.lane.b32.xlu1 %v827_v36, %s5234_s14  ;;  %833 = vrot.lane.b32.xlu0 %v826_v38, %s5234_s14  ;;  %s4571_s14 = sld [smem:[#allocation2 + $0x74]] }
  0xd2   : > { %v5611_v53 = vpop.permute.xlu1 %433  ;;  %v5613_v54 = vpop.permute.xlu0 %415 }
  0xd3   : > { %8827 = vst [vmem:[#allocation23_spill] sm:$0xff] %v5613_v54  ;;  %v418_v57 = vsel %vm328_vm0, %v414_v42, %v5613_v54  ;;  %v936_v42 = vmul.f32 %v935_v33, %v5371_v2 }
  0xd4   : > { %v5618_v47 = vadd.f32 %v418_v57, %v5454_v48  ;;  %855 = vrot.lane.b32.xlu1 %v848_v46, %s5235_s30  ;;  %853 = vrot.lane.b32.xlu0 %v847_v49, %s5235_s30  ;;  %v872_v48 = vmul.f32 %v869_v50, %v5368_v1  ;;  %v958_v49 = vmul.f32 %v957_v43, %v5371_v2 }
  0xd5   : > { %v938_v50 = vmul.f32 %v935_v33, %v5368_v1 }
  0xd6   : > { %v5624_v60 = vpop.permute.xlu1 %437  ;;  %v5626_v61 = vpop.permute.xlu0 %435 }
  0xd7   : > { %8828 = vst [vmem:[#allocation24_spill] sm:$0xff] %v5624_v60 }
  0xd8   : > { %876 = vrot.lane.b32.xlu1 %v870_v58, %s5235_s30  ;;  %857 = vrot.lane.b32.xlu0 %v849_v59, %s5235_s30  ;;  %v5681_v59 = vstv %s4535_s11  ;;  %s4579_s11 = sld [smem:[#allocation2 + $0x75]] }
  0xd9   : > { %8835 = vst [vmem:[#allocation31_spill] sm:$0xff] %v5681_v59 }
  0xda   : > { %v458_v5 = vpop.permute.xlu1 %457  ;;  %v456_v6 = vpop.permute.xlu0 %455 }
  0xdb   : > { %v461_v9 = vsel %vm328_vm0, %v456_v6, %v458_v5  ;;  %v276_v6 = vmul.f32 %v5681_v59, %v5371_v2 }
  0xdc   : > { %v5634_v10 = vadd.f32 %v461_v9, %v5469_v55  ;;  %880 = vrot.lane.b32.xlu1 %v872_v48, %s5235_s30  ;;  %878 = vrot.lane.b32.xlu0 %v871_v62, %s5235_s30  ;;  %v960_v48 = vmul.f32 %v957_v43, %v5368_v1  ;;  %v959_v62 = vmul.f32 %v957_v43, %v5374_v4 }
  0xdd   : > { %v396_v43 = vsel %vm328_vm0, %v5597_v37, %v5595_v34 }
  0xde   : > { %v5640_v16 = vpop.permute.xlu1 %477  ;;  %v5642_v17 = vpop.permute.xlu0 %459 }
  0xdf   : > { %8829 = vst [vmem:[#allocation25_spill] sm:$0xff] %v5642_v17  ;;  %v462_v18 = vsel %vm328_vm0, %v458_v5, %v5642_v17  ;;  %v277_v5 = vmul.f32 %v5681_v59, %v5374_v4 }
  0xe0   : > { %v5647_v55 = vadd.f32 %v462_v18, %v5472_v56  ;;  %900 = vrot.lane.b32.xlu1 %v893_v13, %s5235_s30  ;;  %898 = vrot.lane.b32.xlu0 %v892_v14, %s5235_s30  ;;  %v916_v56 = vmul.f32 %v913_v15, %v5368_v1  ;;  %v5691_v14 = vstv %s4528_s13  ;;  %s4581_s13 = sld [smem:[#allocation2 + $0x16]] }
  0xe1   : > { %8836 = vst [vmem:[#allocation32_spill] sm:$0xff] %v5691_v14  ;;  %v279_v33 = vadd.f32 %v276_v6, %v5691_v14 }
  0xe2   : > { %v5653_v23 = vpop.permute.xlu1 %481  ;;  %v5655_v29 = vpop.permute.xlu0 %479 }
  0xe3   : > { %8830 = vst [vmem:[#allocation26_spill] sm:$0xff] %v5653_v23 }
  0xe4   : > { %920 = vrot.lane.b32.xlu1 %v914_v21, %s5235_s30  ;;  %902 = vrot.lane.b32.xlu0 %v894_v22, %s5235_s30  ;;  %v981_v21 = vmul.f32 %v979_v3, %v5374_v4  ;;  %v980_v22 = vmul.f32 %v979_v3, %v5371_v2 }
  0xe6   : > { %v5661_v36 = vpop.permute.xlu1 %501  ;;  %v5663_v38 = vpop.permute.xlu0 %499 }
  0xe7   : > { %8831 = vst [vmem:[#allocation27_spill] sm:$0xff] %v5663_v38 }
  0xe8   : > { %924 = vrot.lane.b32.xlu1 %v916_v56, %s5235_s30  ;;  %922 = vrot.lane.b32.xlu0 %v915_v30, %s5235_s30  ;;  %v1001_v56 = vstv %s4571_s14  ;;  %v280_v30 = vadd.f32 %v277_v5, %v5691_v14  ;;  %s4582_s14 = sld [smem:[#allocation2 + $0x26]] }
  0xea   : > { %v5669_v44 = vpop.permute.xlu1 %522  ;;  %v5671_v46 = vpop.permute.xlu0 %503  ;;  %v401_v5 = vadd.f32 %v396_v43, %v280_v30  ;;  %v1023_v30 = vstv %s4572_s22  ;;  %s4583_s22 = sld [smem:[#allocation2 + $0x36]] }
  0xeb   : > { %8832 = vst [vmem:[#allocation28_spill] sm:$0xff] %v5669_v44  ;;  %v6337_v44 = vld [vmem:[%s8632_s3 + $0xd8] sm:$0xff] }
  0xec   : > { %944 = vrot.lane.b32.xlu1 %v937_v39, %s5235_s30  ;;  %942 = vrot.lane.b32.xlu0 %v936_v42, %s5235_s30 }
  0xee   : > { %v5677_v57 = vpop.permute.xlu1 %526  ;;  %v5679_v58 = vpop.permute.xlu0 %524 }
  0xef   : > { %8833 = vst [vmem:[#allocation29_spill] sm:$0xff] %v5677_v57  ;;  %8834 = vst [vmem:[#allocation30_spill] sm:$0xff] %v5679_v58 }
  0xf0   : > { %964 = vrot.lane.b32.xlu1 %v958_v49, %s5235_s30  ;;  %946 = vrot.lane.b32.xlu0 %v938_v50, %s5235_s30 }
  0xf2   : > { %v547_v9 = vpop.permute.xlu1 %546  ;;  %v545_v13 = vpop.permute.xlu0 %544 }
  0xf3   : > { %v550_v15 = vsel %vm505_vm1, %v545_v13, %v547_v9  ;;  %v5722_v13 = vstv %s4537_s20  ;;  %s5237_s20 = smov 122  }
  0xf4   : > { %v5695_v18 = vadd.f32 %v550_v15, %v5576_v19  ;;  %968 = vrot.lane.b32.xlu1 %v960_v48, %s5235_s30  ;;  %966 = vrot.lane.b32.xlu0 %v959_v62, %s5235_s30  ;;  %v395_v19 = vsel %vm328_vm0, %v5582_v24, %v5597_v37  ;;  %v1002_v48 = vmul.f32 %v1001_v56, %v5371_v2 }
  0xf5   : > { %v982_v62 = vmul.f32 %v979_v3, %v5368_v1  ;;  %v400_v24 = vadd.f32 %v395_v19, %v279_v33  ;;  %8839 = vst [vmem:[#allocation35_spill] sm:$0xff] %v5722_v13  ;;  %v1004_v15 = vmul.f32 %v1001_v56, %v5368_v1  ;;  %v1003_v3 = vmul.f32 %v1001_v56, %v5374_v4 }
  0xf6   : > { %v567_v39 = vpop.permute.xlu1 %566  ;;  %v5703_v42 = vpop.permute.xlu0 %548  ;;  %v293_v33 = vmul.f32 %v5722_v13, %v5374_v4  ;;  %v1025_v56 = vmul.f32 %v1023_v30, %v5374_v4 }
  0xf7   : > { %8837 = vst [vmem:[#allocation33_spill] sm:$0xff] %v5703_v42  ;;  %v551_v49 = vsel %vm505_vm1, %v547_v9, %v5703_v42 }
  0xf8   : > { %v5714_v50 = vadd.f32 %v551_v49, %v5589_v35  ;;  %988 = vrot.lane.b32.xlu1 %v981_v21, %s5235_s30  ;;  %986 = vrot.lane.b32.xlu0 %v980_v22, %s5235_s30  ;;  %v5739_v49 = vstv %s4530_s23  ;;  %s4584_s23 = sld [smem:[#allocation2 + $0x46]] }
  0xf9   : > { %8840 = vst [vmem:[#allocation36_spill] sm:$0xff] %v5739_v49 }
  0xfa   : > { %v5720_v6 = vpop.permute.xlu1 %570  ;;  %v569_v37 = vpop.permute.xlu0 %568 }
  0xfb   : > { %8838 = vst [vmem:[#allocation34_spill] sm:$0xff] %v5720_v6  ;;  %v572_v9 = vsel %vm505_vm1, %v567_v39, %v569_v37  ;;  %v573_v35 = vsel %vm505_vm1, %v569_v37, %v5720_v6  ;;  %v292_v39 = vmul.f32 %v5722_v13, %v5371_v2  ;;  %v296_v37 = vadd.f32 %v293_v33, %v5739_v49 }
  0xfc   : > { %v5728_v21 = vadd.f32 %v572_v9, %v400_v24  ;;  %v5730_v22 = vadd.f32 %v573_v35, %v401_v5  ;;  %1008 = vrot.lane.b32.xlu1 %v1002_v48, %s5235_s30  ;;  %990 = vrot.lane.b32.xlu0 %v982_v62, %s5235_s30  ;;  %v1024_v62 = vmul.f32 %v1023_v30, %v5371_v2  ;;  %v1046_v5 = vstv %s4573_s27  ;;  %s4585_s27 = sld [smem:[#allocation2 + $0x56]] }
  0xfd   : > { %v295_v9 = vadd.f32 %v292_v39, %v5739_v49  ;;  %v1047_v33 = vmul.f32 %v1046_v5, %v5371_v2 }
  0xfe   : > { %v591_v19 = vpop.permute.xlu1 %590  ;;  %v589_v43 = vpop.permute.xlu0 %588 }
  0xff   : > { %v594_v24 = vsel %vm505_vm1, %v589_v43, %v591_v19 }
 0x100   : > { %v5743_v48 = vadd.f32 %v594_v24, %v5605_v45  ;;  %1012 = vrot.lane.b32.xlu1 %v1004_v15, %s5235_s30  ;;  %1010 = vrot.lane.b32.xlu0 %v1003_v3, %s5235_s30  ;;  %v439_v45 = vsel %vm328_vm0, %v5611_v53, %v5626_v61  ;;  %v440_v15 = vsel %vm328_vm0, %v5626_v61, %v5624_v60  ;;  %s4575_s30 = sld [smem:[#allocation2 + $0x35]] }
 0x101   : > { %v1026_v53 = vmul.f32 %v1023_v30, %v5368_v1  ;;  %v444_v39 = vadd.f32 %v439_v45, %v295_v9  ;;  %v445_v24 = vadd.f32 %v440_v15, %v296_v37  ;;  %v1048_v30 = vmul.f32 %v1046_v5, %v5374_v4 }
 0x102   : > { %v611_v35 = vpop.permute.xlu1 %610  ;;  %v5751_v17 = vpop.permute.xlu0 %592  ;;  %v1068_v37 = vstv %s4574_s5  ;;  %v309_v9 = vmul.f32 %v5770_v52, %v5374_v4  ;;  %v5787_v15 = vstv %s4532_s6  ;;  %s4587_s5 = sld [smem:[#allocation2 + $0x76]] }
 0x103   : > { %8841 = vst [vmem:[#allocation37_spill] sm:$0xff] %v5751_v17  ;;  %v595_v3 = vsel %vm505_vm1, %v591_v19, %v5751_v17  ;;  %8844 = vst [vmem:[#allocation40_spill] sm:$0xff] %v5787_v15  ;;  %s4588_s6 = sld [smem:[#allocation2 + $0x7]] }
 0x104   : > { %v5762_v43 = vadd.f32 %v595_v3, %v5618_v47  ;;  %1032 = vrot.lane.b32.xlu1 %v1025_v56, %s5236_s7  ;;  %1030 = vrot.lane.b32.xlu0 %v1024_v62, %s5236_s7  ;;  %v1049_v56 = vmul.f32 %v1046_v5, %v5368_v1  ;;  %v1070_v5 = vmul.f32 %v1068_v37, %v5374_v4 }
 0x106   : > { %v5768_v61 = vpop.permute.xlu1 %614  ;;  %v613_v51 = vpop.permute.xlu0 %612 }
 0x107   : > { %8842 = vst [vmem:[#allocation38_spill] sm:$0xff] %v5768_v61  ;;  %v616_v47 = vsel %vm505_vm1, %v611_v35, %v613_v51  ;;  %v617_v19 = vsel %vm505_vm1, %v613_v51, %v5768_v61  ;;  %v308_v35 = vmul.f32 %v5770_v52, %v5371_v2 }
 0x108   : > { %v5776_v62 = vadd.f32 %v616_v47, %v444_v39  ;;  %v5778_v3 = vadd.f32 %v617_v19, %v445_v24  ;;  %1053 = vrot.lane.b32.xlu1 %v1047_v33, %s5236_s7  ;;  %1034 = vrot.lane.b32.xlu0 %v1026_v53, %s5236_s7  ;;  %v1069_v33 = vmul.f32 %v1068_v37, %v5371_v2  ;;  %v1090_v53 = vstv %s4575_s30  ;;  %s4590_s30 = sld [smem:[#allocation2 + $0x27]] }
 0x109   : > { %v312_v47 = vadd.f32 %v309_v9, %v5787_v15  ;;  %v311_v19 = vadd.f32 %v308_v35, %v5787_v15  ;;  %v1091_v9 = vmul.f32 %v1090_v53, %v5371_v2  ;;  %v1071_v35 = vmul.f32 %v1068_v37, %v5368_v1 }
 0x10a   : > { %v635_v51 = vpop.permute.xlu1 %634  ;;  %v633_v45 = vpop.permute.xlu0 %632  ;;  %v1092_v37 = vmul.f32 %v1090_v53, %v5374_v4  ;;  %v1355_v54 = vstv %s4587_s5  ;;  %s4592_s5 = sld [smem:[#allocation2 + $0x47]] }
 0x10b   : > { %v638_v39 = vsel %vm505_vm1, %v633_v45, %v635_v51 }
 0x10c   : > { %v5791_v24 = vadd.f32 %v638_v39, %v5634_v10  ;;  %1057 = vrot.lane.b32.xlu1 %v1049_v56, %s5236_s7  ;;  %1055 = vrot.lane.b32.xlu0 %v1048_v30, %s5236_s7  ;;  %v483_v10 = vsel %vm328_vm0, %v5640_v16, %v5655_v29  ;;  %v484_v56 = vsel %vm328_vm0, %v5655_v29, %v5653_v23 }
 0x10d   : > { %v488_v16 = vadd.f32 %v483_v10, %v311_v19  ;;  %v489_v39 = vadd.f32 %v484_v56, %v312_v47  ;;  %v1112_v47 = vstv %s4576_s8  ;;  %v1134_v56 = vstv %s4577_s9  ;;  %s8720_s8 = smov 121   ;;  %s4591_s9 = sld [smem:[#allocation2 + $0x37]] }
 0x10e   : > { %v655_v52 = vpop.permute.xlu1 %654  ;;  %v5799_v61 = vpop.permute.xlu0 %636 }
 0x10f   : > { %8845 = vst [vmem:[#allocation41_spill] sm:$0xff] %v5799_v61  ;;  %v639_v30 = vsel %vm505_vm1, %v635_v51, %v5799_v61  ;;  %v1093_v51 = vmul.f32 %v1090_v53, %v5368_v1  ;;  %v1135_v53 = vmul.f32 %v1134_v56, %v5371_v2 }
 0x110   : > { %v5810_v45 = vadd.f32 %v639_v30, %v5647_v55  ;;  %1077 = vrot.lane.b32.xlu1 %v1070_v5, %s5236_s7  ;;  %1075 = vrot.lane.b32.xlu0 %v1069_v33, %s5236_s7 }
 0x112   : > { %v5816_v15 = vpop.permute.xlu1 %658  ;;  %v657_v29 = vpop.permute.xlu0 %656 }
 0x113   : > { %8846 = vst [vmem:[#allocation42_spill] sm:$0xff] %v5816_v15  ;;  %v660_v23 = vsel %vm505_vm1, %v655_v52, %v657_v29  ;;  %v661_v55 = vsel %vm505_vm1, %v657_v29, %v5816_v15  ;;  %v1114_v52 = vmul.f32 %v1112_v47, %v5374_v4  ;;  %v1137_v29 = vmul.f32 %v1134_v56, %v5368_v1 }
 0x114   : > { %v5822_v5 = vadd.f32 %v660_v23, %v488_v16  ;;  %v5824_v33 = vadd.f32 %v661_v55, %v489_v39  ;;  %1097 = vrot.lane.b32.xlu1 %v1091_v9, %s5236_s7  ;;  %1079 = vrot.lane.b32.xlu0 %v1071_v35, %s5236_s7  ;;  %v1113_v23 = vmul.f32 %v1112_v47, %v5371_v2  ;;  %v1178_v15 = vstv %s4579_s11  ;;  %s4596_s11 = sld [smem:[#allocation2 + $0x8]] }
 0x115   : > { %v1115_v35 = vmul.f32 %v1112_v47, %v5368_v1  ;;  %v1136_v55 = vmul.f32 %v1134_v56, %v5374_v4 }
 0x116   : > { %v5829_v19 = vpop.permute.xlu1 %678  ;;  %v5831_v10 = vpop.permute.xlu0 %676 }
 0x117   : > { %8847 = vst [vmem:[#allocation43_spill] sm:$0xff] %v5831_v10 }
 0x118   : > { %1101 = vrot.lane.b32.xlu1 %v1093_v51, %s5236_s7  ;;  %1099 = vrot.lane.b32.xlu0 %v1092_v37, %s5236_s7  ;;  %v1156_v51 = vstv %s4578_s10  ;;  %s4604_s10 = sld [smem:[#allocation2 + $0x9]] }
 0x11a   : > { %v5837_v30 = vpop.permute.xlu1 %699  ;;  %v5839_v9 = vpop.permute.xlu0 %680 }
 0x11b   : > { %8848 = vst [vmem:[#allocation44_spill] sm:$0xff] %v5837_v30  ;;  %v1466_v30 = vstv %s4592_s5  ;;  %s4606_s5 = sld [smem:[#allocation2 + $0x29]] }
 0x11c   : > { %1121 = vrot.lane.b32.xlu1 %v1114_v52, %s5236_s7  ;;  %1119 = vrot.lane.b32.xlu0 %v1113_v23, %s5236_s7 }
 0x11e   : > { %v5845_v16 = vpop.permute.xlu1 %703  ;;  %v5847_v39 = vpop.permute.xlu0 %701 }
 0x11f   : > { %8849 = vst [vmem:[#allocation45_spill] sm:$0xff] %v5845_v16  ;;  %8850 = vst [vmem:[#allocation46_spill] sm:$0xff] %v5847_v39 }
 0x120   : > { %1141 = vrot.lane.b32.xlu1 %v1135_v53, %s5236_s7  ;;  %1123 = vrot.lane.b32.xlu0 %v1115_v35, %s5236_s7  ;;  %v1158_v53 = vmul.f32 %v1156_v51, %v5374_v4  ;;  %v1157_v35 = vmul.f32 %v1156_v51, %v5371_v2 }
 0x121   : > { %v6339_v58 = vstv %s4606_s5  ;;  %s4646_s5 = sld [smem:[#allocation2 + $0x2e]] }
 0x122   : > { %v724_v37 = vpop.permute.xlu1 %723  ;;  %v722_v52 = vpop.permute.xlu0 %721 }
 0x123   : > { %v727_v23 = vsel %vm682_vm2, %v722_v52, %v724_v37 }
 0x124   : > { %v5855_v47 = vadd.f32 %v727_v23, %v5695_v18  ;;  %1145 = vrot.lane.b32.xlu1 %v1137_v29, %s5236_s7  ;;  %1143 = vrot.lane.b32.xlu0 %v1136_v55, %s5236_s7  ;;  %v1179_v18 = vmul.f32 %v1178_v15, %v5371_v2  ;;  %v1159_v29 = vmul.f32 %v1156_v51, %v5368_v1 }
 0x125   : > { %v1180_v51 = vmul.f32 %v1178_v15, %v5374_v4 }
 0x126   : > { %v744_v56 = vpop.permute.xlu1 %743  ;;  %v5861_v61 = vpop.permute.xlu0 %725 }
 0x127   : > { %8851 = vst [vmem:[#allocation47_spill] sm:$0xff] %v5861_v61  ;;  %v728_v60 = vsel %vm682_vm2, %v724_v37, %v5861_v61 }
 0x128   : > { %v5866_v52 = vadd.f32 %v728_v60, %v5714_v50  ;;  %1165 = vrot.lane.b32.xlu1 %v1158_v53, %s5236_s7  ;;  %1163 = vrot.lane.b32.xlu0 %v1157_v35, %s5236_s7  ;;  %v1181_v60 = vmul.f32 %v1178_v15, %v5368_v1  ;;  %v1200_v35 = vstv %s4580_s12  ;;  %s4620_s12 = sld [smem:[#allocation2 + $0xb]] }
 0x12a   : > { %v5872_v55 = vpop.permute.xlu1 %747  ;;  %v746_v23 = vpop.permute.xlu0 %745 }
 0x12b   : > { %8852 = vst [vmem:[#allocation48_spill] sm:$0xff] %v5872_v55  ;;  %v749_v49 = vsel %vm682_vm2, %v744_v56, %v746_v23  ;;  %v750_v37 = vsel %vm682_vm2, %v746_v23, %v5872_v55 }
 0x12c   : > { %v5879_v50 = vadd.f32 %v749_v49, %v5728_v21  ;;  %v5882_v53 = vadd.f32 %v750_v37, %v5730_v22  ;;  %1185 = vrot.lane.b32.xlu1 %v1179_v18, %s5236_s7  ;;  %1167 = vrot.lane.b32.xlu0 %v1159_v29, %s5236_s7  ;;  %v1202_v21 = vmul.f32 %v1200_v35, %v5374_v4  ;;  %v1223_v49 = vstv %s4581_s13  ;;  %v5905_v4 = vld [vmem:[%s5365_s28] sm:$0xff]  ;;  %s4612_s13 = sld [smem:[#allocation2 + $0xa]] }
 0x12d   : > { %v1201_v22 = vmul.f32 %v1200_v35, %v5371_v2  ;;  %v1224_v2 = vmul.f32 %v5905_v4, %v1223_v49  ;;  %v5909_v37 = vld [vmem:[%s5365_s28 + $0x10] sm:$0xff] }
 0x12e   : > { %v768_v13 = vpop.permute.xlu1 %767  ;;  %v766_v56 = vpop.permute.xlu0 %765  ;;  %v1779_v11 = vmul.f32 %v5909_v37, %v6339_v58 }
 0x12f   : > { %v771_v23 = vsel %vm682_vm2, %v766_v56, %v768_v13 }
 0x130   : > { %v5889_v1 = vadd.f32 %v771_v23, %v5743_v48  ;;  %1189 = vrot.lane.b32.xlu1 %v1181_v60, %s5236_s7  ;;  %1187 = vrot.lane.b32.xlu0 %v1180_v51, %s5236_s7  ;;  %v1203_v60 = vmul.f32 %v5909_v37, %v1200_v35  ;;  %v1226_v23 = vmul.f32 %v5909_v37, %v1223_v49  ;;  %v5927_v35 = vld [vmem:[%s5365_s28 + $0x8] sm:$0xff]  ;;  %s4589_s7 = sld [smem:[#allocation2 + $0x17]] }
 0x132   : > { %v788_v15 = vpop.permute.xlu1 %787  ;;  %v5895_v18 = vpop.permute.xlu0 %769 }
 0x133   : > { %8853 = vst [vmem:[#allocation49_spill] sm:$0xff] %v5895_v18  ;;  %v772_v29 = vsel %vm682_vm2, %v768_v13, %v5895_v18 }
 0x134   : > { %v5900_v48 = vadd.f32 %v772_v29, %v5762_v43  ;;  %1209 = vrot.lane.b32.xlu1 %v1202_v21, %s5237_s20  ;;  %1207 = vrot.lane.b32.xlu0 %v1201_v22, %s5237_s20  ;;  %v1225_v29 = vmul.f32 %v5927_v35, %v1223_v49 }
 0x136   : > { %v5912_v51 = vpop.permute.xlu1 %791  ;;  %v790_v13 = vpop.permute.xlu0 %789 }
 0x137   : > { %8854 = vst [vmem:[#allocation50_spill] sm:$0xff] %v5912_v51  ;;  %v793_v43 = vsel %vm682_vm2, %v788_v15, %v790_v13  ;;  %v794_v56 = vsel %vm682_vm2, %v790_v13, %v5912_v51  ;;  %v1245_v15 = vstv %s4582_s14  ;;  %s4636_s14 = sld [smem:[#allocation2 + $0xd]] }
 0x138   : > { %v5919_v21 = vadd.f32 %v793_v43, %v5776_v62  ;;  %v5922_v22 = vadd.f32 %v794_v56, %v5778_v3  ;;  %1230 = vrot.lane.b32.xlu1 %v1224_v2, %s5237_s20  ;;  %1211 = vrot.lane.b32.xlu0 %v1203_v60, %s5237_s20  ;;  %v1247_v62 = vmul.f32 %v5927_v35, %v1245_v15  ;;  %v1267_v2 = vstv %s4583_s22  ;;  %s4652_s22 = sld [smem:[#allocation2 + $0xf]] }
 0x139   : > { %v1246_v3 = vmul.f32 %v5905_v4, %v1245_v15  ;;  %v1248_v56 = vmul.f32 %v5909_v37, %v1245_v15  ;;  %v1269_v15 = vmul.f32 %v5927_v35, %v1267_v2 }
 0x13a   : > { %v812_v18 = vpop.permute.xlu1 %811  ;;  %v810_v55 = vpop.permute.xlu0 %809 }
 0x13b   : > { %v815_v13 = vsel %vm682_vm2, %v810_v55, %v812_v18 }
 0x13c   : > { %v5932_v51 = vadd.f32 %v815_v13, %v5791_v24  ;;  %1234 = vrot.lane.b32.xlu1 %v1226_v23, %s5237_s20  ;;  %1232 = vrot.lane.b32.xlu0 %v1225_v29, %s5237_s20  ;;  %v1268_v24 = vmul.f32 %v5905_v4, %v1267_v2 }
 0x13e   : > { %v832_v60 = vpop.permute.xlu1 %831  ;;  %v5938_v49 = vpop.permute.xlu0 %813 }
 0x13f   : > { %8855 = vst [vmem:[#allocation51_spill] sm:$0xff] %v5938_v49  ;;  %v816_v43 = vsel %vm682_vm2, %v812_v18, %v5938_v49 }
 0x140   : > { %v5943_v55 = vadd.f32 %v816_v43, %v5810_v45  ;;  %1254 = vrot.lane.b32.xlu1 %v1247_v62, %s5237_s20  ;;  %1252 = vrot.lane.b32.xlu0 %v1246_v3, %s5237_s20  ;;  %v1270_v45 = vmul.f32 %v5909_v37, %v1267_v2  ;;  %v1289_v3 = vstv %s4584_s23  ;;  %s4644_s23 = sld [smem:[#allocation2 + $0xe]] }
 0x142   : > { %v5949_v23 = vpop.permute.xlu1 %835  ;;  %v834_v29 = vpop.permute.xlu0 %833 }
 0x143   : > { %8856 = vst [vmem:[#allocation52_spill] sm:$0xff] %v5949_v23  ;;  %v837_v13 = vsel %vm682_vm2, %v832_v60, %v834_v29  ;;  %v838_v18 = vsel %vm682_vm2, %v834_v29, %v5949_v23  ;;  %v1311_v29 = vstv %s4585_s27  ;;  %s5239_s27 = smov 119  }
 0x144   : > { %v5956_v43 = vadd.f32 %v837_v13, %v5822_v5  ;;  %v5959_v62 = vadd.f32 %v838_v18, %v5824_v33  ;;  %1274 = vrot.lane.b32.xlu1 %v1268_v24, %s5237_s20  ;;  %1256 = vrot.lane.b32.xlu0 %v1248_v56, %s5237_s20  ;;  %v1291_v5 = vmul.f32 %v5927_v35, %v1289_v3 }
 0x145   : > { %v1290_v33 = vmul.f32 %v5905_v4, %v1289_v3  ;;  %v1312_v2 = vmul.f32 %v5905_v4, %v1311_v29  ;;  %v1292_v13 = vmul.f32 %v5909_v37, %v1289_v3  ;;  %v1313_v23 = vmul.f32 %v5927_v35, %v1311_v29 }
 0x146   : > { %v5964_v49 = vpop.permute.xlu1 %855  ;;  %v5966_v60 = vpop.permute.xlu0 %853 }
 0x147   : > { %8857 = vst [vmem:[#allocation53_spill] sm:$0xff] %v5964_v49  ;;  %8858 = vst [vmem:[#allocation54_spill] sm:$0xff] %v5966_v60  ;;  %v6528_v49 = vld [vmem:[%s8632_s3 + $0x18] sm:$0xff] }
 0x148   : > { %1278 = vrot.lane.b32.xlu1 %v1270_v45, %s5237_s20  ;;  %1276 = vrot.lane.b32.xlu0 %v1269_v15, %s5237_s20  ;;  %v1314_v15 = vmul.f32 %v5909_v37, %v1311_v29 }
 0x14a   : > { %v5972_v24 = vpop.permute.xlu1 %876  ;;  %v5974_v56 = vpop.permute.xlu0 %857 }
 0x14b   : > { %8859 = vst [vmem:[#allocation55_spill] sm:$0xff] %v5972_v24 }
 0x14c   : > { %1298 = vrot.lane.b32.xlu1 %v1291_v5, %s5237_s20  ;;  %1296 = vrot.lane.b32.xlu0 %v1290_v33, %s5237_s20  ;;  %v1333_v5 = vstv %s4586_s29  ;;  %s8722_s29 = smov 120  }
 0x14e   : > { %v5980_v18 = vpop.permute.xlu1 %880  ;;  %v5982_v45 = vpop.permute.xlu0 %878 }
 0x14f   : > { %8860 = vst [vmem:[#allocation56_spill] sm:$0xff] %v5980_v18  ;;  %8861 = vst [vmem:[#allocation57_spill] sm:$0xff] %v5982_v45 }
 0x150   : > { %1318 = vrot.lane.b32.xlu1 %v1312_v2, %s5237_s20  ;;  %1300 = vrot.lane.b32.xlu0 %v1292_v13, %s5237_s20  ;;  %v1335_v2 = vmul.f32 %v5927_v35, %v1333_v5  ;;  %v1334_v13 = vmul.f32 %v5905_v4, %v1333_v5 }
 0x152   : > { %v901_v33 = vpop.permute.xlu1 %900  ;;  %v899_v17 = vpop.permute.xlu0 %898 }
 0x153   : > { %v904_v6 = vsel %vm859_vm3, %v899_v17, %v901_v33 }
 0x154   : > { %v5990_v3 = vadd.f32 %v904_v6, %v5855_v47  ;;  %1322 = vrot.lane.b32.xlu1 %v1314_v15, %s5237_s20  ;;  %1320 = vrot.lane.b32.xlu0 %v1313_v23, %s5237_s20  ;;  %v1356_v6 = vmul.f32 %v5905_v4, %v1355_v54  ;;  %v1336_v47 = vmul.f32 %v5909_v37, %v1333_v5 }
 0x155   : > { %v1357_v5 = vmul.f32 %v5927_v35, %v1355_v54 }
 0x156   : > { %v921_v29 = vpop.permute.xlu1 %920  ;;  %v5996_v34 = vpop.permute.xlu0 %902 }
 0x157   : > { %8862 = vst [vmem:[#allocation58_spill] sm:$0xff] %v5996_v34  ;;  %v905_v40 = vsel %vm859_vm3, %v901_v33, %v5996_v34 }
 0x158   : > { %v6001_v17 = vadd.f32 %v905_v40, %v5866_v52  ;;  %1342 = vrot.lane.b32.xlu1 %v1335_v2, %s5237_s20  ;;  %1340 = vrot.lane.b32.xlu0 %v1334_v13, %s5237_s20  ;;  %v1358_v40 = vmul.f32 %v5909_v37, %v1355_v54  ;;  %v1377_v13 = vstv %s4588_s6  ;;  %s4621_s6 = sld [smem:[#allocation2 + $0x1b]] }
 0x15a   : > { %v6007_v23 = vpop.permute.xlu1 %924  ;;  %v923_v15 = vpop.permute.xlu0 %922 }
 0x15b   : > { %8863 = vst [vmem:[#allocation59_spill] sm:$0xff] %v6007_v23  ;;  %v926_v14 = vsel %vm859_vm3, %v921_v29, %v923_v15  ;;  %v927_v33 = vsel %vm859_vm3, %v923_v15, %v6007_v23 }
 0x15c   : > { %v6014_v52 = vadd.f32 %v926_v14, %v5879_v50  ;;  %v6017_v2 = vadd.f32 %v927_v33, %v5882_v53  ;;  %1362 = vrot.lane.b32.xlu1 %v1356_v6, %s5237_s20  ;;  %1344 = vrot.lane.b32.xlu0 %v1336_v47, %s5237_s20  ;;  %v1379_v14 = vmul.f32 %v5927_v35, %v1377_v13  ;;  %v1400_v53 = vstv %s4589_s7  ;;  %s4638_s7 = sld [smem:[#allocation2 + $0x2d]] }
 0x15d   : > { %v1378_v50 = vmul.f32 %v5905_v4, %v1377_v13 }
 0x15e   : > { %v945_v41 = vpop.permute.xlu1 %944  ;;  %v943_v29 = vpop.permute.xlu0 %942  ;;  %v6369_v12 = vstv %s4621_s6  ;;  %s6475_s6 = sld [smem:[#allocation2 + $0x2b]] }
 0x15f   : > { %v948_v59 = vsel %vm859_vm3, %v943_v29, %v945_v41  ;;  %v2111_v32 = vmul.f32 %v5909_v37, %v6369_v12 }
 0x160   : > { %v6024_v15 = vadd.f32 %v948_v59, %v5889_v1  ;;  %1366 = vrot.lane.b32.xlu1 %v1358_v40, %s5237_s20  ;;  %1364 = vrot.lane.b32.xlu0 %v1357_v5, %s5237_s20  ;;  %v1401_v59 = vmul.f32 %v5905_v4, %v1400_v53  ;;  %v1380_v1 = vmul.f32 %v5909_v37, %v1377_v13  ;;  %s4628_s20 = sld [smem:[#allocation2 + $0xc]] }
 0x161   : > { %v1402_v13 = vmul.f32 %v5927_v35, %v1400_v53 }
 0x162   : > { %v965_v6 = vpop.permute.xlu1 %964  ;;  %v6030_v54 = vpop.permute.xlu0 %946 }
 0x163   : > { %8864 = vst [vmem:[#allocation60_spill] sm:$0xff] %v6030_v54  ;;  %v949_v47 = vsel %vm859_vm3, %v945_v41, %v6030_v54 }
 0x164   : > { %v6035_v33 = vadd.f32 %v949_v47, %v5900_v48  ;;  %1386 = vrot.lane.b32.xlu1 %v1379_v14, %s8720_s8  ;;  %1384 = vrot.lane.b32.xlu0 %v1378_v50, %s8720_s8  ;;  %v1403_v48 = vmul.f32 %v5909_v37, %v1400_v53  ;;  %v1422_v50 = vstv %s4590_s30  ;;  %s5242_s30 = smov 117  }
 0x166   : > { %v6041_v40 = vpop.permute.xlu1 %968  ;;  %v967_v5 = vpop.permute.xlu0 %966 }
 0x167   : > { %8865 = vst [vmem:[#allocation61_spill] sm:$0xff] %v6041_v40  ;;  %v970_v29 = vsel %vm859_vm3, %v965_v6, %v967_v5  ;;  %v971_v41 = vsel %vm859_vm3, %v967_v5, %v6041_v40 }
 0x168   : > { %v6048_v47 = vadd.f32 %v970_v29, %v5919_v21  ;;  %v6051_v14 = vadd.f32 %v971_v41, %v5922_v22  ;;  %1407 = vrot.lane.b32.xlu1 %v1401_v59, %s8720_s8  ;;  %1388 = vrot.lane.b32.xlu0 %v1380_v1, %s8720_s8  ;;  %v1424_v21 = vmul.f32 %v5927_v35, %v1422_v50  ;;  %v1444_v59 = vstv %s4591_s9  ;;  %s5243_s9 = smov 118  }
 0x169   : > { %v1423_v22 = vmul.f32 %v5905_v4, %v1422_v50  ;;  %v1425_v41 = vmul.f32 %v5909_v37, %v1422_v50  ;;  %v1446_v50 = vmul.f32 %v5927_v35, %v1444_v59 }
 0x16a   : > { %v989_v54 = vpop.permute.xlu1 %988  ;;  %v987_v6 = vpop.permute.xlu0 %986 }
 0x16b   : > { %v992_v23 = vsel %vm859_vm3, %v987_v6, %v989_v54 }
 0x16c   : > { %v6058_v5 = vadd.f32 %v992_v23, %v5932_v51  ;;  %1411 = vrot.lane.b32.xlu1 %v1403_v48, %s8720_s8  ;;  %1409 = vrot.lane.b32.xlu0 %v1402_v13, %s8720_s8  ;;  %v1445_v23 = vmul.f32 %v5905_v4, %v1444_v59 }
 0x16e   : > { %v1009_v53 = vpop.permute.xlu1 %1008  ;;  %v6064_v1 = vpop.permute.xlu0 %990 }
 0x16f   : > { %8866 = vst [vmem:[#allocation62_spill] sm:$0xff] %v6064_v1  ;;  %v993_v29 = vsel %vm859_vm3, %v989_v54, %v6064_v1  ;;  %v6120_v1 = vstv %s4628_s20  ;;  %s4605_s20 = sld [smem:[#allocation2 + $0x19]] }
 0x170   : > { %v6069_v51 = vadd.f32 %v993_v29, %v5943_v55  ;;  %1431 = vrot.lane.b32.xlu1 %v1424_v21, %s8720_s8  ;;  %1429 = vrot.lane.b32.xlu0 %v1423_v22, %s8720_s8  ;;  %v1447_v55 = vmul.f32 %v5909_v37, %v1444_v59  ;;  %v6090_v29 = vstv %s4604_s10  ;;  %v6104_v59 = vstv %s4620_s12  ;;  %s5245_s10 = smov 115   ;;  %s5247_s12 = smov 113  }
 0x171   : > { %v2265_v61 = vmul.f32 %v5909_v37, %v6120_v1 }
 0x172   : > { %v6075_v48 = vpop.permute.xlu1 %1012  ;;  %v1011_v13 = vpop.permute.xlu0 %1010 }
 0x173   : > { %8867 = vst [vmem:[#allocation63_spill] sm:$0xff] %v6075_v48  ;;  %v1014_v6 = vsel %vm859_vm3, %v1009_v53, %v1011_v13  ;;  %v1015_v54 = vsel %vm859_vm3, %v1011_v13, %v6075_v48  ;;  %v6092_v53 = vstv %s4596_s11  ;;  %s5246_s11 = smov 116  }
 0x174   : > { %v6082_v21 = vadd.f32 %v1014_v6, %v5956_v43  ;;  %v6085_v22 = vadd.f32 %v1015_v54, %v5959_v62  ;;  %1451 = vrot.lane.b32.xlu1 %v1445_v23, %s8720_s8  ;;  %1433 = vrot.lane.b32.xlu0 %v1425_v41, %s8720_s8  ;;  %v1734_v43 = vmul.f32 %v5909_v37, %v6090_v29  ;;  %v6106_v23 = vstv %s4612_s13  ;;  %s5248_s13 = smov 114  }
 0x175   : > { %v1557_v62 = vmul.f32 %v5909_v37, %v6092_v53  ;;  %v2088_v54 = vmul.f32 %v5909_v37, %v6104_v59 }
 0x176   : > { %v6094_v13 = vpop.permute.xlu1 %1032  ;;  %v6096_v48 = vpop.permute.xlu0 %1030 }
 0x177   : > { %8868 = vst [vmem:[#allocation64_spill] sm:$0xff] %v6094_v13  ;;  %8869 = vst [vmem:[#allocation65_spill] sm:$0xff] %v6096_v48  ;;  %v2109_v13 = vmul.f32 %v5905_v4, %v6369_v12 }
 0x178   : > { %1455 = vrot.lane.b32.xlu1 %v1447_v55, %s8720_s8  ;;  %1453 = vrot.lane.b32.xlu0 %v1446_v50, %s8720_s8  ;;  %v1911_v55 = vmul.f32 %v5909_v37, %v6106_v23  ;;  %v6118_v50 = vstv %s4636_s14  ;;  %s4597_s14 = sld [smem:[#allocation2 + $0x18]] }
 0x17a   : > { %v6108_v41 = vpop.permute.xlu1 %1053  ;;  %v6110_v6 = vpop.permute.xlu0 %1034 }
 0x17b   : > { %8870 = vst [vmem:[#allocation66_spill] sm:$0xff] %v6108_v41  ;;  %v8672_v41 = vmov 0.0  }
 0x17c   : > { %1742 = vrot.lane.b32.xlu1 %v1734_v43, %s5239_s27  ;;  %1565 = vrot.lane.b32.xlu0 %v1557_v62, %s8722_s29  ;;  %v3004_v43 = vld [vmem:[%s8632_s3 + $0x100] sm:$0xff]  ;;  %v2442_v62 = vmul.f32 %v5909_v37, %v6118_v50 }
 0x17d   : > { %4977 = vmatprep.subr.mxu1 %v8672_v41  ;;  %4979 = vmatprep.mubr.msk.f32.mxu1 %vm5244_vm4, %v8672_v41 }
 0x17e   : > { %v6122_v40 = vpop.permute.xlu1 %1057  ;;  %v6124_v34 = vpop.permute.xlu0 %1055  ;;  %4978 = vmatpush3.msra.mxu1 %v3004_v43 }
 0x17f   : > { %8871 = vst [vmem:[#allocation67_spill] sm:$0xff] %v6122_v40  ;;  %8872 = vst [vmem:[#allocation68_spill] sm:$0xff] %v6124_v34  ;;  %v6136_v34 = vstv %s4652_s22  ;;  %v6138_v40 = vstv %s4644_s23  ;;  %s4598_s22 = sld [smem:[#allocation2 + $0x28]] }
 0x180   : > { %2096 = vrot.lane.b32.xlu1 %v2088_v54, %s5242_s30  ;;  %1919 = vrot.lane.b32.xlu0 %v1911_v55, %s5243_s9  ;;  %v2796_v43 = vmul.f32 %v5909_v37, %v6136_v34  ;;  %v2619_v41 = vmul.f32 %v5909_v37, %v6138_v40  ;;  %s4613_s23 = sld [smem:[#allocation2 + $0x1a]] }
 0x182   : > { %v1078_v54 = vpop.permute.xlu1 %1077  ;;  %v1076_v24 = vpop.permute.xlu0 %1075 }
 0x183   : > { %v1081_v55 = vsel %vm1036_vm5, %v1076_v24, %v1078_v54 }
 0x184   : > { %v6144_v45 = vadd.f32 %v1081_v55, %v5990_v3  ;;  %2450 = vrot.lane.b32.xlu1 %v2442_v62, %s5245_s10  ;;  %2273 = vrot.lane.b32.xlu0 %v2265_v61, %s5246_s11  ;;  %v1468_v61 = vmul.f32 %v5927_v35, %v1466_v30  ;;  %v1467_v62 = vmul.f32 %v5905_v4, %v1466_v30 }
 0x186   : > { %v1098_v39 = vpop.permute.xlu1 %1097  ;;  %v6152_v42 = vpop.permute.xlu0 %1079 }
 0x187   : > { %8873 = vst [vmem:[#allocation69_spill] sm:$0xff] %v6152_v42  ;;  %v1082_v24 = vsel %vm1036_vm5, %v1078_v54, %v6152_v42 }
 0x188   : > { %v6157_v3 = vadd.f32 %v1082_v24, %v6001_v17  ;;  %2804 = vrot.lane.b32.xlu1 %v2796_v43, %s5247_s12  ;;  %2627 = vrot.lane.b32.xlu0 %v2619_v41, %s5248_s13  ;;  %v1556_v17 = vmul.f32 %v5927_v35, %v6092_v53  ;;  %v1469_v24 = vmul.f32 %v5909_v37, %v1466_v30 }
 0x18a   : > { %v6163_v55 = vpop.permute.xlu1 %1101  ;;  %v1100_v18 = vpop.permute.xlu0 %1099 }
 0x18b   : > { %8874 = vst [vmem:[#allocation70_spill] sm:$0xff] %v6163_v55  ;;  %v1103_v16 = vsel %vm1036_vm5, %v1098_v39, %v1100_v18  ;;  %v1104_v54 = vsel %vm1036_vm5, %v1100_v18, %v6163_v55 }
 0x18c   : > { %v6171_v43 = vadd.f32 %v1103_v16, %v6014_v52  ;;  %v6174_v41 = vadd.f32 %v1104_v54, %v6017_v2  ;;  %1475 = vrot.lane.b32.xlu1 %v1468_v61, %s8720_s8  ;;  %1473 = vrot.lane.b32.xlu0 %v1467_v62, %s8720_s8  ;;  %v1733_v16 = vmul.f32 %v5927_v35, %v6090_v29 }
 0x18d   : > { %v1555_v52 = vmul.f32 %v5905_v4, %v6092_v53  ;;  %v1732_v62 = vmul.f32 %v5905_v4, %v6090_v29  ;;  %v1577_v53 = vstv %s4597_s14  ;;  %v1909_v29 = vmul.f32 %v5905_v4, %v6106_v23  ;;  %s6404_s14 = sld [smem:[#allocation2 + $0x1c]] }
 0x18e   : > { %v1122_v39 = vpop.permute.xlu1 %1121  ;;  %v1120_v42 = vpop.permute.xlu0 %1119 }
 0x18f   : > { %v1125_v18 = vsel %vm1036_vm5, %v1120_v42, %v1122_v39 }
 0x190   : > { %v6181_v55 = vadd.f32 %v1125_v18, %v6024_v15  ;;  %1563 = vrot.lane.b32.xlu1 %v1556_v17, %s8722_s29  ;;  %1477 = vrot.lane.b32.xlu0 %v1469_v24, %s8720_s8  ;;  %v1910_v15 = vmul.f32 %v5927_v35, %v6106_v23 }
 0x192   : > { %v1142_v2 = vpop.permute.xlu1 %1141  ;;  %v6189_v30 = vpop.permute.xlu0 %1123 }
 0x193   : > { %8875 = vst [vmem:[#allocation71_spill] sm:$0xff] %v6189_v30  ;;  %v1126_v61 = vsel %vm1036_vm5, %v1122_v39, %v6189_v30  ;;  %v1580_v39 = vmul.f32 %v5909_v37, %v1577_v53 }
 0x194   : > { %v6194_v42 = vadd.f32 %v1126_v61, %v6035_v33  ;;  %1740 = vrot.lane.b32.xlu1 %v1733_v16, %s5239_s27  ;;  %1561 = vrot.lane.b32.xlu0 %v1555_v52, %s8722_s29 }
 0x196   : > { %v6202_v54 = vpop.permute.xlu1 %1145  ;;  %v1144_v17 = vpop.permute.xlu0 %1143 }
 0x197   : > { %8876 = vst [vmem:[#allocation72_spill] sm:$0xff] %v6202_v54  ;;  %v1147_v24 = vsel %vm1036_vm5, %v1142_v2, %v1144_v17  ;;  %v1148_v33 = vsel %vm1036_vm5, %v1144_v17, %v6202_v54  ;;  %v6310_v54 = vld [vmem:[%s8632_s3 + $0x68] sm:$0xff] }
 0x198   : > { %v6209_v18 = vadd.f32 %v1147_v24, %v6048_v47  ;;  %v6212_v16 = vadd.f32 %v1148_v33, %v6051_v14  ;;  %1917 = vrot.lane.b32.xlu1 %v1910_v15, %s5243_s9  ;;  %1738 = vrot.lane.b32.xlu0 %v1732_v62, %s5239_s27  ;;  %v2086_v47 = vmul.f32 %v5905_v4, %v6104_v59  ;;  %v1754_v15 = vstv %s4605_s20  ;;  %s6540_s20 = sld [smem:[#allocation2 + $0x2c]] }
 0x199   : > { %v2087_v14 = vmul.f32 %v5927_v35, %v6104_v59  ;;  %v1757_v33 = vmul.f32 %v5909_v37, %v1754_v15 }
 0x19a   : > { %v1166_v52 = vpop.permute.xlu1 %1165  ;;  %v1164_v2 = vpop.permute.xlu0 %1163 }
 0x19b   : > { %v1169_v61 = vsel %vm1036_vm5, %v1164_v2, %v1166_v52 }
 0x19c   : > { %v6220_v17 = vadd.f32 %v1169_v61, %v6058_v5  ;;  %1588 = vrot.lane.b32.xlu1 %v1580_v39, %s8722_s29  ;;  %1915 = vrot.lane.b32.xlu0 %v1909_v29, %s5243_s9  ;;  %v1579_v39 = vmul.f32 %v5927_v35, %v1577_v53 }
 0x19e   : > { %v1186_v23 = vpop.permute.xlu1 %1185  ;;  %v6228_v62 = vpop.permute.xlu0 %1167 }
 0x19f   : > { %8877 = vst [vmem:[#allocation73_spill] sm:$0xff] %v6228_v62  ;;  %v1170_v24 = vsel %vm1036_vm5, %v1166_v52, %v6228_v62  ;;  %v1756_v62 = vmul.f32 %v5927_v35, %v1754_v15 }
 0x1a0   : > { %v6233_v5 = vadd.f32 %v1170_v24, %v6069_v51  ;;  %2092 = vrot.lane.b32.xlu1 %v2086_v47, %s5242_s30  ;;  %2094 = vrot.lane.b32.xlu0 %v2087_v14, %s5242_s30  ;;  %v1578_v51 = vmul.f32 %v5905_v4, %v1577_v53  ;;  %v2264_v14 = vmul.f32 %v5927_v35, %v6120_v1  ;;  %v6255_v24 = vstv %s4598_s22  ;;  %s6508_s22 = sld [smem:[#allocation2 + $0x1d]] }
 0x1a1   : > { %v2263_v53 = vmul.f32 %v5905_v4, %v6120_v1 }
 0x1a2   : > { %v6239_v59 = vpop.permute.xlu1 %1189  ;;  %v1188_v29 = vpop.permute.xlu0 %1187 }
 0x1a3   : > { %8878 = vst [vmem:[#allocation74_spill] sm:$0xff] %v6239_v59  ;;  %v1191_v2 = vsel %vm1036_vm5, %v1186_v23, %v1188_v29  ;;  %v1192_v52 = vsel %vm1036_vm5, %v1188_v29, %v6239_v59 }
 0x1a4   : > { %v6246_v61 = vadd.f32 %v1191_v2, %v6082_v21  ;;  %v6249_v47 = vadd.f32 %v1192_v52, %v6085_v22  ;;  %1765 = vrot.lane.b32.xlu1 %v1757_v33, %s5239_s27  ;;  %1586 = vrot.lane.b32.xlu0 %v1579_v39, %s8722_s29  ;;  %v6264_v21 = vld [vmem:[%s8632_s3 + $0xf8] sm:$0xff]  ;;  %v1602_v22 = vmul.f32 %v5909_v37, %v6255_v24  ;;  %v6280_v39 = vld [vmem:[%s8632_s3 + $0xf0] sm:$0xff] }
 0x1a5   : > { %8881 = vst [vmem:[#allocation77_spill] sm:$0xff] %v6264_v21  ;;  %v6275_v33 = vld [vmem:[%s8632_s3 + $0x78] sm:$0xff]  ;;  %v6282_v2 = vstv %s4613_s23  ;;  %4681 = vmatprep.subr.mxu0 %v6264_v21  ;;  %4718 = vmatprep.subr.mxu1 %v6264_v21  ;;  %s6371_s23 = sld [smem:[#allocation2 + $0x2a]] }
 0x1a6   : > { %v6257_v23 = vpop.permute.xlu1 %1209  ;;  %v6259_v29 = vpop.permute.xlu0 %1207  ;;  %4682 = vmatpush3.msra.mxu0 %v6275_v33  ;;  %v1934_v59 = vmul.f32 %v5909_v37, %v6282_v2  ;;  %v6424_v21 = vld [vmem:[%s8632_s3 + $0xb8] sm:$0xff] }
 0x1a7   : > { %8879 = vst [vmem:[#allocation75_spill] sm:$0xff] %v6257_v23  ;;  %8880 = vst [vmem:[#allocation76_spill] sm:$0xff] %v6259_v29  ;;  %4683 = vmatprep.subr.mxu0 %v6280_v39  ;;  %v1932_v29 = vmul.f32 %v5905_v4, %v6282_v2 }
 0x1a8   : > { %1584 = vrot.lane.b32.xlu1 %v1578_v51, %s8722_s29  ;;  %2271 = vrot.lane.b32.xlu0 %v2264_v14, %s5246_s11  ;;  %v6294_v51 = vld [vmem:[%s8632_s3 + $0x70] sm:$0xff]  ;;  %v6300_v14 = vld [vmem:[%s8632_s3 + $0xe8] sm:$0xff] }
 0x1a9   : > { %4684 = vmatpush3.msra.mxu0 %v6294_v51 }
 0x1aa   : > { %v6286_v52 = vpop.permute.xlu1 %1230  ;;  %v6288_v1 = vpop.permute.xlu0 %1211  ;;  %4685 = vmatprep.subr.mxu0 %v6300_v14 }
 0x1ab   : > { %8882 = vst [vmem:[#allocation78_spill] sm:$0xff] %v6286_v52  ;;  %4686 = vmatpush3.msra.mxu0 %v6310_v54 }
 0x1ac   : > { %1610 = vrot.lane.b32.xlu1 %v1602_v22, %s8722_s29  ;;  %2269 = vrot.lane.b32.xlu0 %v2263_v53, %s5246_s11  ;;  %v6321_v22 = vld [vmem:[%s8632_s3 + $0xe0] sm:$0xff] }
 0x1ad   : > { %v6327_v53 = vld [vmem:[%s8632_s3 + $0x60] sm:$0xff]  ;;  %4687 = vmatprep.subr.mxu0 %v6321_v22 }
 0x1ae   : > { %v6313_v30 = vpop.permute.xlu1 %1234  ;;  %v6315_v52 = vpop.permute.xlu0 %1232  ;;  %4688 = vmatpush3.msra.mxu0 %v6327_v53 }
 0x1af   : > { %8883 = vst [vmem:[#allocation79_spill] sm:$0xff] %v6313_v30  ;;  %8884 = vst [vmem:[#allocation80_spill] sm:$0xff] %v6315_v52  ;;  %v1755_v52 = vmul.f32 %v5905_v4, %v1754_v15  ;;  %v2441_v30 = vmul.f32 %v5927_v35, %v6118_v50  ;;  %v6346_v15 = vld [vmem:[%s8632_s3 + $0x58] sm:$0xff]  ;;  %4689 = vmatprep.subr.mxu0 %v6337_v44 }
 0x1b0   : > { %1942 = vrot.lane.b32.xlu1 %v1934_v59, %s5243_s9  ;;  %1763 = vrot.lane.b32.xlu0 %v1756_v62, %s5239_s27  ;;  %v6353_v59 = vld [vmem:[%s8632_s3 + $0xd0] sm:$0xff] }
 0x1b1   : > { %4690 = vmatpush3.msra.mxu0 %v6346_v15 }
 0x1b2   : > { %v1255_v57 = vpop.permute.xlu1 %1254  ;;  %v1253_v26 = vpop.permute.xlu0 %1252  ;;  %4691 = vmatprep.subr.mxu0 %v6353_v59 }
 0x1b3   : > { %v1258_v62 = vsel %vm1213_vm6, %v1253_v26, %v1255_v57  ;;  %v2440_v26 = vmul.f32 %v5905_v4, %v6118_v50  ;;  %v6380_v50 = vld [vmem:[%s8632_s3 + $0xc8] sm:$0xff]  ;;  %4692 = vmatpush3.msra.mxu0 %v6367_v7 }
 0x1b4   : > { %v6356_v31 = vadd.f32 %v1258_v62, %v6144_v45  ;;  %1761 = vrot.lane.b32.xlu1 %v1755_v52, %s5239_s27  ;;  %2448 = vrot.lane.b32.xlu0 %v2441_v30, %s5245_s10  ;;  %v6388_v62 = vld [vmem:[%s8632_s3 + $0x48] sm:$0xff] }
 0x1b5   : > { %4693 = vmatprep.subr.mxu0 %v6380_v50 }
 0x1b6   : > { %8885 = vst [vmem:[#allocation81_spill] sm:$0xff] %v6356_v31  ;;  %v1275_v45 = vpop.permute.xlu1 %1274  ;;  %v6374_v52 = vpop.permute.xlu0 %1256  ;;  %4694 = vmatpush3.msra.mxu0 %v6388_v62 }
 0x1b7   : > { %8886 = vst [vmem:[#allocation82_spill] sm:$0xff] %v6374_v52  ;;  %v1259_v30 = vsel %vm1213_vm6, %v1255_v57, %v6374_v52  ;;  %v1933_v57 = vmul.f32 %v5927_v35, %v6282_v2  ;;  %v6402_v52 = vld [vmem:[%s8632_s3 + $0xc0] sm:$0xff]  ;;  %v2618_v2 = vmul.f32 %v5927_v35, %v6138_v40 }
 0x1b8   : > { %v6391_v31 = vadd.f32 %v1259_v30, %v6157_v3  ;;  %1787 = vrot.lane.b32.xlu1 %v1779_v11, %s5239_s27  ;;  %2446 = vrot.lane.b32.xlu0 %v2440_v26, %s5245_s10  ;;  %v6413_v26 = vld [vmem:[%s8632_s3 + $0x40] sm:$0xff] }
 0x1b9   : > { %4695 = vmatprep.subr.mxu0 %v6402_v52 }
 0x1ba   : > { %8887 = vst [vmem:[#allocation83_spill] sm:$0xff] %v6391_v31  ;;  %v6407_v3 = vpop.permute.xlu1 %1278  ;;  %v1277_v11 = vpop.permute.xlu0 %1276  ;;  %4696 = vmatpush3.msra.mxu0 %v6413_v26 }
 0x1bb   : > { %8888 = vst [vmem:[#allocation84_spill] sm:$0xff] %v6407_v3  ;;  %v1280_v30 = vsel %vm1213_vm6, %v1275_v45, %v1277_v11  ;;  %v1281_v31 = vsel %vm1213_vm6, %v1277_v11, %v6407_v3  ;;  %v6439_v45 = vld [vmem:[%s8632_s3 + $0x38] sm:$0xff]  ;;  %v6442_v11 = vstv %s6371_s23  ;;  %4697 = vmatprep.subr.mxu0 %v6424_v21  ;;  %v6473_v3 = vstv %s6404_s14  ;;  %s4645_s23 = sld [smem:[#allocation2 + $0x1e]] }
 0x1bc   : > { %v6427_v23 = vadd.f32 %v1280_v30, %v6171_v43  ;;  %v6430_v48 = vadd.f32 %v1281_v31, %v6174_v41  ;;  %2119 = vrot.lane.b32.xlu1 %v2111_v32, %s5242_s30  ;;  %1940 = vrot.lane.b32.xlu0 %v1933_v57, %s5243_s9  ;;  %v6449_v32 = vld [vmem:[%s8632_s3 + $0xb0] sm:$0xff]  ;;  %v2288_v60 = vmul.f32 %v5909_v37, %v6473_v3  ;;  %s4599_s14 = sld [smem:[#allocation2 + $0x38]] }
 0x1bd   : > { %4698 = vmatpush3.msra.mxu0 %v6439_v45  ;;  %v6456_v57 = vld [vmem:[%s8632_s3 + $0x30] sm:$0xff]  ;;  %v2287_v38 = vmul.f32 %v5927_v35, %v6473_v3 }
 0x1be   : > { %8889 = vst [vmem:[#allocation85_spill] sm:$0xff] %v6427_v23  ;;  %8890 = vst [vmem:[#allocation86_spill] sm:$0xff] %v6430_v48  ;;  %v1299_v43 = vpop.permute.xlu1 %1298  ;;  %v1297_v31 = vpop.permute.xlu0 %1296  ;;  %v1956_v48 = vmul.f32 %v5909_v37, %v6442_v11  ;;  %v6470_v23 = vld [vmem:[%s8632_s3 + $0xa8] sm:$0xff]  ;;  %4699 = vmatprep.subr.mxu0 %v6449_v32 }
 0x1bf   : > { %v1302_v41 = vsel %vm1213_vm6, %v1297_v31, %v1299_v43  ;;  %v2617_v31 = vmul.f32 %v5905_v4, %v6138_v40  ;;  %4700 = vmatpush3.msra.mxu0 %v6456_v57  ;;  %v6484_v40 = vld [vmem:[%s8632_s3 + $0x28] sm:$0xff] }
 0x1c0   : > { %v6459_v30 = vadd.f32 %v1302_v41, %v6181_v55  ;;  %1938 = vrot.lane.b32.xlu1 %v1932_v29, %s5243_s9  ;;  %2625 = vrot.lane.b32.xlu0 %v2618_v2, %s5248_s13  ;;  %v6492_v41 = vld [vmem:[%s8632_s3 + $0xa0] sm:$0xff] }
 0x1c1   : > { %4701 = vmatprep.subr.mxu0 %v6470_v23 }
 0x1c2   : > { %8891 = vst [vmem:[#allocation87_spill] sm:$0xff] %v6459_v30  ;;  %v1319_v55 = vpop.permute.xlu1 %1318  ;;  %v6478_v29 = vpop.permute.xlu0 %1300  ;;  %4702 = vmatpush3.msra.mxu0 %v6484_v40 }
 0x1c3   : > { %8892 = vst [vmem:[#allocation88_spill] sm:$0xff] %v6478_v29  ;;  %v1303_v2 = vsel %vm1213_vm6, %v1299_v43, %v6478_v29  ;;  %v2110_v43 = vmul.f32 %v5927_v35, %v6369_v12  ;;  %v6506_v29 = vld [vmem:[%s8632_s3 + $0x20] sm:$0xff]  ;;  %4703 = vmatprep.subr.mxu0 %v6492_v41  ;;  %v2795_v12 = vmul.f32 %v5927_v35, %v6136_v34 }
 0x1c4   : > { %v6495_v30 = vadd.f32 %v1303_v2, %v6194_v42  ;;  %1964 = vrot.lane.b32.xlu1 %v1956_v48, %s5243_s9  ;;  %2623 = vrot.lane.b32.xlu0 %v2617_v31, %s5248_s13  ;;  %v6517_v31 = vld [vmem:[%s8632_s3 + $0x98] sm:$0xff] }
 0x1c5   : > { %4704 = vmatpush3.msra.mxu0 %v6506_v29 }
 0x1c6   : > { %8893 = vst [vmem:[#allocation89_spill] sm:$0xff] %v6495_v30  ;;  %v6511_v42 = vpop.permute.xlu1 %1322  ;;  %v1321_v48 = vpop.permute.xlu0 %1320  ;;  %4705 = vmatprep.subr.mxu0 %v6517_v31 }
 0x1c7   : > { %8894 = vst [vmem:[#allocation90_spill] sm:$0xff] %v6511_v42  ;;  %v1324_v2 = vsel %vm1213_vm6, %v1319_v55, %v1321_v48  ;;  %v1325_v30 = vsel %vm1213_vm6, %v1321_v48, %v6511_v42  ;;  %v6545_v55 = vld [vmem:[%s8632_s3 + $0x90] sm:$0xff]  ;;  %4706 = vmatpush3.msra.mxu0 %v6528_v49  ;;  %v6562_v48 = vld [vmem:[%s8632_s3 + $0x88] sm:$0xff] }
 0x1c8   : > { %v6531_v10 = vadd.f32 %v1324_v2, %v6209_v18  ;;  %v6534_v28 = vadd.f32 %v1325_v30, %v6212_v16  ;;  %2296 = vrot.lane.b32.xlu1 %v2288_v60, %s5246_s11  ;;  %2117 = vrot.lane.b32.xlu0 %v2110_v43, %s5242_s30  ;;  %v6548_v18 = vstv %s6475_s6  ;;  %v6555_v60 = vld [vmem:[%s8632_s3 + $0x10] sm:$0xff]  ;;  %8897 = vst [vmem:[#allocation93_spill] sm:$0xff] %v6562_v48  ;;  %s4607_s6 = sld [smem:[#allocation2 + $0x39]] }
 0x1c9   : > { %4707 = vmatprep.subr.mxu0 %v6545_v55  ;;  %v2133_v42 = vmul.f32 %v5909_v37, %v6548_v18 }
 0x1ca   : > { %8895 = vst [vmem:[#allocation91_spill] sm:$0xff] %v6531_v10  ;;  %8896 = vst [vmem:[#allocation92_spill] sm:$0xff] %v6534_v28  ;;  %v1343_v16 = vpop.permute.xlu1 %1342  ;;  %v1341_v30 = vpop.permute.xlu0 %1340  ;;  %v6576_v28 = vld [vmem:[%s8632_s3 + $0x8] sm:$0xff]  ;;  %v2462_v10 = vstv %s6508_s22  ;;  %4708 = vmatpush3.msra.mxu0 %v6555_v60  ;;  %s4615_s22 = sld [smem:[#allocation2 + $0x3a]] }
 0x1cb   : > { %v1346_v43 = vsel %vm1213_vm6, %v1341_v30, %v1343_v16  ;;  %v2794_v30 = vmul.f32 %v5905_v4, %v6136_v34  ;;  %8899 = vst [vmem:[#allocation95_spill] sm:$0xff] %v6576_v28  ;;  %4709 = vmatprep.subr.mxu0 %v6562_v48  ;;  %v2465_v48 = vmul.f32 %v5909_v37, %v2462_v10 }
 0x1cc   : > { %v6565_v2 = vadd.f32 %v1346_v43, %v6220_v17  ;;  %2115 = vrot.lane.b32.xlu1 %v2109_v13, %s5242_s30  ;;  %2802 = vrot.lane.b32.xlu0 %v2795_v12, %s5247_s12  ;;  %v6586_v12 = vld [vmem:[%s8632_s3 + $0x80] sm:$0xff] }
 0x1cd   : > { %8901 = vst [vmem:[#allocation97_spill] sm:$0xff] %v6586_v12  ;;  %4710 = vmatpush3.msra.mxu0 %v6576_v28  ;;  %v6594_v43 = vld [vmem:[%s8632_s3] sm:$0xff] }
 0x1ce   : > { %8898 = vst [vmem:[#allocation94_spill] sm:$0xff] %v6565_v2  ;;  %v1363_v17 = vpop.permute.xlu1 %1362  ;;  %v6580_v13 = vpop.permute.xlu0 %1344  ;;  %8902 = vst [vmem:[#allocation98_spill] sm:$0xff] %v6594_v43  ;;  %4711 = vmatprep.subr.mxu0 %v6586_v12 }
 0x1cf   : > { %8900 = vst [vmem:[#allocation96_spill] sm:$0xff] %v6580_v13  ;;  %v1347_v34 = vsel %vm1213_vm6, %v1343_v16, %v6580_v13  ;;  %v6605_v16 = vstv %s6540_s20  ;;  %4712 = vmatpush3.msra.mxu0 %v6594_v43  ;;  %v2639_v43 = vstv %s4645_s23  ;;  %s4653_s20 = sld [smem:[#allocation2 + $0x1f]] }
 0x1d0   : > { %v6597_v2 = vadd.f32 %v1347_v34, %v6233_v5  ;;  %2141 = vrot.lane.b32.xlu1 %v2133_v42, %s5242_s30  ;;  %2800 = vrot.lane.b32.xlu0 %v2794_v30, %s5247_s12  ;;  %v2310_v30 = vmul.f32 %v5909_v37, %v6605_v16  ;;  %v8905_v34 = vmov 0.0   ;;  %s4654_s23 = sld [smem:[#allocation2 + $0x2f]] }
 0x1d1   : > { %4982 = vmatprep.subr.mxu0 %v8905_v34  ;;  %v6658_v34 = vstv %s4646_s5  ;;  %s4608_s5 = sld [smem:[#allocation2 + $0x49]] }
 0x1d2   : > { %8903 = vst [vmem:[#allocation99_spill] sm:$0xff] %v6597_v2  ;;  %v6608_v13 = vpop.permute.xlu1 %1366  ;;  %v1365_v28 = vpop.permute.xlu0 %1364  ;;  %8912 = vst [vmem:[#allocation107_spill] sm:$0xff] %v6658_v34 }
 0x1d3   : > { %8904 = vst [vmem:[#allocation100_spill] sm:$0xff] %v6608_v13  ;;  %v1368_v5 = vsel %vm1213_vm6, %v1363_v17, %v1365_v28  ;;  %v1369_v42 = vsel %vm1213_vm6, %v1365_v28, %v6608_v13  ;;  %v2286_v17 = vmul.f32 %v5905_v4, %v6473_v3 }
 0x1d4   : > { %v6618_v2 = vadd.f32 %v1368_v5, %v6246_v61  ;;  %v6621_v12 = vadd.f32 %v1369_v42, %v6249_v47  ;;  %2473 = vrot.lane.b32.xlu1 %v2465_v48, %s5245_s10  ;;  %2294 = vrot.lane.b32.xlu0 %v2287_v38, %s5246_s11  ;;  %v2642_v61 = vmul.f32 %v5909_v37, %v2639_v43  ;;  %v6637_v48 = vstv %s4638_s7  ;;  %s4600_s7 = sld [smem:[#allocation2 + $0x48]] }
 0x1d5   : > { %v2464_v47 = vmul.f32 %v5927_v35, %v2462_v10  ;;  %v254_v38 = vmul.f32 %v5909_v37, %v5398_v20  ;;  %v2487_v42 = vmul.f32 %v5909_v37, %v6637_v48 }
 0x1d6   : > { %8906 = vst [vmem:[#allocation101_spill] sm:$0xff] %v6618_v2  ;;  %8907 = vst [vmem:[#allocation102_spill] sm:$0xff] %v6621_v12  ;;  %v6627_v28 = vpop.permute.xlu1 %1386  ;;  %v6629_v13 = vpop.permute.xlu0 %1384  ;;  %v2816_v2 = vstv %s4653_s20  ;;  %s4623_s20 = sld [smem:[#allocation2 + $0x3b]] }
 0x1d7   : > { %8908 = vst [vmem:[#allocation103_spill] sm:$0xff] %v6629_v13  ;;  %v1798_v13 = vstv %s4607_s6  ;;  %s4639_s6 = sld [smem:[#allocation2 + $0x3d]] }
 0x1d8   : > { %2318 = vrot.lane.b32.xlu1 %v2310_v30, %s5246_s11  ;;  %2292 = vrot.lane.b32.xlu0 %v2286_v17, %s5246_s11  ;;  %v2463_v30 = vmul.f32 %v5905_v4, %v2462_v10  ;;  %v257_v17 = vadd.f32 %v254_v38, %v5408_v25 }
 0x1da   : > { %v6639_v3 = vpop.permute.xlu1 %1407  ;;  %v6641_v5 = vpop.permute.xlu0 %1388 }
 0x1db   : > { %8909 = vst [vmem:[#allocation104_spill] sm:$0xff] %v6639_v3  ;;  %v336_v3 = vadd.f32 %v5550_v63, %v257_v17 }
 0x1dc   : > { %2650 = vrot.lane.b32.xlu1 %v2642_v61, %s5248_s13  ;;  %2471 = vrot.lane.b32.xlu0 %v2464_v47, %s5245_s10  ;;  %v2819_v61 = vmul.f32 %v5909_v37, %v2816_v2  ;;  %v2641_v47 = vmul.f32 %v5927_v35, %v2639_v43 }
 0x1dd   : > { %v513_v38 = vadd.f32 %v5671_v46, %v336_v3  ;;  %v6679_v3 = vld [vmem:[%s5365_s28] sm:$0xff] }
 0x1de   : > { %v6649_v20 = vpop.permute.xlu1 %1411  ;;  %v6651_v12 = vpop.permute.xlu0 %1409 }
 0x1df   : > { %8910 = vst [vmem:[#allocation105_spill] sm:$0xff] %v6649_v20  ;;  %8911 = vst [vmem:[#allocation106_spill] sm:$0xff] %v6651_v12  ;;  %v690_v17 = vadd.f32 %v5839_v9, %v513_v38 }
 0x1e0   : > { %2495 = vrot.lane.b32.xlu1 %v2487_v42, %s5245_s10  ;;  %2469 = vrot.lane.b32.xlu0 %v2463_v30, %s5245_s10  ;;  %v2664_v42 = vmul.f32 %v5909_v37, %v6658_v34  ;;  %v2640_v30 = vmul.f32 %v5905_v4, %v2639_v43  ;;  %v2817_v37 = vmul.f32 %v6679_v3, %v2816_v2 }
 0x1e1   : > { %v2818_v4 = vmul.f32 %v5927_v35, %v2816_v2 }
 0x1e2   : > { %v6660_v25 = vpop.permute.xlu1 %1431  ;;  %v6662_v10 = vpop.permute.xlu0 %1429 }
 0x1e3   : > { %8913 = vst [vmem:[#allocation108_spill] sm:$0xff] %v6660_v25  ;;  %8914 = vst [vmem:[#allocation109_spill] sm:$0xff] %v6662_v10  ;;  %v867_v10 = vadd.f32 %v5974_v56, %v690_v17 }
 0x1e4   : > { %2827 = vrot.lane.b32.xlu1 %v2819_v61, %s5247_s12  ;;  %2648 = vrot.lane.b32.xlu0 %v2641_v47, %s5248_s13  ;;  %v6684_v61 = vstv %s4654_s23  ;;  %s4631_s23 = sld [smem:[#allocation2 + $0x3c]] }
 0x1e5   : > { %v1044_v43 = vadd.f32 %v6110_v6, %v867_v10  ;;  %8917 = vst [vmem:[#allocation112_spill] sm:$0xff] %v6684_v61 }
 0x1e6   : > { %v6671_v12 = vpop.permute.xlu1 %1451  ;;  %v6673_v25 = vpop.permute.xlu0 %1433 }
 0x1e7   : > { %8915 = vst [vmem:[#allocation110_spill] sm:$0xff] %v6671_v12  ;;  %8916 = vst [vmem:[#allocation111_spill] sm:$0xff] %v6673_v25  ;;  %v1221_v17 = vadd.f32 %v6288_v1, %v1044_v43 }
 0x1e8   : > { %2672 = vrot.lane.b32.xlu1 %v2664_v42, %s5248_s13  ;;  %2646 = vrot.lane.b32.xlu0 %v2640_v30, %s5248_s13  ;;  %v1601_v42 = vmul.f32 %v5927_v35, %v6255_v24  ;;  %v6696_v30 = vld [vmem:[%s5365_s28 + $0x10] sm:$0xff] }
 0x1e9   : > { %v2841_v2 = vmul.f32 %v6696_v30, %v6684_v61  ;;  %v1398_v10 = vadd.f32 %v6641_v5, %v1221_v17 }
 0x1ea   : > { %v6686_v47 = vpop.permute.xlu1 %1455  ;;  %v6688_v38 = vpop.permute.xlu0 %1453 }
 0x1eb   : > { %8918 = vst [vmem:[#allocation113_spill] sm:$0xff] %v6686_v47  ;;  %8919 = vst [vmem:[#allocation114_spill] sm:$0xff] %v6688_v38  ;;  %v1621_v47 = vstv %s4599_s14  ;;  %s4616_s14 = sld [smem:[#allocation2 + $0x4a]] }
 0x1ec   : > { %2823 = vrot.lane.b32.xlu1 %v2817_v37, %s5247_s12  ;;  %2825 = vrot.lane.b32.xlu0 %v2818_v4, %s5247_s12  ;;  %v1624_v35 = vmul.f32 %v6696_v30, %v1621_v47  ;;  %v6710_v4 = vld [vmem:[%s5365_s28 + $0x8] sm:$0xff] }
 0x1ed   : > { %v1623_v43 = vmul.f32 %v6710_v4, %v1621_v47 }
 0x1ee   : > { %v6701_v12 = vpop.permute.xlu1 %1742  ;;  %v6703_v38 = vpop.permute.xlu0 %1565 }
 0x1ef   : > { %8920 = vst [vmem:[#allocation115_spill] sm:$0xff] %v6701_v12  ;;  %v1575_v37 = vadd.f32 %v6703_v38, %v1398_v10 }
 0x1f0   : > { %1608 = vrot.lane.b32.xlu1 %v1601_v42, %s8722_s29  ;;  %2849 = vrot.lane.b32.xlu0 %v2841_v2, %s5247_s12  ;;  %v1622_v42 = vmul.f32 %v6679_v3, %v1621_v47  ;;  %v1600_v2 = vmul.f32 %v6679_v3, %v6255_v24  ;;  %v1778_v47 = vmul.f32 %v6710_v4, %v6339_v58 }
 0x1f1   : > { %v1752_v17 = vadd.f32 %v6701_v12, %v1575_v37 }
 0x1f2   : > { %v6714_v25 = vpop.permute.xlu1 %2096  ;;  %v6716_v20 = vpop.permute.xlu0 %1919 }
 0x1f3   : > { %v1929_v61 = vadd.f32 %v6716_v20, %v1752_v17 }
 0x1f4   : > { %1632 = vrot.lane.b32.xlu1 %v1624_v35, %s8722_s29  ;;  %1630 = vrot.lane.b32.xlu0 %v1623_v43, %s8722_s29  ;;  %v1800_v35 = vmul.f32 %v6710_v4, %v1798_v13 }
 0x1f5   : > { %v2106_v10 = vadd.f32 %v6714_v25, %v1929_v61 }
 0x1f6   : > { %v6725_v34 = vpop.permute.xlu1 %2450  ;;  %v6727_v37 = vpop.permute.xlu0 %2273 }
 0x1f7   : > { %8921 = vst [vmem:[#allocation116_spill] sm:$0xff] %v6725_v34  ;;  %8922 = vst [vmem:[#allocation117_spill] sm:$0xff] %v6727_v37  ;;  %v2283_v12 = vadd.f32 %v6727_v37, %v2106_v10 }
 0x1f8   : > { %1628 = vrot.lane.b32.xlu1 %v1622_v42, %s8722_s29  ;;  %1606 = vrot.lane.b32.xlu0 %v1600_v2, %s8722_s29  ;;  %v1777_v42 = vmul.f32 %v6679_v3, %v6339_v58  ;;  %v1801_v2 = vmul.f32 %v6696_v30, %v1798_v13  ;;  %v1975_v58 = vstv %s4615_s22  ;;  %s6861_s22 = sld [smem:[#allocation2 + $0x10]] }
 0x1f9   : > { %v2460_v24 = vadd.f32 %v6725_v34, %v2283_v12 }
 0x1fa   : > { %v6736_v61 = vpop.permute.xlu1 %2804  ;;  %v6738_v43 = vpop.permute.xlu0 %2627 }
 0x1fb   : > { %v2637_v17 = vadd.f32 %v6738_v43, %v2460_v24 }
 0x1fc   : > { %1807 = vrot.lane.b32.xlu1 %v1800_v35, %s5239_s27  ;;  %1785 = vrot.lane.b32.xlu0 %v1778_v47, %s5239_s27  ;;  %v1955_v35 = vmul.f32 %v6710_v4, %v6442_v11  ;;  %v1799_v47 = vmul.f32 %v6679_v3, %v1798_v13  ;;  %v1977_v13 = vmul.f32 %v6710_v4, %v1975_v58 }
 0x1fd   : > { %v2814_v10 = vadd.f32 %v6736_v61, %v2637_v17 }
 0x1fe   : > { %v6747_v37 = vpop.permute.xlu1 %1475  ;;  %v6749_v12 = vpop.permute.xlu0 %1473 }
 0x1ff   : > { %8923 = vst [vmem:[#allocation118_spill] sm:$0xff] %v6747_v37  ;;  %8924 = vst [vmem:[#allocation119_spill] sm:$0xff] %v6749_v12  ;;  %v2971_v34 = vmax.f32 %v2814_v10, 0.0  ;;  %v6779_v10 = vstv %s4600_s7  ;;  %s6876_s7 = sld [smem:[#allocation5 + $0x1]]  ;;  %v9016_v12 = vld [vmem:[#allocation109_spill] sm:$0xff]  ;;  %v9018_v37 = vld [vmem:[#allocation110_spill] sm:$0xff] }
 0x200   : > { %1783 = vrot.lane.b32.xlu1 %v1777_v42, %s5239_s27  ;;  %1809 = vrot.lane.b32.xlu0 %v1801_v2, %s5239_s27  ;;  %v1978_v42 = vmul.f32 %v6696_v30, %v1975_v58 }
 0x201   : > { %4980 = vmatmul.mubr.msk.f32.vlgmr.msra.gmra.mxu1 %vm3005_vm7, %v2971_v34 }
 0x202   : > { %v6757_v24 = vpop.permute.xlu1 %1563  ;;  %v6759_v17 = vpop.permute.xlu0 %1477  ;;  %4719 = vmatpush3.msra.mxu1 %v6275_v33  ;;  %v1976_v33 = vmul.f32 %v6679_v3, %v1975_v58 }
 0x203   : > { %8925 = vst [vmem:[#allocation120_spill] sm:$0xff] %v6759_v17  ;;  %4720 = vmatprep.subr.mxu1 %v6280_v39  ;;  %v1954_v39 = vmul.f32 %v6679_v3, %v6442_v11  ;;  %v2152_v11 = vstv %s4623_s20  ;;  %s6887_s20 = sld [smem:[#allocation2 + $0x4b]] }
 0x204   : > { %1962 = vrot.lane.b32.xlu1 %v1955_v35, %s5243_s9  ;;  %1805 = vrot.lane.b32.xlu0 %v1799_v47, %s5239_s27 }
 0x205   : > { %4721 = vmatpush3.msra.mxu1 %v6294_v51 }
 0x206   : > { %v6768_v34 = vpop.permute.xlu1 %1740  ;;  %v6770_v2 = vpop.permute.xlu0 %1561  ;;  %4722 = vmatprep.subr.mxu1 %v6300_v14  ;;  %v1646_v14 = vmul.f32 %v6696_v30, %v6779_v10 }
 0x207   : > { %4723 = vmatpush3.msra.mxu1 %v6310_v54  ;;  %v2132_v54 = vmul.f32 %v6710_v4, %v6548_v18 }
 0x208   : > { %1986 = vrot.lane.b32.xlu1 %v1978_v42, %s5243_s9  ;;  %1984 = vrot.lane.b32.xlu0 %v1977_v13, %s5243_s9  ;;  %v6817_v42 = vstv %s4608_s5  ;;  %s6910_s5 = sld [smem:[#allocation2 + $0x3e]] }
 0x209   : > { %4724 = vmatprep.subr.mxu1 %v6321_v22 }
 0x20a   : > { %v6782_v51 = vpop.permute.xlu1 %1917  ;;  %v6784_v35 = vpop.permute.xlu0 %1738  ;;  %4725 = vmatpush3.msra.mxu1 %v6327_v53  ;;  %v2154_v53 = vmul.f32 %v6710_v4, %v2152_v11 }
 0x20b   : > { %4726 = vmatprep.subr.mxu1 %v6337_v44  ;;  %v2155_v44 = vmul.f32 %v6696_v30, %v2152_v11 }
 0x20c   : > { %1982 = vrot.lane.b32.xlu1 %v1976_v33, %s5243_s9  ;;  %1960 = vrot.lane.b32.xlu0 %v1954_v39, %s5243_s9 }
 0x20d   : > { %4727 = vmatpush3.msra.mxu1 %v6346_v15 }
 0x20e   : > { %v6795_v22 = vpop.permute.xlu1 %1588  ;;  %v6797_v47 = vpop.permute.xlu0 %1915  ;;  %4728 = vmatprep.subr.mxu1 %v6353_v59  ;;  %v2131_v59 = vmul.f32 %v6679_v3, %v6548_v18  ;;  %v2329_v18 = vstv %s4631_s23  ;;  %s6963_s23 = sld [smem:[#allocation2 + $0x4c]] }
 0x20f   : > { %4729 = vmatpush3.msra.mxu1 %v6367_v7  ;;  %v2153_v7 = vmul.f32 %v6679_v3, %v2152_v11 }
 0x210   : > { %2139 = vrot.lane.b32.xlu1 %v2132_v54, %s5242_s30  ;;  %1654 = vrot.lane.b32.xlu0 %v1646_v14, %s8722_s29  ;;  %v6858_v54 = vstv %s4616_s14  ;;  %s6986_s14 = sld [smem:[#allocation2 + $0x3f]] }
 0x211   : > { %4730 = vmatprep.subr.mxu1 %v6380_v50 }
 0x212   : > { %v6806_v15 = vpop.permute.xlu1 %2092  ;;  %v6808_v58 = vpop.permute.xlu0 %2094  ;;  %4731 = vmatpush3.msra.mxu1 %v6388_v62  ;;  %v1823_v62 = vmul.f32 %v6696_v30, %v6817_v42 }
 0x213   : > { %4732 = vmatprep.subr.mxu1 %v6402_v52  ;;  %v2309_v52 = vmul.f32 %v6710_v4, %v6605_v16 }
 0x214   : > { %2163 = vrot.lane.b32.xlu1 %v2155_v44, %s5242_s30  ;;  %2161 = vrot.lane.b32.xlu0 %v2154_v53, %s5242_s30  ;;  %v8927_v53 = vld [vmem:[#allocation93_spill] sm:$0xff] }
 0x215   : > { %4733 = vmatpush3.msra.mxu1 %v6413_v26 }
 0x216   : > { %v6820_v50 = vpop.permute.xlu1 %1765  ;;  %v6822_v13 = vpop.permute.xlu0 %1586  ;;  %4734 = vmatprep.subr.mxu1 %v6424_v21  ;;  %v2332_v21 = vmul.f32 %v6696_v30, %v2329_v18 }
 0x217   : > { %4735 = vmatpush3.msra.mxu1 %v6439_v45  ;;  %v2331_v45 = vmul.f32 %v6710_v4, %v2329_v18 }
 0x218   : > { %2159 = vrot.lane.b32.xlu1 %v2153_v7, %s5242_s30  ;;  %2137 = vrot.lane.b32.xlu0 %v2131_v59, %s5242_s30  ;;  %v8928_v7 = vld [vmem:[#allocation11_spill] sm:$0xff] }
 0x219   : > { %4736 = vmatprep.subr.mxu1 %v6449_v32 }
 0x21a   : > { %v6833_v26 = vpop.permute.xlu1 %1584  ;;  %v6835_v33 = vpop.permute.xlu0 %2271  ;;  %4737 = vmatpush3.msra.mxu1 %v6456_v57  ;;  %v2308_v57 = vmul.f32 %v6679_v3, %v6605_v16  ;;  %v329_v16 = vsel %vm328_vm0, %v5552_v0, %v5560_v8  ;;  %v2000_v0 = vmul.f32 %v6696_v30, %v6858_v54 }
 0x21b   : > { %4738 = vmatprep.subr.mxu1 %v6470_v23  ;;  %v2330_v23 = vmul.f32 %v6679_v3, %v2329_v18  ;;  %v334_v59 = vadd.f32 %v329_v16, %v8928_v7  ;;  %v8931_v18 = vld [vmem:[#allocation95_spill] sm:$0xff]  ;;  %v8934_v16 = vld [vmem:[#allocation54_spill] sm:$0xff]  ;;  %v8938_v7 = vld [vmem:[#allocation77_spill] sm:$0xff] }
 0x21c   : > { %2316 = vrot.lane.b32.xlu1 %v2309_v52, %s5246_s11  ;;  %1831 = vrot.lane.b32.xlu0 %v1823_v62, %s5239_s27 }
 0x21d   : > { %4739 = vmatpush3.msra.mxu1 %v6484_v40  ;;  %v330_v40 = vsel %vm328_vm0, %v5560_v8, %v5550_v63  ;;  %v507_v63 = vsel %vm505_vm1, %v5661_v36, %v5671_v46  ;;  %v684_v8 = vsel %vm682_vm2, %v5829_v19, %v5839_v9  ;;  %v2506_v46 = vstv %s4639_s6  ;;  %v8929_v9 = vld [vmem:[#allocation43_spill] sm:$0xff]  ;;  %s7043_s6 = sld [smem:[#allocation2 + $0x4e]] }
 0x21e   : > { %v6844_v32 = vpop.permute.xlu1 %1610  ;;  %v6846_v39 = vpop.permute.xlu0 %2269  ;;  %4740 = vmatprep.subr.mxu1 %v6492_v41  ;;  %v683_v52 = vsel %vm682_vm2, %v8929_v9, %v5829_v19  ;;  %v8932_v19 = vld [vmem:[#allocation64_spill] sm:$0xff]  ;;  %v2507_v9 = vmul.f32 %v6679_v3, %v2506_v46 }
 0x21f   : > { %4741 = vmatpush3.msra.mxu1 %v6506_v29 }
 0x220   : > { %2340 = vrot.lane.b32.xlu1 %v2332_v21, %s5246_s11  ;;  %2338 = vrot.lane.b32.xlu0 %v2331_v45, %s5246_s11  ;;  %v2509_v21 = vmul.f32 %v6696_v30, %v2506_v46  ;;  %v2508_v45 = vmul.f32 %v6710_v4, %v2506_v46 }
 0x221   : > { %4742 = vmatprep.subr.mxu1 %v6517_v31  ;;  %v335_v31 = vadd.f32 %v330_v40, %v5411_v27  ;;  %v8926_v27 = vld [vmem:[#allocation27_spill] sm:$0xff]  ;;  %v8933_v40 = vld [vmem:[#allocation97_spill] sm:$0xff] }
 0x222   : > { %v6863_v29 = vpop.permute.xlu1 %1942  ;;  %v6865_v41 = vpop.permute.xlu0 %1763  ;;  %4743 = vmatpush3.msra.mxu1 %v6528_v49  ;;  %v2486_v49 = vmul.f32 %v6710_v4, %v6637_v48 }
 0x223   : > { %4744 = vmatprep.subr.mxu1 %v6545_v55  ;;  %v506_v55 = vsel %vm505_vm1, %v8926_v27, %v5661_v36  ;;  %v512_v14 = vadd.f32 %v507_v63, %v335_v31 }
 0x224   : > { %2336 = vrot.lane.b32.xlu1 %v2330_v23, %s5246_s11  ;;  %2314 = vrot.lane.b32.xlu0 %v2308_v57, %s5246_s11  ;;  %v511_v23 = vadd.f32 %v506_v55, %v334_v59  ;;  %v1038_v57 = vsel %vm1036_vm5, %v8932_v19, %v6110_v6  ;;  %v8936_v55 = vld [vmem:[#allocation65_spill] sm:$0xff] }
 0x225   : > { %4745 = vmatpush3.msra.mxu1 %v6555_v60  ;;  %v8930_v60 = vld [vmem:[#allocation53_spill] sm:$0xff]  ;;  %v689_v36 = vadd.f32 %v684_v8, %v512_v14  ;;  %v8935_v8 = vld [vmem:[#allocation98_spill] sm:$0xff]  ;;  %v1037_v6 = vsel %vm1036_vm5, %v8936_v55, %v8932_v19  ;;  %v8937_v14 = vld [vmem:[#allocation75_spill] sm:$0xff] }
 0x226   : > { %v6893_v11 = vpop.permute.xlu1 %1761  ;;  %v6895_v44 = vpop.permute.xlu0 %2448  ;;  %4746 = vmatprep.subr.mxu1 %v8927_v53  ;;  %v861_v62 = vsel %vm859_vm3, %v8930_v60, %v5974_v56  ;;  %v259_v56 = vstv %s6861_s22  ;;  %v860_v63 = vsel %vm859_vm3, %v8934_v16, %v8930_v60  ;;  %v688_v27 = vadd.f32 %v683_v52, %v511_v23  ;;  %v8939_v19 = vld [vmem:[#allocation76_spill] sm:$0xff]  ;;  %v8940_v16 = vld [vmem:[#allocation107_spill] sm:$0xff]  ;;  %s7050_s22 = sld [smem:[#allocation2 + $0x4d]] }
 0x227   : > { %4747 = vmatpush3.msra.mxu1 %v8931_v18  ;;  %v866_v31 = vadd.f32 %v861_v62, %v689_v36  ;;  %v1215_v53 = vsel %vm1213_vm6, %v8937_v14, %v6288_v1  ;;  %v2485_v52 = vmul.f32 %v6679_v3, %v6637_v48  ;;  %v227_v60 = vstv %s6876_s7  ;;  %v8941_v55 = vld [vmem:[#allocation103_spill] sm:$0xff]  ;;  %s7069_s7 = sld [smem:[#allocation2 + $0x57]] }
 0x228   : > { %2493 = vrot.lane.b32.xlu1 %v2486_v49, %s5245_s10  ;;  %2008 = vrot.lane.b32.xlu0 %v2000_v0, %s5243_s9  ;;  %v865_v62 = vadd.f32 %v860_v63, %v688_v27  ;;  %v1392_v1 = vsel %vm1390_vm8, %v6627_v28, %v6641_v5  ;;  %v6942_v18 = vstv %s6887_s20  ;;  %v262_v36 = vmul.f32 %v6696_v30, %v259_v56  ;;  %s7072_s20 = sld [smem:[#allocation2 + $0x4f]] }
 0x229   : > { %4748 = vmatprep.subr.mxu1 %v8933_v40  ;;  %v1043_v59 = vadd.f32 %v1038_v57, %v866_v31  ;;  %v1214_v57 = vsel %vm1213_vm6, %v8939_v19, %v8937_v14  ;;  %v1569_v5 = vsel %vm1567_vm9, %v6757_v24, %v6703_v38  ;;  %v2663_v63 = vmul.f32 %v6710_v4, %v8940_v16  ;;  %v8943_v19 = vld [vmem:[#allocation13_spill] sm:$0xff] }
 0x22a   : > { %v6920_v49 = vpop.permute.xlu1 %1787  ;;  %v6922_v0 = vpop.permute.xlu0 %2446  ;;  %4749 = vmatpush3.msra.mxu1 %v8935_v8  ;;  %v1042_v48 = vadd.f32 %v1037_v6, %v865_v62  ;;  %v2177_v31 = vmul.f32 %v6696_v30, %v6942_v18  ;;  %v2683_v8 = vstv %s6910_s5  ;;  %v260_v27 = vmul.f32 %v6679_v3, %v259_v56  ;;  %v8942_v6 = vld [vmem:[#allocation115_spill] sm:$0xff]  ;;  %s7109_s5 = sld [smem:[#allocation2 + $0x58]] }
 0x22b   : > { %4755 = vmatprep.subr.mxu1 %v8938_v7  ;;  %v1220_v23 = vadd.f32 %v1215_v53, %v1043_v59  ;;  %v1391_v38 = vsel %vm1390_vm8, %v8941_v55, %v6627_v28  ;;  %v1746_v14 = vsel %vm1744_vm10, %v6768_v34, %v8942_v6  ;;  %v265_v53 = vadd.f32 %v262_v36, %v227_v60 }
 0x22c   : > { %2517 = vrot.lane.b32.xlu1 %v2509_v21, %s5245_s10  ;;  %2515 = vrot.lane.b32.xlu0 %v2508_v45, %s5245_s10  ;;  %v261_v21 = vmul.f32 %v6710_v4, %v259_v56  ;;  %v1219_v7 = vadd.f32 %v1214_v57, %v1042_v48  ;;  %v1568_v56 = vsel %vm1567_vm9, %v6770_v2, %v6757_v24  ;;  %v8944_v57 = vld [vmem:[#allocation20_spill] sm:$0xff] }
 0x22d   : > { %v1397_v40 = vadd.f32 %v1392_v1, %v1220_v23  ;;  %v1923_v28 = vsel %vm1921_vm11, %v6782_v51, %v6716_v20  ;;  %v2686_v1 = vmul.f32 %v6696_v30, %v2683_v8  ;;  %v2685_v48 = vmul.f32 %v6710_v4, %v2683_v8 }
 0x22e   : > { %v6946_v45 = vpop.permute.xlu1 %2119  ;;  %v6948_v46 = vpop.permute.xlu0 %1940  ;;  %v264_v62 = vadd.f32 %v261_v21, %v227_v60  ;;  %v1396_v23 = vadd.f32 %v1391_v38, %v1219_v7  ;;  %v263_v21 = vadd.f32 %v260_v27, %v227_v60  ;;  %v270_v24 = vmul.f32 %v6696_v30, %v8943_v19 }
 0x22f   : > { %v1574_v59 = vadd.f32 %v1569_v5, %v1397_v40  ;;  %v1745_v20 = vsel %vm1744_vm10, %v6784_v35, %v6768_v34  ;;  %v2100_v2 = vsel %vm2098_vm12, %v6808_v58, %v6714_v25  ;;  %v8945_v5 = vld [vmem:[#allocation18_spill] sm:$0xff]  ;;  %v1922_v55 = vsel %vm1921_vm11, %v6797_v47, %v6782_v51  ;;  %v8946_v34 = vld [vmem:[#allocation117_spill] sm:$0xff]  ;;  %v8948_v47 = vld [vmem:[#allocation12_spill] sm:$0xff] }
 0x230   : > { %2513 = vrot.lane.b32.xlu1 %v2507_v9, %s5245_s10  ;;  %2491 = vrot.lane.b32.xlu0 %v2485_v52, %s5245_s10  ;;  %v351_v40 = vsel %vm328_vm0, %v8945_v5, %v8944_v57  ;;  %v2277_v35 = vsel %vm2275_vm13, %v6835_v33, %v8946_v34  ;;  %v2684_v25 = vmul.f32 %v6679_v3, %v2683_v8  ;;  %v7013_v7 = vstv %s6963_s23  ;;  %v8949_v8 = vld [vmem:[#allocation116_spill] sm:$0xff]  ;;  %s7577_s23 = sld [smem:[#allocation2 + $0x5f]] }
 0x231   : > { %v1751_v36 = vadd.f32 %v1746_v14, %v1574_v59  ;;  %v2662_v14 = vmul.f32 %v6679_v3, %v8940_v16  ;;  %v8947_v59 = vld [vmem:[#allocation19_spill] sm:$0xff]  ;;  %v356_v16 = vadd.f32 %v351_v40, %v263_v21  ;;  %v8954_v34 = vld [vmem:[#allocation28_spill] sm:$0xff] }
 0x232   : > { %v6972_v9 = vpop.permute.xlu1 %1938  ;;  %v6974_v52 = vpop.permute.xlu0 %2625  ;;  %v358_v51 = vadd.f32 %v8947_v59, %v265_v53 }
 0x233   : > { %v2631_v21 = vsel %vm2629_vm15, %v6974_v52, %v6738_v43  ;;  %v8953_v43 = vld [vmem:[#allocation30_spill] sm:$0xff] }
 0x234   : > { %2670 = vrot.lane.b32.xlu1 %v2663_v63, %s5248_s13  ;;  %2185 = vrot.lane.b32.xlu0 %v2177_v31, %s5242_s30  ;;  %v1573_v63 = vadd.f32 %v1568_v56, %v1396_v23  ;;  %v1928_v31 = vadd.f32 %v1923_v28, %v1751_v36  ;;  %v273_v56 = vadd.f32 %v270_v24, %v8948_v47 }
 0x235   : > { %v2099_v28 = vsel %vm2098_vm12, %v6806_v15, %v6808_v58  ;;  %v352_v23 = vsel %vm328_vm0, %v8944_v57, %v8947_v59  ;;  %v2276_v15 = vsel %vm2275_vm13, %v6846_v39, %v6835_v33  ;;  %v8950_v58 = vld [vmem:[#allocation112_spill] sm:$0xff]  ;;  %vm2806_vm0 = vcmask 924672   ;;  %v8951_v39 = vld [vmem:[#allocation21_spill] sm:$0xff] }
 0x236   : > { %v6999_v60 = vpop.permute.xlu1 %1964  ;;  %v2624_v27 = vpop.permute.xlu0 %2623  ;;  %v1750_v38 = vadd.f32 %v1745_v20, %v1573_v63  ;;  %v2105_v6 = vadd.f32 %v2100_v2, %v1928_v31  ;;  %v2840_v24 = vmul.f32 %v6710_v4, %v8950_v58  ;;  %v2354_v20 = vmul.f32 %v6696_v30, %v7013_v7  ;;  %v8952_v63 = vld [vmem:[#allocation29_spill] sm:$0xff] }
 0x237   : > { %v2860_v57 = vstv %s6986_s14  ;;  %v357_v33 = vadd.f32 %v352_v23, %v264_v62  ;;  %v380_v40 = vadd.f32 %v8951_v39, %v273_v56  ;;  %v535_v31 = vadd.f32 %v8952_v63, %v358_v51  ;;  %v8955_v59 = vld [vmem:[#allocation45_spill] sm:$0xff]  ;;  %v8961_v39 = vld [vmem:[#allocation55_spill] sm:$0xff]  ;;  %s7337_s14 = sld [smem:[#allocation2 + $0x69]] }
 0x238   : > { %2694 = vrot.lane.b32.xlu1 %v2686_v1, %s5248_s13  ;;  %2692 = vrot.lane.b32.xlu0 %v2685_v48, %s5248_s13  ;;  %v2454_v1 = vsel %vm2452_vm14, %v6895_v44, %v8949_v8  ;;  %v1927_v36 = vadd.f32 %v1922_v55, %v1750_v38  ;;  %v2282_v48 = vadd.f32 %v2277_v35, %v2105_v6 }
 0x239   : > { %v2453_v55 = vsel %vm2452_vm14, %v6922_v0, %v6895_v44  ;;  %v528_v35 = vsel %vm505_vm1, %v8954_v34, %v8953_v43  ;;  %v712_v51 = vadd.f32 %v8955_v59, %v535_v31  ;;  %v2630_v44 = vsel %vm2629_vm15, %v2624_v27, %v6974_v52  ;;  %v8957_v52 = vld [vmem:[#allocation33_spill] sm:$0xff] }
 0x23a   : > { %v7026_v19 = vpop.permute.xlu1 %2296  ;;  %v7028_v53 = vpop.permute.xlu0 %2117  ;;  %v2104_v2 = vadd.f32 %v2099_v28, %v1927_v36  ;;  %v2459_v5 = vadd.f32 %v2454_v1, %v2282_v48  ;;  %v2863_v0 = vmul.f32 %v6696_v30, %v2860_v57  ;;  %v2862_v28 = vmul.f32 %v6710_v4, %v2860_v57  ;;  %v8956_v36 = vld [vmem:[#allocation56_spill] sm:$0xff] }
 0x23b   : > { %v533_v1 = vadd.f32 %v528_v35, %v356_v16  ;;  %v889_v48 = vadd.f32 %v8956_v36, %v712_v51  ;;  %v557_v27 = vadd.f32 %v8957_v52, %v380_v40  ;;  %v8962_v40 = vld [vmem:[#allocation67_spill] sm:$0xff]  ;;  %v2861_v34 = vmul.f32 %v6679_v3, %v2860_v57 }
 0x23c   : > { %2690 = vrot.lane.b32.xlu1 %v2684_v25, %s5248_s13  ;;  %2668 = vrot.lane.b32.xlu0 %v2662_v14, %s5248_s13  ;;  %v529_v25 = vsel %vm505_vm1, %v8953_v43, %v8952_v63  ;;  %v2281_v38 = vadd.f32 %v2276_v15, %v2104_v2  ;;  %v2636_v14 = vadd.f32 %v2631_v21, %v2459_v5  ;;  %v8958_v15 = vld [vmem:[#allocation46_spill] sm:$0xff]  ;;  %v7098_v51 = vstv %s7050_s22  ;;  %v8964_v57 = vld [vmem:[#allocation47_spill] sm:$0xff]  ;;  %s4594_s22 = sld [smem:[#allocation2 + $0x67]] }
 0x23d   : > { %v534_v23 = vadd.f32 %v529_v25, %v357_v33  ;;  %v706_v16 = vsel %vm682_vm2, %v8958_v15, %v8955_v59  ;;  %v8960_v33 = vld [vmem:[#allocation57_spill] sm:$0xff]  ;;  %v1066_v31 = vadd.f32 %v8962_v40, %v889_v48  ;;  %v2839_v35 = vmul.f32 %v6679_v3, %v8950_v58  ;;  %v8966_v48 = vld [vmem:[#allocation68_spill] sm:$0xff] }
 0x23e   : > { %v7058_v62 = vpop.permute.xlu1 %2115  ;;  %v2803_v6 = vpop.permute.xlu0 %2802  ;;  %v2458_v56 = vadd.f32 %v2453_v55, %v2281_v38  ;;  %v882_v63 = vsel %vm859_vm3, %v8961_v39, %v8960_v33  ;;  %v8963_v38 = vld [vmem:[#allocation79_spill] sm:$0xff]  ;;  %v7095_v59 = vstv %s7043_s6  ;;  %v883_v58 = vsel %vm859_vm3, %v8960_v33, %v8956_v36  ;;  %s7197_s6 = sld [smem:[#allocation2 + $0x59]] }
 0x23f   : > { %v2808_v47 = vsel %vm2806_vm0, %v2803_v6, %v6736_v61  ;;  %v8959_v61 = vld [vmem:[#allocation44_spill] sm:$0xff]  ;;  %v1060_v36 = vsel %vm1036_vm5, %v8966_v48, %v8962_v40  ;;  %v8969_v40 = vmov 0.0   ;;  %vm3149_vm1 = vcmask 130048  }
 0x240   : > { %2847 = vrot.lane.b32.xlu1 %v2840_v24, %s5247_s12  ;;  %2362 = vrot.lane.b32.xlu0 %v2354_v20, %s5246_s11  ;;  %v2813_v8 = vadd.f32 %v2808_v47, %v2636_v14  ;;  %v705_v21 = vsel %vm682_vm2, %v8959_v61, %v8958_v15  ;;  %v2635_v24 = vadd.f32 %v2630_v44, %v2458_v56 }
 0x241   : > { %v710_v25 = vadd.f32 %v705_v21, %v533_v1  ;;  %v1243_v14 = vadd.f32 %v8963_v38, %v1066_v31  ;;  %v711_v44 = vadd.f32 %v706_v16, %v534_v23  ;;  %v734_v56 = vadd.f32 %v8964_v57, %v557_v27  ;;  %v8967_v23 = vld [vmem:[#allocation66_spill] sm:$0xff] }
 0x242   : > { %v7078_v20 = vpop.permute.xlu1 %2141  ;;  %v2801_v2 = vpop.permute.xlu0 %2800  ;;  %v2970_v5 = vmax.f32 %v2813_v8, 0.0  ;;  %v8965_v8 = vld [vmem:[#allocation105_spill] sm:$0xff]  ;;  %v1059_v52 = vsel %vm1036_vm5, %v8967_v23, %v8966_v48  ;;  %v2708_v27 = vmul.f32 %v6696_v30, %v7095_v59  ;;  %v2531_v15 = vmul.f32 %v6696_v30, %v7098_v51  ;;  %v8972_v57 = vld [vmem:[#allocation106_spill] sm:$0xff] }
 0x243   : > { %v2807_v55 = vsel %vm2806_vm0, %v2801_v2, %v2803_v6  ;;  %v1420_v1 = vadd.f32 %v8965_v8, %v1243_v14  ;;  %v1488_v21 = vstv %s7069_s7  ;;  %v888_v2 = vadd.f32 %v883_v58, %v711_v44  ;;  %s7602_s7 = sld [smem:[#allocation2 + $0x77]] }
 0x244   : > { %v2812_v43 = vadd.f32 %v2807_v55, %v2635_v24  ;;  %2871 = vrot.lane.b32.xlu1 %v2863_v0, %s5247_s12  ;;  %2869 = vrot.lane.b32.xlu0 %v2862_v28, %s5247_s12  ;;  %v887_v28 = vadd.f32 %v882_v63, %v710_v25  ;;  %v7126_v24 = vstv %s7072_s20  ;;  %v7136_v63 = vld [vmem:[%s8632_s3 + $0x100] sm:$0xff]  ;;  %v8970_v55 = vld [vmem:[#allocation80_spill] sm:$0xff]  ;;  %v1490_v44 = vmul.f32 %v6710_v4, %v1488_v21  ;;  %s4626_s20 = sld [smem:[#allocation2 + $0x6b]] }
 0x245   : > { %3073 = vmatprep.mubr.f32.mxu0 %v2970_v5  ;;  %v1597_v61 = vadd.f32 %v6795_v22, %v1420_v1  ;;  %v8968_v5 = vld [vmem:[#allocation58_spill] sm:$0xff]  ;;  %v1065_v14 = vadd.f32 %v1060_v36, %v888_v2  ;;  %v8974_v1 = vld [vmem:[#allocation69_spill] sm:$0xff]  ;;  %v1489_v36 = vmul.f32 %v6679_v3, %v1488_v21  ;;  %v1590_v2 = vsel %vm1567_vm9, %v6833_v26, %v6822_v13 }
 0x246   : > { %v2969_v6 = vmax.f32 %v2812_v43, 0.0  ;;  %v7100_v47 = vpop.permute.xlu1 %2473  ;;  %v7102_v0 = vpop.permute.xlu0 %2294  ;;  %v911_v16 = vadd.f32 %v8968_v5, %v734_v56  ;;  %v1064_v31 = vadd.f32 %v1059_v52, %v887_v28  ;;  %v8971_v43 = vld [vmem:[#allocation78_spill] sm:$0xff]  ;;  %v8973_v56 = vld [vmem:[#allocation104_spill] sm:$0xff]  ;;  %v1665_v5 = vstv %s7109_s5  ;;  %s4617_s5 = sld [smem:[#allocation2 + $0x5a]] }
 0x247   : > { %v1774_v25 = vadd.f32 %v6820_v50, %v1597_v61  ;;  %v1413_v58 = vsel %vm1390_vm8, %v8973_v56, %v8972_v57  ;;  %v1591_v61 = vsel %vm1567_vm9, %v6822_v13, %v6795_v22  ;;  %v1768_v22 = vsel %vm1744_vm10, %v6865_v41, %v6820_v50 }
 0x248   : > { %2867 = vrot.lane.b32.xlu1 %v2861_v34, %s5247_s12  ;;  %2845 = vrot.lane.b32.xlu0 %v2839_v35, %s5247_s12  ;;  %v1236_v34 = vsel %vm1213_vm6, %v8971_v43, %v8970_v55  ;;  %v1237_v35 = vsel %vm1213_vm6, %v8970_v55, %v8963_v38  ;;  %v1414_v38 = vsel %vm1390_vm8, %v8972_v57, %v8965_v8 }
 0x249   : > { %3074 = vmatmul.mubr.f32.vlgmr.msra.gmra.mxu0 %v2969_v6  ;;  %v2885_v6 = vmul.f32 %v6696_v30, %v7126_v24  ;;  %v1951_v28 = vadd.f32 %v6863_v29, %v1774_v25  ;;  %v1088_v48 = vadd.f32 %v8974_v1, %v911_v16  ;;  %v1241_v23 = vadd.f32 %v1236_v34, %v1064_v31  ;;  %v8975_v31 = vld [vmem:[#allocation82_spill] sm:$0xff] }
 0x24a   : > { %v7129_v33 = vpop.permute.xlu1 %2318  ;;  %v7131_v39 = vpop.permute.xlu0 %2292  ;;  %4983 = vmatpush3.msra.mxu0 %v7136_v63  ;;  %4984 = vmatprep.mubr.msk.f32.mxu0 %vm5244_vm4, %v8969_v40  ;;  %v1242_v52 = vadd.f32 %v1237_v35, %v1065_v14  ;;  %v1491_v16 = vmul.f32 %v6696_v30, %v1488_v21  ;;  %v1767_v13 = vsel %vm1744_vm10, %v6893_v11, %v6865_v41  ;;  %v8976_v21 = vld [vmem:[#allocation111_spill] sm:$0xff] }
 0x24b   : > { %4987 = vmatprep.subr.mxu0 %v8969_v40  ;;  %v2128_v8 = vadd.f32 %v6946_v45, %v1951_v28  ;;  %v1418_v55 = vadd.f32 %v1413_v58, %v1241_v23  ;;  %v1265_v34 = vadd.f32 %v8975_v31, %v1088_v48  ;;  %v1945_v56 = vsel %vm1921_vm11, %v6948_v46, %v6863_v29 }
 0x24c   : > { %2716 = vrot.lane.b32.xlu1 %v2708_v27, %s5248_s13  ;;  %2539 = vrot.lane.b32.xlu0 %v2531_v15, %s5245_s10  ;;  %v1419_v43 = vadd.f32 %v1414_v38, %v1242_v52  ;;  %v1944_v50 = vsel %vm1921_vm11, %v6972_v9, %v6948_v46  ;;  %v1645_v38 = vmul.f32 %v6710_v4, %v6779_v10 }
 0x24d   : > { %v2305_v26 = vadd.f32 %v7026_v19, %v2128_v8  ;;  %v1595_v25 = vadd.f32 %v1590_v2, %v1418_v55  ;;  %v1442_v57 = vadd.f32 %v8976_v21, %v1265_v34  ;;  %v2122_v29 = vsel %vm2098_vm12, %v7028_v53, %v6946_v45 }
 0x24e   : > { %v2651_v27 = vpop.permute.xlu1 %2650  ;;  %v2472_v15 = vpop.permute.xlu0 %2471  ;;  %v1596_v35 = vadd.f32 %v1591_v61, %v1419_v43  ;;  %v2121_v46 = vsel %vm2098_vm12, %v7058_v62, %v7028_v53  ;;  %v2299_v2 = vsel %vm2275_vm13, %v7102_v0, %v7026_v19  ;;  %v2298_v45 = vsel %vm2275_vm13, %v7131_v39, %v7102_v0 }
 0x24f   : > { %v2482_v41 = vadd.f32 %v7100_v47, %v2305_v26  ;;  %v1772_v58 = vadd.f32 %v1767_v13, %v1595_v25  ;;  %v1619_v28 = vadd.f32 %v6844_v32, %v1442_v57  ;;  %v1668_v55 = vmul.f32 %v6696_v30, %v1665_v5 }
 0x250   : > { %1497 = vrot.lane.b32.xlu1 %v1490_v44, %s8720_s8  ;;  %2893 = vrot.lane.b32.xlu0 %v2885_v6, %s5247_s12  ;;  %v1667_v6 = vmul.f32 %v6710_v4, %v1665_v5  ;;  %v1773_v11 = vadd.f32 %v1768_v22, %v1596_v35  ;;  %v2476_v43 = vsel %vm2452_vm14, %v2472_v15, %v7100_v47 }
 0x251   : > { %v2659_v9 = vadd.f32 %v2651_v27, %v2482_v41  ;;  %v1949_v48 = vadd.f32 %v1944_v50, %v1772_v58  ;;  %v1796_v61 = vadd.f32 %v6920_v49, %v1619_v28  ;;  %v1822_v47 = vmul.f32 %v6710_v4, %v6817_v42  ;;  %v5104_v41 = vld [vmem:[%s8632_s3 + $0xf8] sm:$0xff] }
 0x252   : > { %v7182_v14 = vpop.permute.xlu1 %2495  ;;  %v2470_v44 = vpop.permute.xlu0 %2469  ;;  %v1950_v1 = vadd.f32 %v1945_v56, %v1773_v11  ;;  %v1666_v25 = vmul.f32 %v6679_v3, %v1665_v5 }
 0x253   : > { %v2126_v62 = vadd.f32 %v2121_v46, %v1949_v48  ;;  %v2475_v19 = vsel %vm2452_vm14, %v2470_v44, %v2472_v15  ;;  %v1842_v44 = vstv %s7197_s6  ;;  %s7275_s6 = sld [smem:[#allocation2 + $0x68]] }
 0x254   : > { %1495 = vrot.lane.b32.xlu1 %v1489_v36, %s8720_s8  ;;  %1499 = vrot.lane.b32.xlu0 %v1491_v16, %s8720_s8  ;;  %v1644_v36 = vmul.f32 %v6679_v3, %v6779_v10  ;;  %v2127_v53 = vadd.f32 %v2122_v29, %v1950_v1  ;;  %v1973_v10 = vadd.f32 %v6999_v60, %v1796_v61 }
 0x255   : > { %v2303_v0 = vadd.f32 %v2298_v45, %v2126_v62  ;;  %v1844_v28 = vmul.f32 %v6710_v4, %v1842_v44  ;;  %v1821_v61 = vmul.f32 %v6679_v3, %v6817_v42  ;;  %v7259_v45 = vstv %s4594_s22  ;;  %v5105_v62 = vld [vmem:[%s8632_s3 + $0x78] sm:$0xff]  ;;  %s7294_s22 = sld [smem:[#allocation2 + $0x5b]] }
 0x256   : > { %v2828_v23 = vpop.permute.xlu1 %2827  ;;  %v2649_v52 = vpop.permute.xlu0 %2648  ;;  %v2304_v31 = vadd.f32 %v2299_v2, %v2127_v53  ;;  %v2150_v22 = vadd.f32 %v7078_v20, %v1973_v10  ;;  %v1999_v42 = vmul.f32 %v6710_v4, %v6858_v54  ;;  %v2019_v10 = vstv %s4617_s5  ;;  %s7359_s5 = sld [smem:[#allocation2 + $0x5c]] }
 0x257   : > { %v2836_v8 = vadd.f32 %v2828_v23, %v2659_v9  ;;  %v2653_v13 = vsel %vm2629_vm15, %v2649_v52, %v2651_v27  ;;  %v2480_v15 = vadd.f32 %v2475_v19, %v2303_v0  ;;  %v5108_v0 = vld [vmem:[%s8632_s3 + $0xe8] sm:$0xff] }
 0x258   : > { %1674 = vrot.lane.b32.xlu1 %v1667_v6, %s8722_s29  ;;  %1652 = vrot.lane.b32.xlu0 %v1645_v38, %s8722_s29  ;;  %v2481_v35 = vadd.f32 %v2476_v43, %v2304_v31  ;;  %v2327_v6 = vadd.f32 %v7129_v33, %v2150_v22  ;;  %v5106_v43 = vld [vmem:[%s8632_s3 + $0xf0] sm:$0xff]  ;;  %v2021_v22 = vmul.f32 %v6710_v4, %v2019_v10 }
 0x259   : > { %v3153_v16 = vmax.f32 %v2836_v8, 0.0  ;;  %v5107_v31 = vld [vmem:[%s8632_s3 + $0x70] sm:$0xff] }
 0x25a   : > { %v7222_v39 = vpop.permute.xlu1 %2672  ;;  %v2647_v34 = vpop.permute.xlu0 %2646  ;;  %v2658_v27 = vadd.f32 %v2653_v13, %v2481_v35  ;;  %v2504_v5 = vadd.f32 %v7182_v14, %v2327_v6  ;;  %v5109_v13 = vld [vmem:[%s8632_s3 + $0x68] sm:$0xff]  ;;  %v5110_v35 = vld [vmem:[%s8632_s3 + $0xe0] sm:$0xff]  ;;  %v7315_v6 = vstv %s7275_s6  ;;  %s7585_s6 = sld [smem:[#allocation2 + $0x6e]] }
 0x25b   : > { %v2652_v26 = vsel %vm2629_vm15, %v2647_v34, %v2649_v52  ;;  %4985 = vmatmul.mubr.msk.f32.vlgmr.msra.gmra.mxu0 %vm3005_vm7, %v3153_v16  ;;  %v2022_v34 = vmul.f32 %v6696_v30, %v2019_v10  ;;  %8978 = vst [vmem:[#allocation93_spill] sm:$0xff] %v7315_v6 }
 0x25c   : > { %1650 = vrot.lane.b32.xlu1 %v1644_v36, %s8722_s29  ;;  %1676 = vrot.lane.b32.xlu0 %v1668_v55, %s8722_s29  ;;  %v2657_v57 = vadd.f32 %v2652_v26, %v2480_v15  ;;  %v2681_v46 = vadd.f32 %v7222_v39, %v2504_v5  ;;  %v1843_v36 = vmul.f32 %v6679_v3, %v1842_v44  ;;  %v5111_v15 = vld [vmem:[%s8632_s3 + $0x60] sm:$0xff]  ;;  %v2196_v5 = vstv %s7294_s22  ;;  %s7459_s22 = sld [smem:[#allocation2 + $0x5d]] }
 0x25d   : > { %4988 = vmatpush3.msra.mxu0 %v7136_v63  ;;  %4989 = vmatprep.mubr.msk.f32.mxu0 %vm5244_vm4, %v8969_v40  ;;  %v1845_v63 = vmul.f32 %v6696_v30, %v1842_v44  ;;  %v1513_v55 = vmul.f32 %v6696_v30, %v7259_v45  ;;  %v1998_v44 = vmul.f32 %v6679_v3, %v6858_v54 }
 0x25e   : > { %v2824_v56 = vpop.permute.xlu1 %2823  ;;  %v2826_v50 = vpop.permute.xlu0 %2825  ;;  %4792 = vmatprep.subr.mxu0 %v5104_v41  ;;  %v2176_v54 = vmul.f32 %v6710_v4, %v6942_v18  ;;  %v1690_v41 = vmul.f32 %v6696_v30, %v7315_v6  ;;  %v5117_v30 = vld [vmem:[%s8632_s3 + $0x48] sm:$0xff] }
 0x25f   : > { %v2829_v11 = vsel %vm2806_vm0, %v2824_v56, %v2826_v50  ;;  %v2830_v58 = vsel %vm2806_vm0, %v2826_v50, %v2828_v23  ;;  %v5113_v50 = vld [vmem:[%s8632_s3 + $0x58] sm:$0xff] }
 0x260   : > { %v2834_v38 = vadd.f32 %v2829_v11, %v2657_v57  ;;  %1829 = vrot.lane.b32.xlu1 %v1822_v47, %s5239_s27  ;;  %1672 = vrot.lane.b32.xlu0 %v1666_v25, %s8722_s29  ;;  %v2835_v29 = vadd.f32 %v2830_v58, %v2658_v27  ;;  %v2020_v25 = vmul.f32 %v6679_v3, %v2019_v10  ;;  %v5112_v27 = vld [vmem:[%s8632_s3 + $0xd8] sm:$0xff]  ;;  %v5114_v3 = vld [vmem:[%s8632_s3 + $0xd0] sm:$0xff] }
 0x261   : > { %v5115_v11 = vld [vmem:[%s8632_s3 + $0x50] sm:$0xff]  ;;  %v5123_v10 = vld [vmem:[%s8632_s3 + $0x38] sm:$0xff] }
 0x262   : > { %v3151_v9 = vmax.f32 %v2834_v38, 0.0  ;;  %v7249_v1 = vpop.permute.xlu1 %1608  ;;  %v7251_v48 = vpop.permute.xlu0 %2849  ;;  %v3152_v52 = vmax.f32 %v2835_v29, 0.0  ;;  %v5116_v38 = vld [vmem:[%s8632_s3 + $0xc8] sm:$0xff] }
 0x263   : > { %8977 = vst [vmem:[#allocation27_spill] sm:$0xff] %v7251_v48  ;;  %v2858_v23 = vadd.f32 %v7251_v48, %v2681_v46  ;;  %v2198_v46 = vmul.f32 %v6710_v4, %v2196_v5  ;;  %v5121_v4 = vld [vmem:[%s8632_s3 + $0xb8] sm:$0xff] }
 0x264   : > { %1853 = vrot.lane.b32.xlu1 %v1845_v63, %s5239_s27  ;;  %1851 = vrot.lane.b32.xlu0 %v1844_v28, %s5239_s27  ;;  %v7355_v28 = vld [vmem:[%s5365_s28 + $0x10] sm:$0xff] }
 0x265   : > { %v3334_v2 = vmax.f32 %v2858_v23, 0.0  ;;  %3254 = vmatprep.mubr.f32.mxu1 %v3152_v52  ;;  %8979 = vst [vmem:[#allocation11_spill] sm:$0xff] %v7355_v28  ;;  %v2199_v29 = vmul.f32 %v7355_v28, %v2196_v5 }
 0x266   : > { %3255 = vmatmul.mubr.f32.vlgmr.msra.gmra.mxu1 %v3151_v9  ;;  %v7261_v8 = vpop.permute.xlu1 %1632  ;;  %v7263_v53 = vpop.permute.xlu0 %1630  ;;  %v5119_v9 = vld [vmem:[%s8632_s3 + $0xc0] sm:$0xff] }
 0x267   : > { %4990 = vmatmul.mubr.msk.f32.vlgmr.msra.gmra.mxu0 %vm3005_vm7, %v3334_v2  ;;  %4756 = vmatpush3.msra.mxu1 %v5105_v62 }
 0x268   : > { %1849 = vrot.lane.b32.xlu1 %v1843_v36, %s5239_s27  ;;  %1827 = vrot.lane.b32.xlu0 %v1821_v61, %s5239_s27  ;;  %v5120_v36 = vld [vmem:[%s8632_s3 + $0x40] sm:$0xff] }
 0x269   : > { %4793 = vmatpush3.msra.mxu0 %v5105_v62  ;;  %4757 = vmatprep.subr.mxu1 %v5106_v43  ;;  %v7377_v61 = vld [vmem:[%s5365_s28] sm:$0xff] }
 0x26a   : > { %v7280_v19 = vpop.permute.xlu1 %1628  ;;  %v7282_v16 = vpop.permute.xlu0 %1606  ;;  %4794 = vmatprep.subr.mxu0 %v5106_v43  ;;  %4758 = vmatpush3.msra.mxu1 %v5107_v31  ;;  %v2197_v2 = vmul.f32 %v7377_v61, %v2196_v5  ;;  %v2175_v62 = vmul.f32 %v7377_v61, %v6942_v18  ;;  %v5124_v18 = vld [vmem:[%s8632_s3 + $0xb0] sm:$0xff] }
 0x26b   : > { %4795 = vmatpush3.msra.mxu0 %v5107_v31  ;;  %4759 = vmatprep.subr.mxu1 %v5108_v0 }
 0x26c   : > { %2006 = vrot.lane.b32.xlu1 %v1999_v42, %s5243_s9  ;;  %1521 = vrot.lane.b32.xlu0 %v1513_v55, %s8720_s8  ;;  %v7385_v42 = vld [vmem:[%s8632_s3 + $0xb0] sm:$0xff]  ;;  %v7388_v55 = vstv %s7337_s14  ;;  %s7574_s8 = sld [smem:[#allocation2 + $0x6c]] }
 0x26d   : > { %4796 = vmatprep.subr.mxu0 %v5108_v0  ;;  %4760 = vmatpush3.msra.mxu1 %v5109_v13  ;;  %8980 = vst [vmem:[#allocation43_spill] sm:$0xff] %v7385_v42  ;;  %8981 = vst [vmem:[#allocation53_spill] sm:$0xff] %v7388_v55  ;;  %v7403_v0 = vld [vmem:[%s8632_s3 + $0xa8] sm:$0xff]  ;;  %s7595_s14 = sld [smem:[#allocation2 + $0x6f]] }
 0x26e   : > { %v7299_v26 = vpop.permute.xlu1 %1807  ;;  %v7301_v47 = vpop.permute.xlu0 %1785  ;;  %4797 = vmatpush3.msra.mxu0 %v5109_v13  ;;  %4761 = vmatprep.subr.mxu1 %v5110_v35  ;;  %8982 = vst [vmem:[#allocation95_spill] sm:$0xff] %v7403_v0  ;;  %v7417_v13 = vld [vmem:[%s5365_s28 + $0x8] sm:$0xff] }
 0x26f   : > { %4798 = vmatprep.subr.mxu0 %v5110_v35  ;;  %4762 = vmatpush3.msra.mxu1 %v5111_v15  ;;  %v2353_v35 = vmul.f32 %v7417_v13, %v7013_v7 }
 0x270   : > { %2030 = vrot.lane.b32.xlu1 %v2022_v34, %s5243_s9  ;;  %2028 = vrot.lane.b32.xlu0 %v2021_v22, %s5243_s9  ;;  %v5125_v34 = vld [vmem:[%s8632_s3 + $0x30] sm:$0xff]  ;;  %v7412_v22 = vld [vmem:[%s8632_s3 + $0x28] sm:$0xff] }
 0x271   : > { %4799 = vmatpush3.msra.mxu0 %v5111_v15  ;;  %4763 = vmatprep.subr.mxu1 %v5112_v27  ;;  %8983 = vst [vmem:[#allocation64_spill] sm:$0xff] %v7412_v22  ;;  %v1867_v15 = vmul.f32 %v7355_v28, %v7388_v55 }
 0x272   : > { %v7320_v57 = vpop.permute.xlu1 %1783  ;;  %v7322_v56 = vpop.permute.xlu0 %1809  ;;  %4800 = vmatprep.subr.mxu0 %v5112_v27  ;;  %4764 = vmatpush3.msra.mxu1 %v5113_v50  ;;  %v7628_v6 = vstv %s7574_s8  ;;  %s4635_s8 = sld [smem:[#allocation2 + $0x7c]] }
 0x273   : > { %4801 = vmatpush3.msra.mxu0 %v5113_v50  ;;  %4765 = vmatprep.subr.mxu1 %v5114_v3  ;;  %9023 = vst [vmem:[#allocation112_spill] sm:$0xff] %v7628_v6 }
 0x274   : > { %2026 = vrot.lane.b32.xlu1 %v2020_v25, %s5243_s9  ;;  %2004 = vrot.lane.b32.xlu0 %v1998_v44, %s5243_s9  ;;  %v7426_v25 = vld [vmem:[%s8632_s3 + $0xa0] sm:$0xff]  ;;  %v2373_v44 = vstv %s7359_s5  ;;  %s7788_s5 = sld [smem:[#allocation2 + $0x78]] }
 0x275   : > { %4802 = vmatprep.subr.mxu0 %v5114_v3  ;;  %4766 = vmatpush3.msra.mxu1 %v5115_v11  ;;  %8984 = vst [vmem:[#allocation97_spill] sm:$0xff] %v7426_v25  ;;  %v7441_v3 = vld [vmem:[%s8632_s3 + $0x20] sm:$0xff]  ;;  %v2375_v5 = vmul.f32 %v7417_v13, %v2373_v44 }
 0x276   : > { %v7342_v58 = vpop.permute.xlu1 %1962  ;;  %v7344_v63 = vpop.permute.xlu0 %1805  ;;  %4803 = vmatpush3.msra.mxu0 %v5115_v11  ;;  %4767 = vmatprep.subr.mxu1 %v5116_v38  ;;  %8986 = vst [vmem:[#allocation98_spill] sm:$0xff] %v7441_v3  ;;  %v7457_v11 = vld [vmem:[%s8632_s3 + $0x18] sm:$0xff] }
 0x277   : > { %4804 = vmatprep.subr.mxu0 %v5116_v38  ;;  %4768 = vmatpush3.msra.mxu1 %v5117_v30  ;;  %8988 = vst [vmem:[#allocation75_spill] sm:$0xff] %v7457_v11 }
 0x278   : > { %2183 = vrot.lane.b32.xlu1 %v2176_v54, %s5242_s30  ;;  %1698 = vrot.lane.b32.xlu0 %v1690_v41, %s8722_s29  ;;  %s7429_s29 = sld [smem:[#allocation2 + $0x6a]]  ;;  %v7448_v54 = vld [vmem:[%s8632_s3 + $0x98] sm:$0xff]  ;;  %v2376_v41 = vmul.f32 %v7355_v28, %v2373_v44 }
 0x279   : > { %4805 = vmatpush3.msra.mxu0 %v5117_v30  ;;  %4769 = vmatprep.subr.mxu1 %v5119_v9  ;;  %8987 = vst [vmem:[#allocation65_spill] sm:$0xff] %v7448_v54 }
 0x27a   : > { %v7364_v52 = vpop.permute.xlu1 %1986  ;;  %v7366_v23 = vpop.permute.xlu0 %1984  ;;  %4806 = vmatprep.subr.mxu0 %v5119_v9  ;;  %4770 = vmatpush3.msra.mxu1 %v5120_v36  ;;  %v2374_v9 = vmul.f32 %v7377_v61, %v2373_v44  ;;  %v8996_v44 = vld [vmem:[#allocation31_spill] sm:$0xff] }
 0x27b   : > { %4807 = vmatpush3.msra.mxu0 %v5120_v36  ;;  %4771 = vmatprep.subr.mxu1 %v5121_v4  ;;  %v2352_v36 = vmul.f32 %v7377_v61, %v7013_v7  ;;  %v7505_v7 = vld [vmem:[%s8632_s3 + $0x8] sm:$0xff] }
 0x27c   : > { %2207 = vrot.lane.b32.xlu1 %v2199_v29, %s5242_s30  ;;  %2205 = vrot.lane.b32.xlu0 %v2198_v46, %s5242_s30  ;;  %v7472_v29 = vld [vmem:[%s8632_s3 + $0x90] sm:$0xff]  ;;  %8993 = vst [vmem:[#allocation115_spill] sm:$0xff] %v7505_v7 }
 0x27d   : > { %4808 = vmatprep.subr.mxu0 %v5121_v4  ;;  %4772 = vmatpush3.msra.mxu1 %v5123_v10  ;;  %8989 = vst [vmem:[#allocation77_spill] sm:$0xff] %v7472_v29  ;;  %v7479_v46 = vld [vmem:[%s8632_s3 + $0x10] sm:$0xff]  ;;  %v7489_v4 = vld [vmem:[%s8632_s3 + $0x88] sm:$0xff] }
 0x27e   : > { %v7393_v43 = vpop.permute.xlu1 %1982  ;;  %v7395_v31 = vpop.permute.xlu0 %1960  ;;  %4809 = vmatpush3.msra.mxu0 %v5123_v10  ;;  %4773 = vmatprep.subr.mxu1 %v5124_v18  ;;  %8990 = vst [vmem:[#allocation76_spill] sm:$0xff] %v7479_v46  ;;  %8991 = vst [vmem:[#allocation107_spill] sm:$0xff] %v7489_v4  ;;  %v7512_v18 = vld [vmem:[%s8632_s3 + $0x80] sm:$0xff] }
 0x27f   : > { %4810 = vmatprep.subr.mxu0 %v7385_v42  ;;  %4774 = vmatpush3.msra.mxu1 %v5125_v34  ;;  %8994 = vst [vmem:[#allocation13_spill] sm:$0xff] %v7512_v18 }
 0x280   : > { %2203 = vrot.lane.b32.xlu1 %v2197_v2, %s5242_s30  ;;  %2181 = vrot.lane.b32.xlu0 %v2175_v62, %s5242_s30  ;;  %v7492_v2 = vstv %s7429_s29  ;;  %s7592_s29 = sld [smem:[#allocation2 + $0x6d]] }
 0x281   : > { %4811 = vmatpush3.msra.mxu0 %v5125_v34  ;;  %4775 = vmatprep.subr.mxu1 %v7403_v0  ;;  %8992 = vst [vmem:[#allocation103_spill] sm:$0xff] %v7492_v2  ;;  %v2530_v34 = vmul.f32 %v7417_v13, %v7098_v51 }
 0x282   : > { %v7432_v27 = vpop.permute.xlu1 %2139  ;;  %v7434_v50 = vpop.permute.xlu0 %1654  ;;  %4812 = vmatprep.subr.mxu0 %v7403_v0  ;;  %4776 = vmatpush3.msra.mxu1 %v7412_v22  ;;  %v9005_v0 = vld [vmem:[#allocation34_spill] sm:$0xff] }
 0x283   : > { %8985 = vst [vmem:[#allocation54_spill] sm:$0xff] %v7434_v50  ;;  %4813 = vmatpush3.msra.mxu0 %v7412_v22  ;;  %4777 = vmatprep.subr.mxu1 %v7426_v25 }
 0x284   : > { %2360 = vrot.lane.b32.xlu1 %v2353_v35, %s5246_s11  ;;  %1875 = vrot.lane.b32.xlu0 %v1867_v15, %s5239_s27  ;;  %v2044_v35 = vmul.f32 %v7355_v28, %v7492_v2  ;;  %v7523_v15 = vld [vmem:[%s8632_s3] sm:$0xff] }
 0x285   : > { %4814 = vmatprep.subr.mxu0 %v7426_v25  ;;  %4778 = vmatpush3.msra.mxu1 %v7441_v3  ;;  %8995 = vst [vmem:[#allocation20_spill] sm:$0xff] %v7523_v15 }
 0x286   : > { %v7463_v38 = vpop.permute.xlu1 %2163  ;;  %v7465_v30 = vpop.permute.xlu0 %2161  ;;  %4815 = vmatpush3.msra.mxu0 %v7441_v3  ;;  %4779 = vmatprep.subr.mxu1 %v7448_v54 }
 0x287   : > { %4816 = vmatprep.subr.mxu0 %v7448_v54  ;;  %4780 = vmatpush3.msra.mxu1 %v7457_v11 }
 0x288   : > { %2384 = vrot.lane.b32.xlu1 %v2376_v41, %s5246_s11  ;;  %2382 = vrot.lane.b32.xlu0 %v2375_v5, %s5246_s11  ;;  %v278_v41 = vmul.f32 %v7355_v28, %v8996_v44  ;;  %v2550_v5 = vstv %s7459_s22  ;;  %s4649_s22 = sld [smem:[#allocation2 + $0x5e]] }
 0x289   : > { %4817 = vmatpush3.msra.mxu0 %v7457_v11  ;;  %4781 = vmatprep.subr.mxu1 %v7472_v29  ;;  %v2553_v44 = vmul.f32 %v7355_v28, %v2550_v5 }
 0x28a   : > { %v7496_v62 = vpop.permute.xlu1 %2159  ;;  %v7498_v10 = vpop.permute.xlu0 %2137  ;;  %4818 = vmatprep.subr.mxu0 %v7472_v29  ;;  %4782 = vmatpush3.msra.mxu1 %v7479_v46 }
 0x28b   : > { %4819 = vmatpush3.msra.mxu0 %v7479_v46  ;;  %4783 = vmatprep.subr.mxu1 %v7489_v4 }
 0x28c   : > { %2380 = vrot.lane.b32.xlu1 %v2374_v9, %s5246_s11  ;;  %2358 = vrot.lane.b32.xlu0 %v2352_v36, %s5246_s11  ;;  %v8997_v9 = vld [vmem:[#allocation15_spill] sm:$0xff] }
 0x28d   : > { %4820 = vmatprep.subr.mxu0 %v7489_v4  ;;  %4784 = vmatpush3.msra.mxu1 %v7505_v7  ;;  %v286_v36 = vmul.f32 %v7355_v28, %v8997_v9  ;;  %v2552_v9 = vmul.f32 %v7417_v13, %v2550_v5  ;;  %v8999_v4 = vld [vmem:[#allocation32_spill] sm:$0xff] }
 0x28e   : > { %v7532_v46 = vpop.permute.xlu1 %2316  ;;  %v7534_v29 = vpop.permute.xlu0 %1831  ;;  %4821 = vmatpush3.msra.mxu0 %v7505_v7  ;;  %4785 = vmatprep.subr.mxu1 %v7512_v18  ;;  %v281_v11 = vadd.f32 %v278_v41, %v8999_v4  ;;  %v9000_v7 = vld [vmem:[#allocation14_spill] sm:$0xff]  ;;  %v2529_v4 = vmul.f32 %v7377_v61, %v7098_v51  ;;  %v2707_v51 = vmul.f32 %v7417_v13, %v7095_v59 }
 0x28f   : > { %8998 = vst [vmem:[#allocation18_spill] sm:$0xff] %v7534_v29  ;;  %4822 = vmatprep.subr.mxu0 %v7512_v18  ;;  %4786 = vmatpush3.msra.mxu1 %v7523_v15  ;;  %v289_v54 = vadd.f32 %v286_v36, %v9000_v7  ;;  %v9003_v7 = vld [vmem:[#allocation23_spill] sm:$0xff] }
 0x290   : > { %2537 = vrot.lane.b32.xlu1 %v2530_v34, %s5245_s10  ;;  %2052 = vrot.lane.b32.xlu0 %v2044_v35, %s5243_s9  ;;  %v2551_v34 = vmul.f32 %v7377_v61, %v2550_v5  ;;  %v9001_v35 = vld [vmem:[#allocation22_spill] sm:$0xff]  ;;  %v9025_v29 = vld [vmem:[#allocation83_spill] sm:$0xff] }
 0x291   : > { %4823 = vmatpush3.msra.mxu0 %v7523_v15  ;;  %4992 = vmatprep.subr.mxu1 %v8969_v40  ;;  %v402_v41 = vadd.f32 %v9001_v35, %v281_v11  ;;  %v7559_v15 = vstv %s4626_s20  ;;  %v424_v36 = vadd.f32 %v9003_v7, %v289_v54  ;;  %v9007_v54 = vld [vmem:[#allocation48_spill] sm:$0xff]  ;;  %s9035_s20 = smov 121  }
 0x292   : > { %v7548_v18 = vpop.permute.xlu1 %2340  ;;  %v7550_v3 = vpop.permute.xlu0 %2338  ;;  %4997 = vmatprep.subr.mxu0 %v8969_v40  ;;  %9002 = vst [vmem:[#allocation117_spill] sm:$0xff] %v7559_v15  ;;  %v2221_v11 = vmul.f32 %v7355_v28, %v7559_v15  ;;  %v9013_v15 = vld [vmem:[#allocation71_spill] sm:$0xff] }
 0x293   : > { %v579_v42 = vadd.f32 %v9005_v0, %v402_v41  ;;  %v9008_v0 = vld [vmem:[#allocation49_spill] sm:$0xff] }
 0x294   : > { %2561 = vrot.lane.b32.xlu1 %v2553_v44, %s5245_s10  ;;  %2559 = vrot.lane.b32.xlu0 %v2552_v9, %s5245_s10  ;;  %v9006_v44 = vld [vmem:[#allocation37_spill] sm:$0xff]  ;;  %v2727_v9 = vstv %s4649_s22  ;;  %s7907_s22 = sld [smem:[#allocation2 + $0x7a]] }
 0x295   : > { %v601_v2 = vadd.f32 %v9006_v44, %v424_v36  ;;  %v756_v5 = vadd.f32 %v9007_v54, %v579_v42  ;;  %v9011_v36 = vld [vmem:[#allocation60_spill] sm:$0xff]  ;;  %v2730_v42 = vmul.f32 %v7355_v28, %v2727_v9  ;;  %v2729_v54 = vmul.f32 %v7417_v13, %v2727_v9 }
 0x296   : > { %v7562_v25 = vpop.permute.xlu1 %2336  ;;  %v7564_v22 = vpop.permute.xlu0 %2314 }
 0x297   : > { %9004 = vst [vmem:[#allocation19_spill] sm:$0xff] %v7564_v22  ;;  %v778_v35 = vadd.f32 %v9008_v0, %v601_v2  ;;  %v9012_v2 = vld [vmem:[#allocation70_spill] sm:$0xff] }
 0x298   : > { %2557 = vrot.lane.b32.xlu1 %v2551_v34, %s5245_s10  ;;  %2535 = vrot.lane.b32.xlu0 %v2529_v4, %s5245_s10  ;;  %v9010_v4 = vld [vmem:[#allocation59_spill] sm:$0xff] }
 0x299   : > { %v933_v7 = vadd.f32 %v9010_v4, %v756_v5  ;;  %v955_v44 = vadd.f32 %v9011_v36, %v778_v35  ;;  %v9015_v36 = vld [vmem:[#allocation108_spill] sm:$0xff] }
 0x29a   : > { %v7580_v41 = vpop.permute.xlu1 %2493  ;;  %v7582_v34 = vpop.permute.xlu0 %2008  ;;  %v1435_v55 = vsel %vm1390_vm8, %v9016_v12, %v9015_v36  ;;  %v2706_v12 = vmul.f32 %v7377_v61, %v7095_v59 }
 0x29b   : > { %9009 = vst [vmem:[#allocation12_spill] sm:$0xff] %v7582_v34  ;;  %v1110_v0 = vadd.f32 %v9012_v2, %v933_v7  ;;  %v1132_v5 = vadd.f32 %v9013_v15, %v955_v44  ;;  %v1436_v7 = vsel %vm1390_vm8, %v9015_v36, %v8976_v21  ;;  %v9017_v2 = vld [vmem:[#allocation114_spill] sm:$0xff]  ;;  %v9019_v44 = vld [vmem:[#allocation113_spill] sm:$0xff]  ;;  %v9022_v36 = vld [vmem:[#allocation88_spill] sm:$0xff]  ;;  %v2904_v34 = vstv %s7577_s23  ;;  %s7836_s23 = sld [smem:[#allocation2 + $0x79]] }
 0x29c   : > { %2714 = vrot.lane.b32.xlu1 %v2707_v51, %s5248_s13  ;;  %2229 = vrot.lane.b32.xlu0 %v2221_v11, %s5242_s30  ;;  %v9014_v51 = vld [vmem:[#allocation84_spill] sm:$0xff]  ;;  %v1457_v15 = vsel %vm1390_vm8, %v9018_v37, %v9017_v2  ;;  %v1458_v40 = vsel %vm1390_vm8, %v9017_v2, %v9019_v44  ;;  %v9024_v2 = vld [vmem:[#allocation81_spill] sm:$0xff] }
 0x29d   : > { %v1287_v11 = vadd.f32 %v9014_v51, %v1110_v0  ;;  %v2728_v0 = vmul.f32 %v7377_v61, %v2727_v9  ;;  %v9020_v51 = vld [vmem:[#allocation35_spill] sm:$0xff]  ;;  %v1309_v37 = vadd.f32 %v9022_v36, %v1132_v5  ;;  %v9026_v9 = vld [vmem:[#allocation85_spill] sm:$0xff]  ;;  %v7647_v36 = vstv %s7585_s6  ;;  %s8005_s6 = sld [smem:[#allocation2 + $0x7b]] }
 0x29e   : > { %v7598_v4 = vpop.permute.xlu1 %2517  ;;  %v7600_v35 = vpop.permute.xlu0 %2515  ;;  %v7624_v21 = vmul.f32 %v7355_v28, %v9020_v51  ;;  %v1462_v48 = vadd.f32 %v1457_v15, %v9026_v9  ;;  %v9027_v51 = vld [vmem:[#allocation86_spill] sm:$0xff]  ;;  %9028 = vst [vmem:[#allocation21_spill] sm:$0xff] %v7647_v36  ;;  %v2906_v15 = vmul.f32 %v7417_v13, %v2904_v34  ;;  %v2883_v9 = vmul.f32 %v7377_v61, %v7126_v24 }
 0x29f   : > { %v1464_v50 = vadd.f32 %v9019_v44, %v1287_v11  ;;  %v7641_v5 = vadd.f32 %v6759_v17, %v1309_v37  ;;  %v2907_v11 = vmul.f32 %v7355_v28, %v2904_v34  ;;  %v2905_v44 = vmul.f32 %v7377_v61, %v2904_v34 }
 0x2a0   : > { %2738 = vrot.lane.b32.xlu1 %v2730_v42, %s5248_s13  ;;  %2736 = vrot.lane.b32.xlu0 %v2729_v54, %s5248_s13  ;;  %9021 = vst [vmem:[#allocation116_spill] sm:$0xff] %v7624_v21  ;;  %v1440_v42 = vadd.f32 %v1435_v55, %v9024_v2  ;;  %v1441_v54 = vadd.f32 %v1436_v7, %v9025_v29  ;;  %v7657_v7 = vstv %s7592_s29  ;;  %s5249_s29 = smov [#allocation7]  }
 0x2a1   : > { %v1463_v21 = vadd.f32 %v1458_v40, %v9027_v51  ;;  %v1613_v55 = vsel %vm1567_vm9, %v7249_v1, %v6844_v32  ;;  %v2884_v29 = vmul.f32 %v7417_v13, %v7126_v24  ;;  %v2398_v40 = vmul.f32 %v7355_v28, %v7628_v6  ;;  %9029 = vst [vmem:[#allocation29_spill] sm:$0xff] %v7657_v7 }
 0x2a2   : > { %v7635_v59 = vpop.permute.xlu1 %2513  ;;  %v7637_v22 = vpop.permute.xlu0 %2491  ;;  %v1790_v32 = vsel %vm1744_vm10, %v7301_v47, %v6920_v49  ;;  %v7675_v51 = vmul.f32 %v7355_v28, %v7647_v36  ;;  %v7678_v6 = vstv %s7602_s7  ;;  %v1635_v49 = vsel %vm1567_vm9, %v7263_v53, %v7261_v8 }
 0x2a3   : > { %v1634_v34 = vsel %vm1567_vm9, %v7280_v19, %v7263_v53  ;;  %v2575_v24 = vmul.f32 %v7355_v28, %v7657_v7  ;;  %v7695_v36 = vmul.f32 %v7417_v13, %v7259_v45  ;;  %v1812_v53 = vsel %vm1744_vm10, %v7299_v26, %v7322_v56 }
 0x2a4   : > { %2734 = vrot.lane.b32.xlu1 %v2728_v0, %s5248_s13  ;;  %2712 = vrot.lane.b32.xlu0 %v2706_v12, %s5248_s13  ;;  %v7665_v0 = vstv %s7595_s14  ;;  %v1618_v12 = vadd.f32 %v1613_v55, %v1441_v54  ;;  %v1967_v54 = vsel %vm1921_vm11, %v7342_v58, %v6999_v60  ;;  %v1612_v60 = vsel %vm1567_vm9, %v7282_v16, %v7249_v1  ;;  %s5164_s14 = sshll.u32 %s5249_s29, 4  ;;  %s5165_s14 = int_to_ptr.vmem [resolvable:$false] %s5164_s14 }
 0x2a5   : > { %9030 = vst [vmem:[#allocation30_spill] sm:$0xff] %v7665_v0  ;;  %v7699_v17 = vmul.f32 %v7355_v28, %v7665_v0  ;;  %v2144_v19 = vsel %vm2098_vm12, %v7432_v27, %v7078_v20  ;;  %v1789_v16 = vsel %vm1744_vm10, %v7320_v57, %v7301_v47  ;;  %v1811_v20 = vsel %vm1744_vm10, %v7344_v63, %v7299_v26  ;;  %s5166_s7 = scalar_lea.vmem %s5165_s14, 2048 }
 0x2a6   : > { %v7667_v37 = vpop.permute.xlu1 %2670  ;;  %v7669_v2 = vpop.permute.xlu0 %2185  ;;  %v1795_v55 = vadd.f32 %v1790_v32, %v1618_v12  ;;  %v1640_v32 = vadd.f32 %v1635_v49, %v1463_v21  ;;  %v1639_v12 = vadd.f32 %v1634_v34, %v1462_v48  ;;  %v2321_v48 = vsel %vm2275_vm13, %v7532_v46, %v7129_v33 }
 0x2a7   : > { %v1988_v26 = vsel %vm1921_vm11, %v7393_v43, %v7366_v23  ;;  %v2166_v57 = vsel %vm2098_vm12, %v7465_v30, %v7463_v38  ;;  %v2498_v33 = vsel %vm2452_vm14, %v7580_v41, %v7182_v14  ;;  %v2343_v43 = vsel %vm2275_vm13, %v7550_v3, %v7548_v18 }
 0x2a8   : > { %2891 = vrot.lane.b32.xlu1 %v2884_v29, %s5247_s12  ;;  %2406 = vrot.lane.b32.xlu0 %v2398_v40, %s5246_s11  ;;  %v7712_v29 = vmul.f32 %v7355_v28, %v7678_v6  ;;  %v1641_v40 = vadd.f32 %v7261_v8, %v1464_v50  ;;  %v1972_v0 = vadd.f32 %v1967_v54, %v1795_v55 }
 0x2a9   : > { %v1989_v28 = vsel %vm1921_vm11, %v7366_v23, %v7364_v52  ;;  %v1617_v8 = vadd.f32 %v1612_v60, %v1440_v42  ;;  %v1817_v50 = vadd.f32 %v1812_v53, %v1640_v32  ;;  %v1816_v42 = vadd.f32 %v1811_v20, %v1639_v12 }
 0x2aa   : > { %v7715_v7 = vpop.permute.xlu1 %2694  ;;  %v2693_v1 = vpop.permute.xlu0 %2692  ;;  %v2149_v21 = vadd.f32 %v2144_v19, %v1972_v0  ;;  %v1818_v47 = vadd.f32 %v7322_v56, %v1641_v40  ;;  %v1966_v56 = vsel %vm1921_vm11, %v7395_v31, %v7342_v58  ;;  %v2165_v23 = vsel %vm2098_vm12, %v7496_v62, %v7465_v30  ;;  %v9032_v40 = vld [vmem:[#allocation27_spill] sm:$0xff] }
 0x2ab   : > { %v1794_v63 = vadd.f32 %v1789_v16, %v1617_v8  ;;  %v1994_v0 = vadd.f32 %v1989_v28, %v1817_v50  ;;  %v2675_v14 = vsel %vm2629_vm15, %v7667_v37, %v7222_v39  ;;  %v1993_v28 = vadd.f32 %v1988_v26, %v1816_v42  ;;  %v9037_v42 = vld [vmem:[#allocation116_spill] sm:$0xff] }
 0x2ac   : > { %2915 = vrot.lane.b32.xlu1 %v2907_v11, %s5247_s12  ;;  %2913 = vrot.lane.b32.xlu0 %v2906_v15, %s5247_s12  ;;  %v2326_v11 = vadd.f32 %v2321_v48, %v2149_v21  ;;  %v1995_v58 = vadd.f32 %v7364_v52, %v1818_v47  ;;  %v2143_v31 = vsel %vm2098_vm12, %v7498_v10, %v7432_v27  ;;  %v9031_v27 = vld [vmem:[#allocation19_spill] sm:$0xff] }
 0x2ad   : > { %v2171_v34 = vadd.f32 %v2166_v57, %v1994_v0  ;;  %v2520_v30 = vsel %vm2452_vm14, %v7600_v35, %v7598_v4  ;;  %v1534_v39 = vmul.f32 %v7417_v13, %v7678_v6  ;;  %v1971_v62 = vadd.f32 %v1966_v56, %v1794_v63  ;;  %v9034_v57 = vld [vmem:[#allocation18_spill] sm:$0xff] }
 0x2ae   : > { %v2691_v49 = vpop.permute.xlu1 %2690  ;;  %v2669_v15 = vpop.permute.xlu0 %2668  ;;  %v2503_v54 = vadd.f32 %v2498_v33, %v2326_v11  ;;  %v2170_v55 = vadd.f32 %v2165_v23, %v1993_v28  ;;  %v2342_v52 = vsel %vm2275_vm13, %v7562_v25, %v7550_v3  ;;  %v2320_v10 = vsel %vm2275_vm13, %v9031_v27, %v7532_v46  ;;  %v9033_v25 = vld [vmem:[#allocation54_spill] sm:$0xff] }
 0x2af   : > { %v2348_v60 = vadd.f32 %v2343_v43, %v2171_v34  ;;  %v2148_v12 = vadd.f32 %v2143_v31, %v1971_v62  ;;  %v1663_v3 = vadd.f32 %v9033_v25, %v7641_v5  ;;  %v2172_v48 = vadd.f32 %v7463_v38, %v1995_v58 }
 0x2b0   : > { %2911 = vrot.lane.b32.xlu1 %v2905_v44, %s5247_s12  ;;  %2889 = vrot.lane.b32.xlu0 %v2883_v9, %s5247_s12  ;;  %v2680_v53 = vadd.f32 %v2675_v14, %v2503_v54  ;;  %v2697_v9 = vsel %vm2629_vm15, %v2693_v1, %v7715_v7  ;;  %v2519_v46 = vsel %vm2452_vm14, %v7635_v59, %v7600_v35  ;;  %v1709_v31 = vstv %s7788_s5  ;;  %s9044_s5 = smov 120  }
 0x2b1   : > { %v2525_v16 = vadd.f32 %v2520_v30, %v2348_v60  ;;  %v2497_v8 = vsel %vm2452_vm14, %v7637_v22, %v7580_v41  ;;  %v2347_v50 = vadd.f32 %v2342_v52, %v2170_v55  ;;  %v1840_v5 = vadd.f32 %v9034_v57, %v1663_v3  ;;  %v9036_v41 = vld [vmem:[#allocation36_spill] sm:$0xff]  ;;  %v9040_v52 = vld [vmem:[#allocation93_spill] sm:$0xff]  ;;  %v7847_v3 = vld [vmem:[%s8632_s3 + $0xf8] sm:$0xff] }
 0x2b2   : > { %v2848_v44 = vpop.permute.xlu1 %2847  ;;  %v7764_v19 = vpop.permute.xlu0 %2362  ;;  %v2696_v38 = vsel %vm2629_vm15, %v2691_v49, %v2693_v1  ;;  %v2674_v33 = vsel %vm2629_vm15, %v2669_v15, %v7667_v37  ;;  %v297_v0 = vadd.f32 %v9037_v42, %v9036_v41  ;;  %v2349_v11 = vadd.f32 %v7548_v18, %v2172_v48  ;;  %v9038_v1 = vld [vmem:[#allocation12_spill] sm:$0xff] }
 0x2b3   : > { %v2852_v32 = vsel %vm2806_vm0, %v2848_v44, %v9032_v40  ;;  %v2702_v21 = vadd.f32 %v2697_v9, %v2525_v16  ;;  %v2524_v59 = vadd.f32 %v2519_v46, %v2347_v50  ;;  %v2017_v49 = vadd.f32 %v9038_v1, %v1840_v5  ;;  %v9041_v40 = vld [vmem:[#allocation38_spill] sm:$0xff]  ;;  %v7867_v5 = vld [vmem:[%s8632_s3 + $0xf0] sm:$0xff] }
 0x2b4   : > { %2760 = vrot.lane.b32.xlu1 %v7675_v51, %s5248_s13  ;;  %2583 = vrot.lane.b32.xlu0 %v2575_v24, %s5245_s10  ;;  %v2857_v20 = vadd.f32 %v2852_v32, %v2680_v53  ;;  %v2325_v51 = vadd.f32 %v2320_v10, %v2148_v12  ;;  %v1511_v58 = vmul.f32 %v7377_v61, %v7259_v45  ;;  %v9039_v45 = vld [vmem:[#allocation24_spill] sm:$0xff]  ;;  %v7856_v50 = vld [vmem:[%s8632_s3 + $0x78] sm:$0xff] }
 0x2b5   : > { %v2701_v37 = vadd.f32 %v2696_v38, %v2524_v59  ;;  %v2194_v14 = vadd.f32 %v7669_v2, %v2017_v49  ;;  %v1689_v27 = vmul.f32 %v7417_v13, %v9040_v52  ;;  %v9047_v59 = vld [vmem:[#allocation120_spill] sm:$0xff] }
 0x2b6   : > { %v2872_v24 = vpop.permute.xlu1 %2871  ;;  %v2870_v47 = vpop.permute.xlu0 %2869  ;;  %v3333_v26 = vmax.f32 %v2857_v20, 0.0  ;;  %v2502_v63 = vadd.f32 %v2497_v8, %v2325_v51  ;;  %v9042_v20 = vmov 0.0   ;;  %v9043_v51 = vld [vmem:[#allocation50_spill] sm:$0xff] }
 0x2b7   : > { %v2874_v35 = vsel %vm2806_vm0, %v2870_v47, %v2872_v24 }
 0x2b8   : > { %1519 = vrot.lane.b32.xlu1 %v7695_v36, %s9035_s20  ;;  %2937 = vrot.lane.b32.xlu0 %v7699_v17, %s5247_s12  ;;  %v2879_v22 = vadd.f32 %v2874_v35, %v2702_v21  ;;  %v2679_v15 = vadd.f32 %v2674_v33, %v2502_v63  ;;  %v1533_v36 = vmul.f32 %v7377_v61, %v7678_v6  ;;  %v9046_v33 = vld [vmem:[#allocation61_spill] sm:$0xff]  ;;  %v9048_v63 = vld [vmem:[#allocation118_spill] sm:$0xff] }
 0x2b9   : > { %3435 = vmatprep.mubr.f32.mxu1 %v3333_v26  ;;  %v2526_v17 = vadd.f32 %v7598_v4, %v2349_v11  ;;  %v2371_v4 = vadd.f32 %v7764_v19, %v2194_v14  ;;  %v1710_v14 = vmul.f32 %v7377_v61, %v1709_v31 }
 0x2ba   : > { %v2868_v56 = vpop.permute.xlu1 %2867  ;;  %v2846_v23 = vpop.permute.xlu0 %2845  ;;  %v3514_v43 = vmax.f32 %v2879_v22, 0.0  ;;  %v1480_v22 = vsel %vm1390_vm8, %v9048_v63, %v9047_v59 }
 0x2bb   : > { %v2873_v28 = vsel %vm2806_vm0, %v2868_v56, %v2870_v47  ;;  %v2851_v18 = vsel %vm2806_vm0, %v2846_v23, %v2848_v44  ;;  %v2703_v6 = vadd.f32 %v7715_v7, %v2526_v17  ;;  %v446_v7 = vadd.f32 %v9039_v45, %v297_v0  ;;  %v9045_v47 = vld [vmem:[#allocation11_spill] sm:$0xff]  ;;  %v7880_v0 = vld [vmem:[%s8632_s3 + $0x70] sm:$0xff]  ;;  %v7891_v56 = vld [vmem:[%s8632_s3 + $0xe8] sm:$0xff] }
 0x2bc   : > { %v2878_v34 = vadd.f32 %v2873_v28, %v2701_v37  ;;  %v2856_v54 = vadd.f32 %v2851_v18, %v2679_v15  ;;  %1543 = vrot.lane.b32.xlu1 %v7712_v29, %s9035_s20  ;;  %1541 = vrot.lane.b32.xlu0 %v1534_v39, %s9035_s20  ;;  %v7825_v39 = vld [vmem:[%s8632_s3 + $0x100] sm:$0xff]  ;;  %v1711_v44 = vmul.f32 %v7417_v13, %v1709_v31  ;;  %v9049_v37 = vld [vmem:[#allocation53_spill] sm:$0xff]  ;;  %v7903_v28 = vld [vmem:[%s8632_s3 + $0x68] sm:$0xff] }
 0x2bd   : > { %3616 = vmatprep.mubr.f32.mxu0 %v3514_v43  ;;  %v2880_v53 = vadd.f32 %v2872_v24, %v2703_v6  ;;  %v623_v32 = vadd.f32 %v9041_v40, %v446_v7  ;;  %v1688_v24 = vmul.f32 %v7377_v61, %v9040_v52  ;;  %v1712_v26 = vmul.f32 %v9045_v47, %v1709_v31  ;;  %v9051_v23 = vld [vmem:[#allocation91_spill] sm:$0xff]  ;;  %v9054_v18 = vld [vmem:[#allocation72_spill] sm:$0xff] }
 0x2be   : > { %v3513_v30 = vmax.f32 %v2878_v34, 0.0  ;;  %v3332_v62 = vmax.f32 %v2856_v54, 0.0  ;;  %v7817_v55 = vpop.permute.xlu1 %2716  ;;  %v7819_v60 = vpop.permute.xlu0 %2539  ;;  %v1866_v15 = vmul.f32 %v7417_v13, %v9049_v37  ;;  %9050 = vst [vmem:[#allocation28_spill] sm:$0xff] %v7891_v56  ;;  %9053 = vst [vmem:[#allocation45_spill] sm:$0xff] %v7903_v28  ;;  %v1886_v54 = vstv %s7836_s23  ;;  %v7917_v31 = vld [vmem:[%s8632_s3 + $0xe0] sm:$0xff] }
 0x2bf   : > { %v2548_v29 = vadd.f32 %v7819_v60, %v2371_v4  ;;  %v3515_v48 = vmax.f32 %v2880_v53, 0.0  ;;  %v800_v21 = vadd.f32 %v9043_v51, %v623_v32  ;;  %9056 = vst [vmem:[#allocation56_spill] sm:$0xff] %v7917_v31  ;;  %v9061_v32 = vld [vmem:[#allocation87_spill] sm:$0xff]  ;;  %v7952_v51 = vld [vmem:[%s8632_s3 + $0x58] sm:$0xff]  ;;  %v1865_v59 = vmul.f32 %v7377_v61, %v9049_v37  ;;  %v7992_v37 = vld [vmem:[%s8632_s3 + $0x48] sm:$0xff] }
 0x2c0   : > { %1539 = vrot.lane.b32.xlu1 %v1533_v36, %s9035_s20  ;;  %1517 = vrot.lane.b32.xlu0 %v1511_v58, %s9035_s20  ;;  %v9052_v36 = vld [vmem:[#allocation92_spill] sm:$0xff]  ;;  %v9055_v58 = vld [vmem:[#allocation89_spill] sm:$0xff]  ;;  %9062 = vst [vmem:[#allocation44_spill] sm:$0xff] %v7952_v51  ;;  %9066 = vst [vmem:[#allocation79_spill] sm:$0xff] %v7992_v37 }
 0x2c1   : > { %3436 = vmatmul.mubr.f32.vlgmr.msra.gmra.mxu1 %v3332_v62  ;;  %3617 = vmatmul.mubr.f32.vlgmr.msra.gmra.mxu0 %v3513_v30  ;;  %v7833_v10 = vpop.f32.mrf.mxu1  ;;  %v2725_v9 = vadd.f32 %v7817_v55, %v2548_v29  ;;  %v977_v35 = vadd.f32 %v9046_v33, %v800_v21  ;;  %v1485_v6 = vadd.f32 %v1480_v22, %v9055_v58  ;;  %v9057_v62 = vld [vmem:[#allocation90_spill] sm:$0xff]  ;;  %v9058_v29 = vld [vmem:[#allocation119_spill] sm:$0xff]  ;;  %v2063_v22 = vstv %s7907_s22 }
 0x2c2   : > { %v1498_v12 = vpop.permute.xlu1 %1497  ;;  %v7839_v16 = vpop.permute.xlu0 %2893  ;;  %4993 = vmatpush3.msra.mxu1 %v7825_v39  ;;  %4994 = vmatprep.mubr.msk.f32.mxu1 %vm5244_vm4, %v9042_v20  ;;  %v1479_v45 = vsel %vm1390_vm8, %v9058_v29, %v9048_v63  ;;  %v7972_v63 = vld [vmem:[%s8632_s3 + $0x50] sm:$0xff]  ;;  %v8028_v58 = vld [vmem:[%s8632_s3 + $0xb8] sm:$0xff] }
 0x2c3   : > { %v2902_v46 = vadd.f32 %v7839_v16, %v2725_v9  ;;  %v4981_v8 = vpop.f32.mrf.mxu1  ;;  %4998 = vmatpush3.msra.mxu0 %v7825_v39  ;;  %4999 = vmatprep.mubr.msk.f32.mxu0 %vm5244_vm4, %v9042_v20  ;;  %v1154_v34 = vadd.f32 %v9054_v18, %v977_v35  ;;  %v1888_v9 = vmul.f32 %v7417_v13, %v1886_v54 }
 0x2c4   : > { %1718 = vrot.lane.b32.xlu1 %v1711_v44, %s9044_s5  ;;  %1696 = vrot.lane.b32.xlu0 %v1689_v27, %s9044_s5  ;;  %v7930_v44 = vld [vmem:[%s8632_s3 + $0x60] sm:$0xff]  ;;  %v1889_v27 = vmul.f32 %v9045_v47, %v1886_v54  ;;  %v1887_v8 = vmul.f32 %v7377_v61, %v1886_v54  ;;  %9064 = vst [vmem:[#allocation55_spill] sm:$0xff] %v7972_v63  ;;  %9070 = vst [vmem:[#allocation68_spill] sm:$0xff] %v8028_v58 }
 0x2c5   : > { %v3696_v38 = vmax.f32 %v2902_v46, 0.0  ;;  %4995 = vmatmul.mubr.msk.f32.vlgmr.msra.gmra.mxu1 %vm3005_vm7, %v3515_v48  ;;  %4829 = vmatprep.subr.mxu1 %v7847_v3  ;;  %v1331_v53 = vadd.f32 %v9057_v62, %v1154_v34  ;;  %9059 = vst [vmem:[#allocation33_spill] sm:$0xff] %v7930_v44  ;;  %v8018_v34 = vld [vmem:[%s8632_s3 + $0x40] sm:$0xff] }
 0x2c6   : > { %v1496_v41 = vpop.permute.xlu1 %1495  ;;  %v1500_v42 = vpop.permute.xlu0 %1499  ;;  %4866 = vmatprep.subr.mxu0 %v7847_v3  ;;  %4830 = vmatpush3.msra.mxu1 %v7856_v50  ;;  %9069 = vst [vmem:[#allocation105_spill] sm:$0xff] %v8018_v34 }
 0x2c7   : > { %v1501_v11 = vsel %vm1390_vm8, %v1496_v41, %v1498_v12  ;;  %v1502_v49 = vsel %vm1390_vm8, %v1498_v12, %v1500_v42  ;;  %5000 = vmatmul.mubr.msk.f32.vlgmr.msra.gmra.mxu0 %vm3005_vm7, %v3696_v38  ;;  %4831 = vmatprep.subr.mxu1 %v7867_v5  ;;  %v1508_v40 = vadd.f32 %v1500_v42, %v1331_v53  ;;  %v7961_v38 = vld [vmem:[%s8632_s3 + $0xd0] sm:$0xff] }
 0x2c8   : > { %v7894_v43 = vadd.f32 %v1501_v11, %v9051_v23  ;;  %v1507_v17 = vadd.f32 %v1502_v49, %v9052_v36  ;;  %1694 = vrot.lane.b32.xlu1 %v1688_v24, %s9044_s5  ;;  %1720 = vrot.lane.b32.xlu0 %v1712_v26, %s9044_s5  ;;  %v1484_v12 = vadd.f32 %v1479_v45, %v9061_v32  ;;  %v7984_v11 = vld [vmem:[%s8632_s3 + $0xc8] sm:$0xff]  ;;  %v9067_v36 = vld [vmem:[#allocation103_spill] sm:$0xff] }
 0x2c9   : > { %4867 = vmatpush3.msra.mxu0 %v7856_v50  ;;  %4832 = vmatpush3.msra.mxu1 %v7880_v0  ;;  %9063 = vst [vmem:[#allocation57_spill] sm:$0xff] %v7961_v38  ;;  %9065 = vst [vmem:[#allocation67_spill] sm:$0xff] %v7984_v11  ;;  %v2065_v23 = vmul.f32 %v7417_v13, %v2063_v22 }
 0x2ca   : > { %v1675_v4 = vpop.permute.xlu1 %1674  ;;  %v1653_v30 = vpop.permute.xlu0 %1652  ;;  %4868 = vmatprep.subr.mxu0 %v7867_v5  ;;  %4833 = vmatprep.subr.mxu1 %v7891_v56 }
 0x2cb   : > { %v1657_v7 = vsel %vm1567_vm9, %v1653_v30, %v9033_v25  ;;  %4869 = vmatpush3.msra.mxu0 %v7880_v0  ;;  %4834 = vmatpush3.msra.mxu1 %v7903_v28  ;;  %v7941_v25 = vld [vmem:[%s8632_s3 + $0xd8] sm:$0xff] }
 0x2cc   : > { %v7932_v52 = vadd.f32 %v1657_v7, %v1485_v6  ;;  %1873 = vrot.lane.b32.xlu1 %v1866_v15, %s5239_s27  ;;  %1716 = vrot.lane.b32.xlu0 %v1710_v14, %s9044_s5  ;;  %9060 = vst [vmem:[#allocation46_spill] sm:$0xff] %v7941_v25  ;;  %v8003_v14 = vld [vmem:[%s8632_s3 + $0xc0] sm:$0xff]  ;;  %v2042_v6 = vmul.f32 %v7377_v61, %v9067_v36  ;;  %v9072_v7 = vld [vmem:[#allocation117_spill] sm:$0xff] }
 0x2cd   : > { %4870 = vmatprep.subr.mxu0 %v7891_v56  ;;  %4835 = vmatprep.subr.mxu1 %v7917_v31  ;;  %9068 = vst [vmem:[#allocation47_spill] sm:$0xff] %v8003_v14 }
 0x2ce   : > { %v1651_v48 = vpop.permute.xlu1 %1650  ;;  %v1677_v46 = vpop.permute.xlu0 %1676  ;;  %4871 = vmatpush3.msra.mxu0 %v7903_v28  ;;  %4836 = vmatpush3.msra.mxu1 %v7930_v44 }
 0x2cf   : > { %v1656_v21 = vsel %vm1567_vm9, %v1651_v48, %v1653_v30  ;;  %v1679_v24 = vsel %vm1567_vm9, %v1675_v4, %v1677_v46  ;;  %v1685_v26 = vadd.f32 %v1677_v46, %v1508_v40  ;;  %4872 = vmatprep.subr.mxu0 %v7917_v31  ;;  %4837 = vmatprep.subr.mxu1 %v7941_v25  ;;  %v8038_v30 = vld [vmem:[%s8632_s3 + $0x38] sm:$0xff]  ;;  %v2240_v48 = vstv %s8005_s6  ;;  %v9074_v46 = vld [vmem:[#allocation43_spill] sm:$0xff] }
 0x2d0   : > { %v1661_v33 = vadd.f32 %v1656_v21, %v1484_v12  ;;  %v7963_v35 = vadd.f32 %v1679_v24, %v1507_v17  ;;  %1897 = vrot.lane.b32.xlu1 %v1889_v27, %s5239_s27  ;;  %1895 = vrot.lane.b32.xlu0 %v1888_v9, %s5239_s27  ;;  %v2043_v17 = vmul.f32 %v7417_v13, %v9067_v36  ;;  %v8055_v9 = vld [vmem:[%s8632_s3 + $0x30] sm:$0xff]  ;;  %v9075_v24 = vld [vmem:[#allocation95_spill] sm:$0xff] }
 0x2d1   : > { %4873 = vmatpush3.msra.mxu0 %v7930_v44  ;;  %4838 = vmatpush3.msra.mxu1 %v7952_v51  ;;  %9071 = vst [vmem:[#allocation66_spill] sm:$0xff] %v8038_v30  ;;  %v2220_v27 = vmul.f32 %v7417_v13, %v9072_v7  ;;  %9073 = vst [vmem:[#allocation58_spill] sm:$0xff] %v8055_v9  ;;  %v2064_v12 = vmul.f32 %v7377_v61, %v2063_v22 }
 0x2d2   : > { %v7977_v41 = vpop.permute.xlu1 %1829  ;;  %v1673_v42 = vpop.permute.xlu0 %1672  ;;  %4874 = vmatprep.subr.mxu0 %v7941_v25  ;;  %4839 = vmatprep.subr.mxu1 %v7961_v38  ;;  %v2219_v36 = vmul.f32 %v7377_v61, %v9072_v7  ;;  %v9082_v7 = vld [vmem:[#allocation112_spill] sm:$0xff] }
 0x2d3   : > { %v1678_v49 = vsel %vm1567_vm9, %v1673_v42, %v1675_v4  ;;  %4875 = vmatpush3.msra.mxu0 %v7952_v51  ;;  %4840 = vmatpush3.msra.mxu1 %v7972_v63  ;;  %v2066_v4 = vmul.f32 %v9045_v47, %v2063_v22 }
 0x2d4   : > { %v1683_v15 = vadd.f32 %v1678_v49, %v7894_v43  ;;  %1893 = vrot.lane.b32.xlu1 %v1887_v8, %s5239_s27  ;;  %1871 = vrot.lane.b32.xlu0 %v1865_v59, %s5239_s27  ;;  %v9076_v59 = vld [vmem:[#allocation64_spill] sm:$0xff]  ;;  %v9077_v49 = vld [vmem:[#allocation97_spill] sm:$0xff] }
 0x2d5   : > { %4876 = vmatprep.subr.mxu0 %v7961_v38  ;;  %4841 = vmatprep.subr.mxu1 %v7984_v11 }
 0x2d6   : > { %v8009_v43 = vpop.permute.xlu1 %1853  ;;  %v8011_v18 = vpop.permute.xlu0 %1851  ;;  %4877 = vmatpush3.msra.mxu0 %v7972_v63  ;;  %4842 = vmatpush3.msra.mxu1 %v7992_v37  ;;  %v9093_v63 = vld [vmem:[#allocation16_spill] sm:$0xff] }
 0x2d7   : > { %v8021_v54 = vadd.f32 %v8009_v43, %v1685_v26  ;;  %4878 = vmatprep.subr.mxu0 %v7984_v11  ;;  %4843 = vmatprep.subr.mxu1 %v8003_v14  ;;  %v2243_v26 = vmul.f32 %v9045_v47, %v2240_v48 }
 0x2d8   : > { %2072 = vrot.lane.b32.xlu1 %v2065_v23, %s5243_s9  ;;  %2050 = vrot.lane.b32.xlu0 %v2043_v17, %s5243_s9  ;;  %v2241_v23 = vmul.f32 %v7377_v61, %v2240_v48  ;;  %v2417_v17 = vstv %s4635_s8 }
 0x2d9   : > { %4879 = vmatpush3.msra.mxu0 %v7992_v37  ;;  %4844 = vmatpush3.msra.mxu1 %v8018_v34 }
 0x2da   : > { %v1850_v62 = vpop.permute.xlu1 %1849  ;;  %v1828_v53 = vpop.permute.xlu0 %1827  ;;  %4880 = vmatprep.subr.mxu0 %v8003_v14  ;;  %4845 = vmatprep.subr.mxu1 %v8028_v58 }
 0x2db   : > { %v1855_v29 = vsel %vm1744_vm10, %v1850_v62, %v8011_v18  ;;  %v1833_v45 = vsel %vm1744_vm10, %v1828_v53, %v7977_v41  ;;  %4881 = vmatpush3.msra.mxu0 %v8018_v34  ;;  %4846 = vmatpush3.msra.mxu1 %v8038_v30  ;;  %v9080_v53 = vld [vmem:[#allocation75_spill] sm:$0xff] }
 0x2dc   : > { %v8057_v40 = vadd.f32 %v1855_v29, %v1683_v15  ;;  %v8059_v32 = vadd.f32 %v1833_v45, %v1661_v33  ;;  %2048 = vrot.lane.b32.xlu1 %v2042_v6, %s5243_s9  ;;  %2074 = vrot.lane.b32.xlu0 %v2066_v4, %s5243_s9  ;;  %v2242_v33 = vmul.f32 %v7417_v13, %v2240_v48  ;;  %v9078_v15 = vld [vmem:[#allocation98_spill] sm:$0xff]  ;;  %v9079_v6 = vld [vmem:[#allocation65_spill] sm:$0xff] }
 0x2dd   : > { %4882 = vmatprep.subr.mxu0 %v8028_v58  ;;  %4847 = vmatprep.subr.mxu1 %v9074_v46  ;;  %v9081_v29 = vld [vmem:[#allocation77_spill] sm:$0xff]  ;;  %v2419_v45 = vmul.f32 %v7417_v13, %v2417_v17 }
 0x2de   : > { %v8067_v8 = vpop.permute.xlu1 %2006  ;;  %v8069_v21 = vpop.permute.xlu0 %1521  ;;  %4883 = vmatpush3.msra.mxu0 %v8038_v30  ;;  %4848 = vmatpush3.msra.mxu1 %v8055_v9 }
 0x2df   : > { %4884 = vmatprep.subr.mxu0 %v9074_v46  ;;  %4849 = vmatprep.subr.mxu1 %v9075_v24 }
 0x2e0   : > { %2227 = vrot.lane.b32.xlu1 %v2220_v27, %s5242_s30  ;;  %2070 = vrot.lane.b32.xlu0 %v2064_v12, %s5243_s9  ;;  %v2397_v27 = vmul.f32 %v7417_v13, %v9082_v7  ;;  %s4643_s9 = sld [smem:[#allocation2 + $0x7d]]  ;;  %v9083_v12 = vld [vmem:[#allocation76_spill] sm:$0xff] }
 0x2e1   : > { %4885 = vmatpush3.msra.mxu0 %v8055_v9  ;;  %4850 = vmatpush3.msra.mxu1 %v9076_v59 }
 0x2e2   : > { %v8081_v22 = vpop.permute.xlu1 %2030  ;;  %v8083_v42 = vpop.permute.xlu0 %2028  ;;  %4886 = vmatprep.subr.mxu0 %v9075_v24  ;;  %4851 = vmatprep.subr.mxu1 %v9077_v49  ;;  %v9084_v24 = vld [vmem:[#allocation107_spill] sm:$0xff] }
 0x2e3   : > { %4887 = vmatpush3.msra.mxu0 %v9076_v59  ;;  %4852 = vmatpush3.msra.mxu1 %v9078_v15  ;;  %v2420_v59 = vmul.f32 %v9045_v47, %v2417_v17  ;;  %v9088_v47 = vld [vmem:[#allocation29_spill] sm:$0xff] }
 0x2e4   : > { %2251 = vrot.lane.b32.xlu1 %v2243_v26, %s5242_s30  ;;  %2249 = vrot.lane.b32.xlu0 %v2242_v33, %s5242_s30  ;;  %v9085_v26 = vld [vmem:[#allocation115_spill] sm:$0xff]  ;;  %v2396_v33 = vmul.f32 %v7377_v61, %v9082_v7 }
 0x2e5   : > { %4888 = vmatprep.subr.mxu0 %v9077_v49  ;;  %4853 = vmatprep.subr.mxu1 %v9079_v6  ;;  %v9086_v49 = vld [vmem:[#allocation13_spill] sm:$0xff] }
 0x2e6   : > { %v8096_v4 = vpop.permute.xlu1 %2026  ;;  %v8098_v62 = vpop.permute.xlu0 %2004  ;;  %4889 = vmatpush3.msra.mxu0 %v9078_v15  ;;  %4854 = vmatpush3.msra.mxu1 %v9080_v53 }
 0x2e7   : > { %4890 = vmatprep.subr.mxu0 %v9079_v6  ;;  %4855 = vmatprep.subr.mxu1 %v9081_v29  ;;  %v2574_v6 = vmul.f32 %v7417_v13, %v9088_v47 }
 0x2e8   : > { %2247 = vrot.lane.b32.xlu1 %v2241_v23, %s5242_s30  ;;  %2225 = vrot.lane.b32.xlu0 %v2219_v36, %s5242_s30  ;;  %v9087_v36 = vld [vmem:[#allocation20_spill] sm:$0xff]  ;;  %s4651_s30 = sld [smem:[#allocation2 + $0x7e]] }
 0x2e9   : > { %4891 = vmatpush3.msra.mxu0 %v9080_v53  ;;  %4856 = vmatpush3.msra.mxu1 %v9083_v12  ;;  %v2418_v53 = vmul.f32 %v7377_v61, %v2417_v17 }
 0x2ea   : > { %v8111_v48 = vpop.permute.xlu1 %2183  ;;  %v8113_v46 = vpop.permute.xlu0 %1698  ;;  %4892 = vmatprep.subr.mxu0 %v9081_v29  ;;  %4857 = vmatprep.subr.mxu1 %v9084_v24  ;;  %v2594_v29 = vstv %s4643_s9 }
 0x2eb   : > { %4893 = vmatpush3.msra.mxu0 %v9083_v12  ;;  %4858 = vmatpush3.msra.mxu1 %v9085_v26  ;;  %v2596_v17 = vmul.f32 %v7417_v13, %v2594_v29 }
 0x2ec   : > { %2426 = vrot.lane.b32.xlu1 %v2419_v45, %s5246_s11  ;;  %2404 = vrot.lane.b32.xlu0 %v2397_v27, %s5246_s11  ;;  %v8148_v27 = vld [vmem:[%s5365_s28 + $0x10] sm:$0xff] }
 0x2ed   : > { %4894 = vmatprep.subr.mxu0 %v9084_v24  ;;  %4859 = vmatprep.subr.mxu1 %v9086_v49  ;;  %9089 = vst [vmem:[#allocation80_spill] sm:$0xff] %v8148_v27  ;;  %v2597_v12 = vmul.f32 %v8148_v27, %v2594_v29 }
 0x2ee   : > { %v8126_v15 = vpop.permute.xlu1 %2207  ;;  %v8128_v23 = vpop.permute.xlu0 %2205  ;;  %4895 = vmatpush3.msra.mxu0 %v9085_v26  ;;  %4860 = vmatpush3.msra.mxu1 %v9087_v36 }
 0x2ef   : > { %4896 = vmatprep.subr.mxu0 %v9086_v49  ;;  %5002 = vmatprep.subr.mxu1 %v9042_v20  ;;  %v2771_v49 = vstv %s4651_s30 }
 0x2f0   : > { %2402 = vrot.lane.b32.xlu1 %v2396_v33, %s5246_s11  ;;  %2428 = vrot.lane.b32.xlu0 %v2420_v59, %s5246_s11  ;;  %v2595_v33 = vmul.f32 %v7377_v61, %v2594_v29  ;;  %v2573_v59 = vmul.f32 %v7377_v61, %v9088_v47  ;;  %v5128_v61 = vld [vmem:[%s5365_s28] sm:$0xff] }
 0x2f1   : > { %4897 = vmatpush3.msra.mxu0 %v9087_v36  ;;  %v2772_v14 = vmul.f32 %v5128_v61, %v2771_v49 }
 0x2f2   : > { %v8140_v45 = vpop.permute.xlu1 %2203  ;;  %v8142_v7 = vpop.permute.xlu0 %2181  ;;  %5007 = vmatprep.subr.mxu0 %v9042_v20 }
 0x2f4   : > { %2581 = vrot.lane.b32.xlu1 %v2574_v6, %s5245_s10  ;;  %2424 = vrot.lane.b32.xlu0 %v2418_v53, %s5246_s11  ;;  %v2773_v53 = vmul.f32 %v7417_v13, %v2771_v49  ;;  %s4659_s11 = sld [smem:[#allocation2 + $0x7f]] }
 0x2f6   : > { %v8152_v24 = vpop.permute.xlu1 %2360  ;;  %v8154_v26 = vpop.permute.xlu0 %1875 }
 0x2f8   : > { %2605 = vrot.lane.b32.xlu1 %v2597_v12, %s5245_s10  ;;  %2603 = vrot.lane.b32.xlu0 %v2596_v17, %s5245_s10  ;;  %v9090_v12 = vld [vmem:[#allocation21_spill] sm:$0xff] }
 0x2f9   : > { %v2751_v17 = vmul.f32 %v7417_v13, %v9090_v12  ;;  %v2750_v47 = vmul.f32 %v5128_v61, %v9090_v12  ;;  %v9091_v13 = vld [vmem:[#allocation17_spill] sm:$0xff] }
 0x2fa   : > { %v8161_v36 = vpop.permute.xlu1 %2384  ;;  %v8163_v6 = vpop.permute.xlu0 %2382  ;;  %v302_v58 = vmul.f32 %v8148_v27, %v9091_v13  ;;  %v2948_v37 = vstv %s4659_s11  ;;  %s4680_s11 = sshll.u32 %s5298_s19, 10 }
 0x2fb   : > { %s8579_s27 = scalar_lea.hbm %s8633_s4, %s4680_s11 }
 0x2fc   : > { %2601 = vrot.lane.b32.xlu1 %v2595_v33, %s5245_s10  ;;  %2579 = vrot.lane.b32.xlu0 %v2573_v59, %s5245_s10  ;;  %v2774_v33 = vmul.f32 %v8148_v27, %v2771_v49  ;;  %v305_v38 = vadd.f32 %v302_v58, %v9093_v63  ;;  %s215_s10 = sand.u32 1, %s5220_s16   ;;  %v9094_v49 = vld [vmem:[#allocation25_spill] sm:$0xff]  ;;  %v2949_v63 = vmul.f32 %v5128_v61, %v2948_v37 }
 0x2fd   : > { %v9095_v58 = vld [vmem:[#allocation41_spill] sm:$0xff]  ;;  %s8589_s19 = scalar_lea.sflag [#allocation3], %s215_s10 }
 0x2fe   : > { %v8170_v29 = vpop.permute.xlu1 %2380  ;;  %v8172_v9 = vpop.permute.xlu0 %2358  ;;  %v468_v44 = vadd.f32 %v9094_v49, %v305_v38 }
 0x300   : > { %2780 = vrot.lane.b32.xlu1 %v2773_v53, %s5248_s13  ;;  %2758 = vrot.lane.b32.xlu0 %v2751_v17, %s5248_s13  ;;  %v5129_v53 = vld [vmem:[%s5365_s28 + $0x8] sm:$0xff]  ;;  %v9092_v17 = vld [vmem:[#allocation30_spill] sm:$0xff]  ;;  %s4524_s28 = sshll.u32 %s215_s10, 6 }
 0x301   : > { %v2928_v34 = vmul.f32 %v5129_v53, %v9092_v17 }
 0x302   : > { %v8179_v59 = vpop.permute.xlu1 %2537  ;;  %v8181_v30 = vpop.permute.xlu0 %2052 }
 0x303   : > { %v2542_v49 = vsel %vm2452_vm14, %v8179_v59, %v7819_v60 }
 0x304   : > { %2756 = vrot.lane.b32.xlu1 %v2750_v47, %s5248_s13  ;;  %2782 = vrot.lane.b32.xlu0 %v2774_v33, %s5248_s13  ;;  %v2951_v47 = vmul.f32 %v8148_v27, %v2948_v37  ;;  %v2950_v33 = vmul.f32 %v5129_v53, %v2948_v37  ;;  %v645_v53 = vadd.f32 %v9095_v58, %v468_v44  ;;  %v9096_v37 = vld [vmem:[#allocation51_spill] sm:$0xff] }
 0x306   : > { %v8189_v12 = vpop.permute.xlu1 %2561  ;;  %v8191_v11 = vpop.permute.xlu0 %2559 }
 0x308   : > { %2935 = vrot.lane.b32.xlu1 %v2928_v34, %s5247_s12  ;;  %2778 = vrot.lane.b32.xlu0 %v2772_v14, %s5248_s13  ;;  %v2927_v14 = vmul.f32 %v5128_v61, %v9092_v17  ;;  %v1834_v34 = vsel %vm1744_vm10, %v7977_v41, %v9034_v57  ;;  %s8222_s13 = scalar_lea.vmem [#allocation7], %s4524_s28  ;;  %v1856_v57 = vsel %vm1744_vm10, %v8011_v18, %v8009_v43 }
 0x309   : > { %v4713_v13 = vpop.f32.mrf.mxu0  ;;  %v1839_v61 = vadd.f32 %v1834_v34, %v7932_v52  ;;  %v2365_v17 = vsel %vm2275_vm13, %v8152_v24, %v7764_v19  ;;  %v1861_v18 = vadd.f32 %v1856_v57, %v7963_v35  ;;  %v2032_v19 = vsel %vm1921_vm11, %v8096_v4, %v8083_v42  ;;  %s4432_s28 = sshll.u32 %s8222_s13, 4  ;;  %s8581_s28 = int_to_ptr.vmem [resolvable:$true] %s4432_s28 }
 0x30a   : > { %v8198_v51 = vpop.permute.xlu1 %2557  ;;  %v8200_v25 = vpop.permute.xlu0 %2535  ;;  %v2010_v35 = vsel %vm1921_vm11, %v8098_v62, %v8067_v8  ;;  %v2564_v4 = vsel %vm2452_vm14, %v8191_v11, %v8189_v12  ;;  %s5160_s23 = scalar_lea.vmem %s8581_s28, 1024  ;;  %p5167_p8 = scmp.lt.s32.totalorder %s8581_s28, %s5165_s14 }
 0x30b   : > { %v4714_v31 = vpop.f32.mrf.mxu0  ;;  %v2015_v62 = vadd.f32 %v2010_v35, %v8059_v32  ;;  %p5161_p10 = scmp.ne.s32.totalorder %s8581_s28, %s5160_s23  ;;  %p5168_p11 = scmp.lt.s32.totalorder %s5166_s7, %s5160_s23 }
 0x30c   : > { %v4715_v28 = vadd.f32 %v4714_v31, %v4713_v13  ;;  %2959 = vrot.lane.b32.xlu1 %v2951_v47, %s5247_s12  ;;  %2957 = vrot.lane.b32.xlu0 %v2950_v33, %s5247_s12  ;;  %v2011_v31 = vsel %vm1921_vm11, %v8067_v8, %v9038_v1  ;;  %v822_v47 = vadd.f32 %v9096_v37, %v645_v53  ;;  %v9098_v33 = vld [vmem:[#allocation73_spill] sm:$0xff] }
 0x30d   : > { %v2188_v1 = vsel %vm2098_vm12, %v8111_v48, %v7669_v2  ;;  %v2016_v44 = vadd.f32 %v2011_v31, %v1839_v61  ;;  %v2210_v2 = vsel %vm2098_vm12, %v8128_v23, %v8126_v15  ;;  %v2387_v37 = vsel %vm2275_vm13, %v8163_v6, %v8161_v36  ;;  %p5162_p0 = pnand %p5161_p10, %p9128_p12  ;;  %p5169_p13 = por %p5168_p11, %p5167_p8 }
 0x30e   : > { %v3146_v27 = vadd.f32 %v4715_v28, %v7833_v10  ;;  %v8213_v56 = vpop.permute.xlu1 %2714  ;;  %v8215_v38 = vpop.permute.xlu0 %2229  ;;  %v9097_v10 = vld [vmem:[#allocation62_spill] sm:$0xff]  ;;  %v2187_v8 = vsel %vm2098_vm12, %v8142_v7, %v8111_v48  ;;  %v2364_v48 = vsel %vm2275_vm13, %v8172_v9, %v8152_v24  ;;  %v2541_v9 = vsel %vm2452_vm14, %v8200_v25, %v8179_v59 }
 0x30f   : > { %v999_v28 = vadd.f32 %v9097_v10, %v822_v47  ;;  %v2193_v13 = vadd.f32 %v2188_v1, %v2016_v44  ;;  %v2719_v60 = vsel %vm2629_vm15, %v8213_v56, %v7817_v55  ;;  %v2039_v1 = vadd.f32 %v8081_v22, %v8021_v54  ;;  %p5163_p7 = pneg %p5162_p0 }
 0x310   : > { %3150 = vst.msk [vmem:[%s8222_s13] sm:$0xff] %vm3149_vm1, %v3146_v27  ;;  %2955 = vrot.lane.b32.xlu1 %v2949_v63, %s5247_s12  ;;  %2933 = vrot.lane.b32.xlu0 %v2927_v14, %s5247_s12  ;;  %v2033_v27 = vsel %vm1921_vm11, %v8083_v42, %v8081_v22  ;;  %v9099_v63 = vld [vmem:[#allocation96_spill] sm:$0xff]  ;;  %v2209_v42 = vsel %vm2098_vm12, %v8140_v45, %v8128_v23 }
 0x311   : > { %v1176_v43 = vadd.f32 %v9098_v33, %v999_v28  ;;  %v2038_v34 = vadd.f32 %v2033_v27, %v1861_v18  ;;  %v2370_v58 = vadd.f32 %v2365_v17, %v2193_v13  ;;  %v2037_v55 = vadd.f32 %v2032_v19, %v8057_v40  ;;  %p5170_p1 = pnand %p5169_p13, %p5163_p7 }
 0x312   : > { %v8235_v52 = vpop.permute.xlu1 %2738  ;;  %v2737_v41 = vpop.permute.xlu0 %2736  ;;  %v2386_v22 = vsel %vm2275_vm13, %v8170_v29, %v8163_v6  ;;  %v2192_v7 = vadd.f32 %v2187_v8, %v2015_v62  ;;  %v2563_v6 = vsel %vm2452_vm14, %v8198_v51, %v8191_v11 }
 0x313   : > { %v1353_v14 = vadd.f32 %v9099_v63, %v1176_v43  ;;  %v2215_v61 = vadd.f32 %v2210_v2, %v2038_v34  ;;  %v2547_v57 = vadd.f32 %v2542_v49, %v2370_v58  ;;  %v2741_v23 = vsel %vm2629_vm15, %v2737_v41, %v8235_v52 }
 0x314   : > { %v2214_v45 = vadd.f32 %v2209_v42, %v2037_v55  ;;  %v2216_v43 = vadd.f32 %v8126_v15, %v2039_v1 }
 0x315   : > { %v1530_v47 = vadd.f32 %v8069_v21, %v1353_v14  ;;  %v2392_v10 = vadd.f32 %v2387_v37, %v2215_v61  ;;  %v2724_v28 = vadd.f32 %v2719_v60, %v2547_v57 }
 0x316   : > { %v2735_v53 = vpop.permute.xlu1 %2734  ;;  %v2713_v31 = vpop.permute.xlu0 %2712  ;;  %v2391_v29 = vadd.f32 %v2386_v22, %v2214_v45  ;;  %v2393_v11 = vadd.f32 %v8161_v36, %v2216_v43 }
 0x317   : > { %v2569_v27 = vadd.f32 %v2564_v4, %v2392_v10  ;;  %v1707_v33 = vadd.f32 %v8113_v46, %v1530_v47  ;;  %v2740_v14 = vsel %vm2629_vm15, %v2735_v53, %v2737_v41  ;;  %v2718_v15 = vsel %vm2629_vm15, %v2713_v31, %v8213_v56 }
 0x318   : > { %v2568_v34 = vadd.f32 %v2563_v6, %v2391_v29  ;;  %v2570_v19 = vadd.f32 %v8189_v12, %v2393_v11  ;;  %v9101_v6 = vld [vmem:[#allocation28_spill] sm:$0xff]  ;;  %v9103_v29 = vld [vmem:[#allocation45_spill] sm:$0xff] }
 0x319   : > { %v2746_v18 = vadd.f32 %v2741_v23, %v2569_v27  ;;  %v1884_v63 = vadd.f32 %v8154_v26, %v1707_v33  ;;  %v9109_v11 = vld [vmem:[#allocation44_spill] sm:$0xff] }
 0x31a   : > { %v2892_v44 = vpop.permute.xlu1 %2891  ;;  %v8278_v54 = vpop.permute.xlu0 %2406  ;;  %v2745_v35 = vadd.f32 %v2740_v14, %v2568_v34  ;;  %v2747_v36 = vadd.f32 %v8235_v52, %v2570_v19  ;;  %v9113_v19 = vld [vmem:[#allocation79_spill] sm:$0xff] }
 0x31b   : > { %v2896_v40 = vsel %vm2806_vm0, %v2892_v44, %v7839_v16  ;;  %v3326_v32 = vpop.f32.mrf.mxu0  ;;  %v2369_v16 = vadd.f32 %v2364_v48, %v2192_v7  ;;  %v2061_v58 = vadd.f32 %v8181_v30, %v1884_v63  ;;  %v9106_v63 = vld [vmem:[#allocation101_spill] sm:$0xff] }
 0x31c   : > { %v2901_v17 = vadd.f32 %v2896_v40, %v2724_v28 }
 0x31d   : > { %v4986_v24 = vpop.f32.mrf.mxu0  ;;  %v2546_v25 = vadd.f32 %v2541_v9, %v2369_v16  ;;  %v2238_v31 = vadd.f32 %v8215_v38, %v2061_v58  ;;  %v9102_v9 = vld [vmem:[#allocation102_spill] sm:$0xff]  ;;  %v9112_v58 = vld [vmem:[#allocation67_spill] sm:$0xff] }
 0x31e   : > { %v3695_v13 = vmax.f32 %v2901_v17, 0.0  ;;  %v2916_v2 = vpop.permute.xlu1 %2915  ;;  %v2914_v49 = vpop.permute.xlu0 %2913  ;;  %v9100_v17 = vld [vmem:[#allocation99_spill] sm:$0xff] }
 0x31f   : > { %v2918_v51 = vsel %vm2806_vm0, %v2914_v49, %v2916_v2  ;;  %v2723_v37 = vadd.f32 %v2718_v15, %v2546_v25  ;;  %v2415_v1 = vadd.f32 %v8278_v54, %v2238_v31  ;;  %v2924_v42 = vadd.f32 %v2916_v2, %v2747_v36  ;;  %v4080_v31 = vld [vmem:[%s8632_s3 + $0xa8] sm:$0xff] }
 0x320   : > { %v2923_v59 = vadd.f32 %v2918_v51, %v2746_v18  ;;  %3797 = vmatprep.mubr.f32.mxu1 %v3695_v13  ;;  %v9104_v18 = vld [vmem:[#allocation56_spill] sm:$0xff]  ;;  %v9108_v51 = vld [vmem:[#allocation94_spill] sm:$0xff] }
 0x321   : > { %v3877_v48 = vmax.f32 %v2924_v42, 0.0  ;;  %v4079_v42 = vld [vmem:[%s8632_s3 + $0xa0] sm:$0xff] }
 0x322   : > { %v3876_v60 = vmax.f32 %v2923_v59, 0.0  ;;  %v2912_v47 = vpop.permute.xlu1 %2911  ;;  %v2890_v41 = vpop.permute.xlu0 %2889  ;;  %v9111_v59 = vld [vmem:[#allocation55_spill] sm:$0xff] }
 0x323   : > { %v2917_v53 = vsel %vm2806_vm0, %v2912_v47, %v2914_v49  ;;  %v2895_v56 = vsel %vm2806_vm0, %v2890_v41, %v2892_v44  ;;  %v9105_v49 = vld [vmem:[#allocation33_spill] sm:$0xff] }
 0x324   : > { %v2922_v61 = vadd.f32 %v2917_v53, %v2745_v35  ;;  %v2900_v57 = vadd.f32 %v2895_v56, %v2723_v37  ;;  %3978 = vmatprep.mubr.f32.mxu0 %v3876_v60  ;;  %v9114_v37 = vld [vmem:[#allocation47_spill] sm:$0xff]  ;;  %v9115_v47 = vld [vmem:[#allocation105_spill] sm:$0xff]  ;;  %v9116_v53 = vld [vmem:[#allocation68_spill] sm:$0xff] }
 0x325   : > { %v4081_v41 = vld [vmem:[%s8632_s3 + $0xb0] sm:$0xff]  ;;  %v9117_v56 = vld [vmem:[#allocation66_spill] sm:$0xff] }
 0x326   : > { %v3875_v12 = vmax.f32 %v2922_v61, 0.0  ;;  %v3694_v8 = vmax.f32 %v2900_v57, 0.0  ;;  %v4750_v4 = vpop.f32.mrf.mxu1  ;;  %v8311_v55 = vpop.permute.xlu1 %2760  ;;  %v4064_v61 = vld [vmem:[%s8632_s3 + $0x28] sm:$0xff] }
 0x327   : > { %v8313_v62 = vpop.permute.xlu0 %2583  ;;  %v8315_v10 = vpop.f32.mrf.mxu0 }
 0x328   : > { %v2592_v28 = vadd.f32 %v8313_v62, %v2415_v1  ;;  %v4751_v44 = vpop.f32.mrf.mxu1  ;;  %3798 = vmatmul.mubr.f32.vlgmr.msra.gmra.mxu1 %v3694_v8  ;;  %3979 = vmatmul.mubr.f32.vlgmr.msra.gmra.mxu0 %v3875_v12  ;;  %v9118_v1 = vld [vmem:[#allocation58_spill] sm:$0xff]  ;;  %v4063_v12 = vld [vmem:[%s8632_s3 + $0x20] sm:$0xff] }
 0x329   : > { %v4752_v52 = vadd.f32 %v4751_v44, %v4750_v4  ;;  %v4991_v22 = vpop.f32.mrf.mxu0  ;;  %5003 = vmatpush3.msra.mxu1 %v7825_v39  ;;  %5004 = vmatprep.mubr.msk.f32.mxu1 %vm5244_vm4, %v9042_v20  ;;  %v4078_v8 = vld [vmem:[%s8632_s3 + $0x98] sm:$0xff] }
 0x32a   : > { %v1520_v23 = vpop.permute.xlu1 %1519  ;;  %v2769_v40 = vadd.f32 %v8311_v55, %v2592_v28  ;;  %5008 = vmatpush3.msra.mxu0 %v7825_v39  ;;  %5009 = vmatprep.mubr.msk.f32.mxu0 %vm5244_vm4, %v9042_v20  ;;  %v4062_v28 = vld [vmem:[%s8632_s3 + $0x18] sm:$0xff]  ;;  %v4061_v22 = vld [vmem:[%s8632_s3 + $0x10] sm:$0xff] }
 0x32b   : > { %v3327_v45 = vadd.f32 %v4752_v52, %v3326_v32  ;;  %v1524_v7 = vsel %vm1390_vm8, %v1520_v23, %v8069_v21  ;;  %v8327_v27 = vpop.permute.xlu0 %2937  ;;  %4903 = vmatprep.subr.mxu1 %v7847_v3  ;;  %4940 = vmatprep.subr.mxu0 %v7847_v3  ;;  %v4077_v52 = vld [vmem:[%s8632_s3 + $0x90] sm:$0xff] }
 0x32c   : > { %v8332_v33 = vadd.f32 %v1524_v7, %v9100_v17  ;;  %v2946_v43 = vadd.f32 %v8327_v27, %v2769_v40  ;;  %5005 = vmatmul.mubr.msk.f32.vlgmr.msra.gmra.mxu1 %vm3005_vm7, %v3877_v48  ;;  %v4076_v48 = vld [vmem:[%s8632_s3 + $0x88] sm:$0xff]  ;;  %v4075_v7 = vld [vmem:[%s8632_s3 + $0x80] sm:$0xff] }
 0x32d   : > { %4662 = vst.msk [vmem:[%s8222_s13 + $0x8] sm:$0xff] %vm3149_vm1, %v3327_v45  ;;  %4904 = vmatpush3.msra.mxu1 %v7856_v50  ;;  %v4060_v40 = vld [vmem:[%s8632_s3 + $0x8] sm:$0xff]  ;;  %v4059_v17 = vld [vmem:[%s8632_s3] sm:$0xff] }
 0x32e   : > { %v4058_v39 = vmax.f32 %v2946_v43, 0.0  ;;  %v8339_v32 = vpop.permute.xlu1 %1543  ;;  %4905 = vmatprep.subr.mxu1 %v7867_v5 }
 0x32f   : > { %v1542_v21 = vpop.permute.xlu0 %1541  ;;  %4906 = vmatpush3.msra.mxu1 %v7880_v0 }
 0x330   : > { %v1546_v3 = vsel %vm1390_vm8, %v1542_v21, %v8339_v32  ;;  %5010 = vmatmul.mubr.msk.f32.vlgmr.msra.gmra.mxu0 %vm3005_vm7, %v4058_v39  ;;  %4907 = vmatprep.subr.mxu1 %v9101_v6 }
 0x331   : > { %v8348_v24 = vadd.f32 %v1546_v3, %v9102_v9  ;;  %4941 = vmatpush3.msra.mxu0 %v7856_v50  ;;  %4908 = vmatpush3.msra.mxu1 %v9103_v29  ;;  %v9107_v50 = vld [vmem:[#allocation46_spill] sm:$0xff] }
 0x332   : > { %v1540_v16 = vpop.permute.xlu1 %1539  ;;  %4942 = vmatprep.subr.mxu0 %v7867_v5  ;;  %4909 = vmatprep.subr.mxu1 %v9104_v18 }
 0x333   : > { %v1545_v13 = vsel %vm1390_vm8, %v1540_v16, %v1542_v21  ;;  %v1518_v2 = vpop.permute.xlu0 %1517  ;;  %4943 = vmatpush3.msra.mxu0 %v7880_v0  ;;  %4910 = vmatpush3.msra.mxu1 %v9105_v49  ;;  %v9110_v0 = vld [vmem:[#allocation57_spill] sm:$0xff] }
 0x334   : > { %v8358_v14 = vadd.f32 %v1545_v13, %v9106_v63  ;;  %v1523_v15 = vsel %vm1390_vm8, %v1518_v2, %v1520_v23  ;;  %4944 = vmatprep.subr.mxu0 %v9101_v6  ;;  %4911 = vmatprep.subr.mxu1 %v9107_v50 }
 0x335   : > { %v8364_v5 = vadd.f32 %v1523_v15, %v9108_v51  ;;  %4945 = vmatpush3.msra.mxu0 %v9103_v29  ;;  %4912 = vmatpush3.msra.mxu1 %v9109_v11 }
 0x336   : > { %v8368_v34 = vpop.permute.xlu1 %1718  ;;  %4946 = vmatprep.subr.mxu0 %v9104_v18  ;;  %4913 = vmatprep.subr.mxu1 %v9110_v0 }
 0x337   : > { %v8372_v25 = vpop.permute.xlu0 %1696  ;;  %4947 = vmatpush3.msra.mxu0 %v9105_v49  ;;  %4914 = vmatpush3.msra.mxu1 %v9111_v59 }
 0x338   : > { %4948 = vmatprep.subr.mxu0 %v9107_v50  ;;  %4915 = vmatprep.subr.mxu1 %v9112_v58  ;;  %v1701_v13 = vsel %vm1567_vm9, %v8372_v25, %v8113_v46 }
 0x339   : > { %4949 = vmatpush3.msra.mxu0 %v9109_v11  ;;  %4916 = vmatpush3.msra.mxu1 %v9113_v19  ;;  %v1706_v63 = vadd.f32 %v1701_v13, %v8332_v33 }
 0x33a   : > { %v8380_v35 = vpop.permute.xlu1 %1694  ;;  %4950 = vmatprep.subr.mxu0 %v9110_v0  ;;  %4917 = vmatprep.subr.mxu1 %v9114_v37  ;;  %v9119_v0 = vld [vmem:[#allocation39_spill] sm:$0xff] }
 0x33b   : > { %v8384_v60 = vpop.permute.xlu0 %1720  ;;  %4951 = vmatpush3.msra.mxu0 %v9111_v59  ;;  %4918 = vmatpush3.msra.mxu1 %v9115_v47  ;;  %v9120_v59 = vld [vmem:[#allocation80_spill] sm:$0xff] }
 0x33c   : > { %4952 = vmatprep.subr.mxu0 %v9112_v58  ;;  %4919 = vmatprep.subr.mxu1 %v9116_v53  ;;  %v310_v58 = vmul.f32 %v9120_v59, %v9119_v0  ;;  %v1723_v13 = vsel %vm1567_vm9, %v8368_v34, %v8384_v60  ;;  %v1700_v59 = vsel %vm1567_vm9, %v8380_v35, %v8372_v25 }
 0x33d   : > { %4953 = vmatpush3.msra.mxu0 %v9113_v19  ;;  %4920 = vmatpush3.msra.mxu1 %v9117_v56  ;;  %v1705_v25 = vadd.f32 %v1700_v59, %v8364_v5 }
 0x33e   : > { %v8398_v36 = vpop.permute.xlu1 %1873  ;;  %4954 = vmatprep.subr.mxu0 %v9114_v37  ;;  %4921 = vmatprep.subr.mxu1 %v4081_v41 }
 0x33f   : > { %v8404_v57 = vpop.permute.xlu0 %1716  ;;  %4955 = vmatpush3.msra.mxu0 %v9115_v47  ;;  %4922 = vmatpush3.msra.mxu1 %v9118_v1  ;;  %v1878_v49 = vsel %vm1744_vm10, %v8398_v36, %v8154_v26 }
 0x340   : > { %4956 = vmatprep.subr.mxu0 %v9116_v53  ;;  %4923 = vmatprep.subr.mxu1 %v4080_v31  ;;  %v1883_v11 = vadd.f32 %v1878_v49, %v1706_v63 }
 0x341   : > { %4957 = vmatpush3.msra.mxu0 %v9117_v56  ;;  %4924 = vmatpush3.msra.mxu1 %v4064_v61 }
 0x342   : > { %v8419_v4 = vpop.permute.xlu1 %1897  ;;  %4958 = vmatprep.subr.mxu0 %v4081_v41  ;;  %4925 = vmatprep.subr.mxu1 %v4079_v42 }
 0x343   : > { %v8424_v44 = vpop.permute.xlu0 %1895  ;;  %4959 = vmatpush3.msra.mxu0 %v9118_v1  ;;  %4926 = vmatpush3.msra.mxu1 %v4063_v12 }
 0x344   : > { %4960 = vmatprep.subr.mxu0 %v4080_v31  ;;  %4927 = vmatprep.subr.mxu1 %v4078_v8  ;;  %v1900_v63 = vsel %vm1744_vm10, %v8424_v44, %v8419_v4 }
 0x345   : > { %4961 = vmatpush3.msra.mxu0 %v4064_v61  ;;  %4928 = vmatpush3.msra.mxu1 %v4062_v28 }
 0x346   : > { %v8436_v23 = vpop.permute.xlu1 %1893  ;;  %4962 = vmatprep.subr.mxu0 %v4079_v42  ;;  %4929 = vmatprep.subr.mxu1 %v4077_v52  ;;  %v9122_v42 = vld [vmem:[#allocation26_spill] sm:$0xff] }
 0x347   : > { %v8441_v45 = vpop.permute.xlu0 %1871  ;;  %4963 = vmatpush3.msra.mxu0 %v4063_v12  ;;  %4930 = vmatpush3.msra.mxu1 %v4061_v22 }
 0x348   : > { %4964 = vmatprep.subr.mxu0 %v4078_v8  ;;  %4931 = vmatprep.subr.mxu1 %v4076_v48  ;;  %v9123_v8 = vld [vmem:[#allocation42_spill] sm:$0xff] }
 0x349   : > { %4965 = vmatpush3.msra.mxu0 %v4062_v28  ;;  %4932 = vmatpush3.msra.mxu1 %v4060_v40 }
 0x34a   : > { %v8449_v43 = vpop.permute.xlu1 %2072  ;;  %4966 = vmatprep.subr.mxu0 %v4077_v52  ;;  %4933 = vmatprep.subr.mxu1 %v4075_v7 }
 0x34b   : > { %v8451_v39 = vpop.permute.xlu0 %2050  ;;  %4967 = vmatpush3.msra.mxu0 %v4061_v22  ;;  %4934 = vmatpush3.msra.mxu1 %v4059_v17 }
 0x34c   : > { %4968 = vmatprep.subr.mxu0 %v4076_v48  ;;  %5012 = vmatprep.subr.mxu1 %v9042_v20  ;;  %v2055_v50 = vsel %vm1921_vm11, %v8451_v39, %v8181_v30  ;;  %v9121_v30 = vld [vmem:[#allocation40_spill] sm:$0xff] }
 0x34d   : > { %4969 = vmatpush3.msra.mxu0 %v4060_v40  ;;  %v2060_v19 = vadd.f32 %v2055_v50, %v1883_v11  ;;  %v313_v41 = vadd.f32 %v310_v58, %v9121_v30  ;;  %v9125_v40 = vld [vmem:[#allocation63_spill] sm:$0xff]  ;;  %v9127_v11 = vld [vmem:[#allocation100_spill] sm:$0xff]  ;;  %v1728_v58 = vadd.f32 %v1723_v13, %v8348_v24 }
 0x34e   : > { %v8454_v21 = vpop.permute.xlu1 %2048  ;;  %4970 = vmatprep.subr.mxu0 %v4075_v7 }
 0x34f   : > { %v8456_v3 = vpop.permute.xlu0 %2074  ;;  %4971 = vmatpush3.msra.mxu0 %v4059_v17  ;;  %v1905_v30 = vadd.f32 %v1900_v63, %v1728_v58 }
 0x352   : > { %v8458_v6 = vpop.permute.xlu1 %2227 }
 0x353   : > { %v2071_v9 = vpop.permute.xlu0 %2070  ;;  %v2232_v46 = vsel %vm2098_vm12, %v8458_v6, %v8215_v38  ;;  %v490_v38 = vadd.f32 %v9122_v42, %v313_v41  ;;  %v1899_v41 = vsel %vm1744_vm10, %v8436_v23, %v8424_v44 }
 0x354   : > { %v2237_v47 = vadd.f32 %v2232_v46, %v2060_v19  ;;  %v1722_v46 = vsel %vm1567_vm9, %v8404_v57, %v8368_v34  ;;  %v1877_v34 = vsel %vm1744_vm10, %v8441_v45, %v8398_v36 }
 0x355   : > { %v667_v28 = vadd.f32 %v9123_v8, %v490_v38  ;;  %v1727_v24 = vadd.f32 %v1722_v46, %v8358_v14  ;;  %v2054_v14 = vsel %vm1921_vm11, %v8454_v21, %v8451_v39 }
 0x356   : > { %v8460_v29 = vpop.permute.xlu1 %2251 }
 0x357   : > { %v2250_v16 = vpop.permute.xlu0 %2249  ;;  %v1904_v23 = vadd.f32 %v1899_v41, %v1727_v24 }
 0x358   : > { %v2254_v35 = vsel %vm2098_vm12, %v2250_v16, %v8460_v29 }
 0x35a   : > { %v2248_v18 = vpop.permute.xlu1 %2247 }
 0x35b   : > { %v2226_v2 = vpop.permute.xlu0 %2225  ;;  %v2253_v38 = vsel %vm2098_vm12, %v2248_v18, %v2250_v16 }
 0x35e   : > { %v8469_v15 = vpop.permute.xlu1 %2426 }
 0x35f   : > { %v8474_v51 = vpop.permute.xlu0 %2404 }
 0x360   : > { %v2409_v33 = vsel %vm2275_vm13, %v8474_v51, %v8278_v54  ;;  %v9124_v54 = vld [vmem:[#allocation52_spill] sm:$0xff] }
 0x361   : > { %v2414_v53 = vadd.f32 %v2409_v33, %v2237_v47  ;;  %v844_v22 = vadd.f32 %v9124_v54, %v667_v28  ;;  %v2077_v33 = vsel %vm1921_vm11, %v8449_v43, %v8456_v3 }
 0x362   : > { %v2403_v26 = vpop.permute.xlu1 %2402 }
 0x363   : > { %v8484_v37 = vpop.permute.xlu0 %2428  ;;  %v1021_v7 = vadd.f32 %v9125_v40, %v844_v22  ;;  %v2408_v16 = vsel %vm2275_vm13, %v2403_v26, %v8474_v51 }
 0x364   : > { %v2431_v36 = vsel %vm2275_vm13, %v8469_v15, %v8484_v37 }
 0x366   : > { %v2582_v56 = vpop.permute.xlu1 %2581 }
 0x367   : > { %v2586_v31 = vsel %vm2452_vm14, %v2582_v56, %v8313_v62  ;;  %v2425_v61 = vpop.permute.xlu0 %2424  ;;  %v9126_v62 = vld [vmem:[#allocation74_spill] sm:$0xff] }
 0x368   : > { %v2591_v1 = vadd.f32 %v2586_v31, %v2414_v53  ;;  %v1198_v49 = vadd.f32 %v9126_v62, %v1021_v7  ;;  %v2076_v31 = vsel %vm1921_vm11, %v2071_v9, %v8449_v43  ;;  %v2430_v54 = vsel %vm2275_vm13, %v2425_v61, %v8469_v15 }
 0x369   : > { %v2081_v43 = vadd.f32 %v2076_v31, %v1904_v23 }
 0x36a   : > { %v8490_v12 = vpop.permute.xlu1 %2605  ;;  %v1375_v0 = vadd.f32 %v9127_v11, %v1198_v49 }
 0x36b   : > { %v2604_v52 = vpop.permute.xlu0 %2603  ;;  %v2258_v40 = vadd.f32 %v2253_v38, %v2081_v43 }
 0x36c   : > { %v1552_v47 = vadd.f32 %v8339_v32, %v1375_v0  ;;  %v2082_v32 = vadd.f32 %v2077_v33, %v1905_v30  ;;  %v2608_v9 = vsel %vm2452_vm14, %v2604_v52, %v8490_v12 }
 0x36d   : > { %v2435_v62 = vadd.f32 %v2430_v54, %v2258_v40 }
 0x36e   : > { %v2602_v48 = vpop.permute.xlu1 %2601  ;;  %v1729_v53 = vadd.f32 %v8384_v60, %v1552_v47  ;;  %v1882_v60 = vadd.f32 %v1877_v34, %v1705_v25  ;;  %v2259_v42 = vadd.f32 %v2254_v35, %v2082_v32 }
 0x36f   : > { %v2580_v17 = vpop.permute.xlu0 %2579  ;;  %v2607_v13 = vsel %vm2452_vm14, %v2602_v48, %v2604_v52 }
 0x370   : > { %v1906_v45 = vadd.f32 %v8419_v4, %v1729_v53  ;;  %v2059_v39 = vadd.f32 %v2054_v14, %v1882_v60  ;;  %v2436_v21 = vadd.f32 %v2431_v36, %v2259_v42  ;;  %v2585_v15 = vsel %vm2452_vm14, %v2580_v17, %v2582_v56  ;;  %v4272_v60 = vld [vmem:[%s8632_s3 + $0x100] sm:$0xff] }
 0x371   : > { %v2612_v0 = vadd.f32 %v2607_v13, %v2435_v62 }
 0x372   : > { %v2781_v50 = vpop.permute.xlu1 %2780  ;;  %v2613_v7 = vadd.f32 %v2608_v9, %v2436_v21 }
 0x373   : > { %v2759_v19 = vpop.permute.xlu0 %2758 }
 0x374   : > { %v2763_v44 = vsel %vm2629_vm15, %v2759_v19, %v8311_v55  ;;  %v2231_v55 = vsel %vm2098_vm12, %v2226_v2, %v8458_v6  ;;  %v2083_v2 = vadd.f32 %v8456_v3, %v1906_v45 }
 0x375   : > { %v2768_v8 = vadd.f32 %v2763_v44, %v2591_v1  ;;  %v2236_v1 = vadd.f32 %v2231_v55, %v2059_v39 }
 0x376   : > { %v2757_v57 = vpop.permute.xlu1 %2756 }
 0x377   : > { %v2783_v5 = vpop.permute.xlu0 %2782  ;;  %v2413_v63 = vadd.f32 %v2408_v16, %v2236_v1  ;;  %v2762_v59 = vsel %vm2629_vm15, %v2757_v57, %v2759_v19 }
 0x378   : > { %v2785_v6 = vsel %vm2629_vm15, %v2781_v50, %v2783_v5 }
 0x379   : > { %v2790_v11 = vadd.f32 %v2785_v6, %v2613_v7  ;;  %v2590_v48 = vadd.f32 %v2585_v15, %v2413_v63 }
 0x37a   : > { %v2936_v28 = vpop.permute.xlu1 %2935 }
 0x37b   : > { %v2940_v4 = vsel %vm2806_vm0, %v2936_v28, %v8327_v27  ;;  %v2779_v22 = vpop.permute.xlu0 %2778  ;;  %v2260_v27 = vadd.f32 %v8460_v29, %v2083_v2  ;;  %v2767_v47 = vadd.f32 %v2762_v59, %v2590_v48 }
 0x37c   : > { %v2945_v18 = vadd.f32 %v2940_v4, %v2768_v8  ;;  %v2784_v51 = vsel %vm2629_vm15, %v2779_v22, %v2781_v50 }
 0x37d   : > { %v2437_v52 = vadd.f32 %v8484_v37, %v2260_v27  ;;  %v2789_v46 = vadd.f32 %v2784_v51, %v2612_v0 }
 0x37e   : > { %v4057_v61 = vmax.f32 %v2945_v18, 0.0  ;;  %v2960_v49 = vpop.permute.xlu1 %2959 }
 0x37f   : > { %v2958_v26 = vpop.permute.xlu0 %2957  ;;  %v2614_v29 = vadd.f32 %v8490_v12, %v2437_v52 }
 0x380   : > { %v2962_v3 = vsel %vm2806_vm0, %v2958_v26, %v2960_v49  ;;  %4159 = vmatprep.mubr.f32.mxu1 %v4057_v61 }
 0x381   : > { %v2967_v58 = vadd.f32 %v2962_v3, %v2790_v11  ;;  %v4787_v56 = vpop.f32.mrf.mxu1  ;;  %v4824_v17 = vpop.f32.mrf.mxu0  ;;  %v2791_v35 = vadd.f32 %v2783_v5, %v2614_v29 }
 0x382   : > { %v2956_v33 = vpop.permute.xlu1 %2955 }
 0x383   : > { %v4238_v30 = vmax.f32 %v2967_v58, 0.0  ;;  %v2961_v50 = vsel %vm2806_vm0, %v2956_v33, %v2958_v26  ;;  %v2934_v41 = vpop.permute.xlu0 %2933  ;;  %v4788_v25 = vpop.f32.mrf.mxu1  ;;  %v2968_v44 = vadd.f32 %v2960_v49, %v2791_v35 }
 0x384   : > { %v2966_v19 = vadd.f32 %v2961_v50, %v2789_v46  ;;  %v2939_v24 = vsel %vm2806_vm0, %v2934_v41, %v2936_v28  ;;  %v4789_v34 = vadd.f32 %v4788_v25, %v4787_v56  ;;  %v4825_v37 = vpop.f32.mrf.mxu0 }
 0x385   : > { %v2944_v57 = vadd.f32 %v2939_v24, %v2767_v47  ;;  %v4826_v53 = vadd.f32 %v4825_v37, %v4824_v17  ;;  %v3688_v32 = vpop.f32.mrf.mxu1  ;;  %4340 = vmatprep.mubr.f32.mxu0 %v4238_v30 }
 0x386   : > { %v4237_v31 = vmax.f32 %v2966_v19, 0.0  ;;  %v3508_v12 = vadd.f32 %v4789_v34, %v8315_v10  ;;  %v4239_v10 = vmax.f32 %v2968_v44, 0.0 }
 0x387   : > { %v4056_v23 = vmax.f32 %v2944_v57, 0.0  ;;  %v3689_v14 = vadd.f32 %v4826_v53, %v3688_v32  ;;  %v4996_v36 = vpop.f32.mrf.mxu1  ;;  %v3869_v45 = vpop.f32.mrf.mxu0 }
 0x388   : > { %4664 = vst.msk [vmem:[%s8222_s13 + $0x10] sm:$0xff] %vm3149_vm1, %v3508_v12  ;;  %4341 = vmatmul.mubr.f32.vlgmr.msra.gmra.mxu0 %v4237_v31 }
 0x389   : > { %4666 = vst.msk [vmem:[%s8222_s13 + $0x18] sm:$0xff] %vm3149_vm1, %v3689_v14  ;;  %4160 = vmatmul.mubr.f32.vlgmr.msra.gmra.mxu1 %v4056_v23  ;;  %v5001_v5 = vpop.f32.mrf.mxu0 }
 0x38a   : > { %5013 = vmatpush3.msra.mxu1 %v4272_v60  ;;  %5014 = vmatprep.mubr.msk.f32.mxu1 %vm5244_vm4, %v9042_v20 }
 0x38d   : > { %5015 = vmatmul.mubr.msk.f32.vlgmr.msra.gmra.mxu1 %vm3005_vm7, %v4239_v10 }
 0x3e8   : > { %v4861_v42 = vpop.f32.mrf.mxu1  ;;  %v4898_v38 = vpop.f32.mrf.mxu0 }
 0x3ea   : > { %v4862_v43 = vpop.f32.mrf.mxu1  ;;  %v4899_v55 = vpop.f32.mrf.mxu0 }
 0x3eb   : > { %v4863_v9 = vadd.f32 %v4862_v43, %v4861_v42  ;;  %v4900_v8 = vadd.f32 %v4899_v55, %v4898_v38 }
 0x3ec   : > { %v4050_v28 = vpop.f32.mrf.mxu1 }
 0x3ed   : > { %v3870_v39 = vadd.f32 %v4863_v9, %v3869_v45  ;;  %v4051_v21 = vadd.f32 %v4900_v8, %v4050_v28 }
 0x3ee   : > { %v5006_v54 = vpop.f32.mrf.mxu1 }
 0x3ef   : > { %4668 = vst.msk [vmem:[%s8222_s13 + $0x20] sm:$0xff] %vm3149_vm1, %v3870_v39  ;;  %4670 = vst.msk [vmem:[%s8222_s13 + $0x28] sm:$0xff] %vm3149_vm1, %v4051_v21 }
 0x3f0   : > { %v4231_v20 = vpop.f32.mrf.mxu0 }
 0x3f2   : > { %v5011_v4 = vpop.f32.mrf.mxu0 }
 0x448   : > { %v4972_v22 = vpop.f32.mrf.mxu0 }
 0x449   : > { %v4935_v40 = vpop.f32.mrf.mxu1 }
 0x44a   : > { %v4973_v16 = vpop.f32.mrf.mxu0 }
 0x44b   : > { %v4936_v6 = vpop.f32.mrf.mxu1  ;;  %v4974_v18 = vadd.f32 %v4973_v16, %v4972_v22 }
 0x44c   : > { %v4937_v2 = vadd.f32 %v4936_v6, %v4935_v40 }
 0x44d   : > { %v4412_v1 = vpop.f32.mrf.mxu1 }
 0x44e   : > { %v4232_v7 = vadd.f32 %v4937_v2, %v4231_v20  ;;  %v4413_v13 = vadd.f32 %v4974_v18, %v4412_v1 }
 0x44f   : > { %v5016_v62 = vpop.f32.mrf.mxu1 }
 0x450   : > { %4672 = vst.msk [vmem:[%s8222_s13 + $0x30] sm:$0xff] %vm3149_vm1, %v4232_v7  ;;  %4674 = vst.msk [vmem:[%s8222_s13 + $0x38] sm:$0xff] %vm3149_vm1, %v4413_v13 }
 0x451   : > { %5173 = shalt.err (!%p5170_p1)
}
 0x452   : > { %s5174_s10 = scalar_lea.hbm %s8579_s27, 1024  ;;  %s5178_s5 = scalar_lea.hbm %s8633_s4, 2048 }
 0x453   : > { %p5175_p2 = scmp.ne.s32.totalorder %s8579_s27, %s5174_s10  ;;  %p5179_p9 = scmp.lt.s32.totalorder %s8579_s27, %s8633_s4 }
 0x454   : > { %p5180_p5 = scmp.lt.s32.totalorder %s5178_s5, %s5174_s10 }
 0x455   : > { %p5176_p3 = pnand %p5175_p2, %p9128_p12 }
 0x456   : > { %p5181_p6 = por %p5180_p5, %p5179_p9 }
 0x457   : > { %p5177_p4 = pneg %p5176_p3 }
 0x459   : > { %p5182_p10 = pnand %p5181_p6, %p5177_p4 }
 0x45b   : > { %5185 = shalt.err (!%p5182_p10)
}
 0x45c   : > { %s5250_s9 = smov 128   ;;  %s5251_s30 = smov 8  }
 0x45d   : > { %5026 = dma.vmem_to_hbm [thread:$0]  (%p9128_p12), %s8581_s28, 1024, %s8579_s27, %s8589_s19, %s5250_s9, %s5250_s9, %s5251_s30  }
 0x45e PF: > { %p5043_p0 = scmp.ge.s32.totalorder %s5228_s18, 2  ;;  %s4447_s11 = sand.u32 1, %s5216_s15  }
 0x45f   : > { %p9129_p7 = scmp.ne.s32.totalorder %s8807_s26, 0  ;;  %s4448_s12 = scalar_lea.sflag [#allocation3], %s4447_s11 }
 0x461   : > { %p5036_p8 = pnand %p5043_p0, %p9129_p7 }
 0x463   : > { %p5037_p11 = pneg %p5036_p8 }
 0x465   : > { %5211 = dma.done.wait (%p5037_p11), %s4448_s12, 1024  }
 0x466   : > { %5213 = vsyncadd (%p5037_p11), %s4448_s12, 4294966272  ;;  %p16_p13 = scmp.ge.s32.totalorder %s5302_s21, 4   ;;  %s9130_s15 = smov %s5220_s16 }
 0x467   : > { %s9131_s16 = smov %s5224_s17  ;;  %s9132_s17 = smov %s5313_s24 }
 0x468   : > { %s9133_s18 = smov %s5302_s21  ;;  %18 = sbr.rel (!%p16_p13) target bundleno = 5 (0x5), region = 87 }
 0x46d   :  { %4453 = vsyncpa [#allocation3], 1 }
 0x46e   :  { %4455 = vsyncpa [#allocation3 + $0x1], 1 }
 0x46f   :  { %4456 = vsyncpa [#allocation4], 1 }
 0x470   :  { %4458 = vsyncpa [#allocation4 + $0x1], 1 }
 0x471   :  { %4459 = vsyncpa [#allocation6], 1 }

</bundles_post_ra>
